<compile_context>
chip_gen: v7x
topology: tpu7x:2x2x1
jax: 0.10.0
libtpu: 0.0.40
codegen_flags: <defaults>
</compile_context>

<pallas_src>
import functools

import jax
import jax.numpy as jnp
from jax import lax
from jax.experimental import pallas as pl
from jax.experimental.pallas import tpu as pltpu

_K = 5          # both convs are 5x5, stride 1
_OC1_PAD = 8    # conv1 output channels padded 6 -> 8
_LANE = 128


def _round_up(x, m):
    return ((x + m - 1) // m) * m


# ----------------------------------------------------------------------------
# Kernel 1: conv1 + tanh + pool  ->  conv2 + tanh + pool   (one image per step)
# ----------------------------------------------------------------------------
def _conv_tanh_pool(in_ref, w_ref, b_ref, out_ref):
    """5x5 valid conv (stride 1) + bias + tanh + 2x2/stride-2 max pool.

    in_ref : (H, W, C)           bf16   NHWC image / activation
    w_ref  : (25*C, OC)          bf16   rows ordered (kh, kw, c)
    b_ref  : (1, OC)             f32
    out_ref: (OH//2, OW//2, OC)         pooled activation, written row by row
    """
    H, W, C = in_ref.shape
    OW = W - _K + 1
    OWP = OW // 2
    n_pairs = out_ref.shape[0]

    w = w_ref[...]
    b = b_ref[...]

    # One-hot selection matrices that pick even / odd conv-output columns.
    # Stride-2 width pooling is done with these tiny MXU matmuls (robust,
    # no strided value slicing needed).
    r = lax.broadcasted_iota(jnp.int32, (OWP, OW), 0)
    c = lax.broadcasted_iota(jnp.int32, (OWP, OW), 1)
    s_even = (c == 2 * r).astype(jnp.float32)
    s_odd = (c == 2 * r + 1).astype(jnp.float32)

    def row_pair(p, carry):
        ys = []
        for sub in range(2):                       # the two conv rows feeding pooled row p
            oh = 2 * p + sub
            # In-kernel im2col: 25 shifted, contiguous ref slices -> (OW, 25*C)
            pieces = [
                in_ref[oh + kh, kw:kw + OW, :]     # (OW, C)
                for kh in range(_K) for kw in range(_K)
            ]
            patches = jnp.concatenate(pieces, axis=-1)
            ys.append(jnp.dot(patches, w, preferred_element_type=jnp.float32))
        m = jnp.maximum(ys[0], ys[1])                               # pool over height
        e = jnp.dot(s_even, m, preferred_element_type=jnp.float32)  # even columns
        o = jnp.dot(s_odd, m, preferred_element_type=jnp.float32)   # odd columns
        pooled = jnp.tanh(jnp.maximum(e, o) + b)                    # width pool, bias, tanh
        out_ref[p] = pooled.astype(out_ref.dtype)
        return carry

    lax.fori_loop(0, n_pairs, row_pair, 0)


def _conv_stage_kernel(x_ref, w1_ref, b1_ref, w2_ref, b2_ref, o_ref, act1_ref):
    # conv1 + tanh + pool -> VMEM scratch (never written to HBM)
    _conv_tanh_pool(x_ref, w1_ref, b1_ref, act1_ref)
    # conv2 + tanh + pool -> pooled (5, 5, 16) output block
    _conv_tanh_pool(act1_ref, w2_ref, b2_ref, o_ref)


def conv_stage(x_nhwc, w1, b1, w2, b2):
    """x: (B, H, W, Cin) bf16 (already padded so H=W=32). Returns (B,5,5,16) bf16."""
    B, H, W, CIN = x_nhwc.shape
    OH1, OW1 = H - _K + 1, W - _K + 1
    P1H, P1W = OH1 // 2, OW1 // 2
    OH2, OW2 = P1H - _K + 1, P1W - _K + 1
    P2H, P2W = OH2 // 2, OW2 // 2
    OC1P = w1.shape[1]
    OC2 = w2.shape[1]

    flops = B * (2 * OH1 * OW1 * (25 * CIN) * OC1P
                 + 2 * OH2 * OW2 * (25 * OC1P) * OC2)
    transc = B * (P1H * P1W * OC1P + P2H * P2W * OC2)
    bytes_accessed = (x_nhwc.size * 2 + w1.size * 2 + w2.size * 2
                      + b1.size * 4 + b2.size * 4 + B * P2H * P2W * OC2 * 2)

    return pl.pallas_call(
        _conv_stage_kernel,
        out_shape=jax.ShapeDtypeStruct((B, P2H, P2W, OC2), jnp.bfloat16),
        grid=(B,),
        in_specs=[
            pl.BlockSpec((None, H, W, CIN), lambda b: (b, 0, 0, 0)),
            pl.BlockSpec((25 * CIN, OC1P), lambda b: (0, 0)),
            pl.BlockSpec((1, OC1P), lambda b: (0, 0)),
            pl.BlockSpec((25 * OC1P, OC2), lambda b: (0, 0)),
            pl.BlockSpec((1, OC2), lambda b: (0, 0)),
        ],
        out_specs=pl.BlockSpec((None, P2H, P2W, OC2), lambda b: (b, 0, 0, 0)),
        scratch_shapes=[pltpu.VMEM((P1H, P1W, OC1P), jnp.bfloat16)],
        compiler_params=pltpu.CompilerParams(
            dimension_semantics=("parallel",),
            vmem_limit_bytes=32 * 1024 * 1024),
        cost_estimate=pl.CostEstimate(
            flops=flops, transcendentals=transc, bytes_accessed=bytes_accessed),
    )(x_nhwc, w1, b1, w2, b2)


# ----------------------------------------------------------------------------
# Kernel 2: fc1 + tanh + fc2 + tanh + fc3 fused, batch-tiled, lane-dense output
# ----------------------------------------------------------------------------
def _fc_stack_kernel(x_ref, w1_ref, b1_ref, w2_ref, b2_ref, w3_ref, b3_ref, o_ref):
    h = jnp.dot(x_ref[...], w1_ref[...], preferred_element_type=jnp.float32) + b1_ref[...]
    h = jnp.tanh(h).astype(w2_ref.dtype)
    h = jnp.dot(h, w2_ref[...], preferred_element_type=jnp.float32) + b2_ref[...]
    h = jnp.tanh(h).astype(w3_ref.dtype)
    h = jnp.dot(h, w3_ref[...], preferred_element_type=jnp.float32) + b3_ref[...]
    o_ref[...] = h.astype(o_ref.dtype)


def fc_stage(h, w1, b1, w2, b2, w3, b3):
    B, K = h.shape
    N1, N2, N3 = w1.shape[1], w2.shape[1], w3.shape[1]
    BM = min(128, _round_up(B, 8))
    B_pad = _round_up(B, BM)
    if B_pad != B:
        h = jnp.pad(h, ((0, B_pad - B), (0, 0)))
    out = pl.pallas_call(
        _fc_stack_kernel,
        out_shape=jax.ShapeDtypeStruct((B_pad, N3), jnp.float32),
        grid=(B_pad // BM,),
        in_specs=[
            pl.BlockSpec((BM, K), lambda i: (i, 0)),
            pl.BlockSpec((K, N1), lambda i: (0, 0)),
            pl.BlockSpec((1, N1), lambda i: (0, 0)),
            pl.BlockSpec((N1, N2), lambda i: (0, 0)),
            pl.BlockSpec((1, N2), lambda i: (0, 0)),
            pl.BlockSpec((N2, N3), lambda i: (0, 0)),
            pl.BlockSpec((1, N3), lambda i: (0, 0)),
        ],
        out_specs=pl.BlockSpec((BM, N3), lambda i: (i, 0)),
        compiler_params=pltpu.CompilerParams(
            dimension_semantics=("parallel",),
            vmem_limit_bytes=32 * 1024 * 1024),
    )(h, w1, b1, w2, b2, w3, b3)
    return out[:B]


# ----------------------------------------------------------------------------
# Parameters (PyTorch layout) + one-time conversion to kernel-ready tensors
# ----------------------------------------------------------------------------
def init_params(key, in_channels, out_features):
    ks = jax.random.split(key, 10)

    def u(k, shape, fan_in):
        bound = 1.0 / jnp.sqrt(jnp.float32(fan_in))
        return jax.random.uniform(k, shape, jnp.float32, -bound, bound)

    return {
        "conv1_w": u(ks[0], (6, in_channels, 5, 5), in_channels * 25),
        "conv1_b": u(ks[1], (6,), in_channels * 25),
        "conv2_w": u(ks[2], (16, 6, 5, 5), 6 * 25),
        "conv2_b": u(ks[3], (16,), 6 * 25),
        # Linear weights stored as (in_features, out_features) = PyTorch W.T,
        # fc1 rows in PyTorch (c, h, w) flatten order.
        "fc1_w": u(ks[4], (16 * 5 * 5, 120), 16 * 5 * 5),
        "fc1_b": u(ks[5], (120,), 16 * 5 * 5),
        "fc2_w": u(ks[6], (120, 84), 120),
        "fc2_b": u(ks[7], (84,), 120),
        "fc3_w": u(ks[8], (84, out_features), 84),
        "fc3_b": u(ks[9], (out_features,), 84),
    }


def prep_params(params):
    """PyTorch-layout params -> padded, bf16, kernel-ready tensors (tiny ops)."""
    cdt = jnp.bfloat16
    c1w, c1b = params["conv1_w"], params["conv1_b"]
    c2w, c2b = params["conv2_w"], params["conv2_b"]
    oc1, cin = c1w.shape[0], c1w.shape[1]
    oc2 = c2w.shape[0]
    out_features = params["fc3_b"].shape[0]
    nout_pad = _round_up(out_features, _LANE)

    # conv1: OIHW -> (kh, kw, ic, oc) -> (25*cin, oc); pad oc 6 -> 8 (zeros).
    w1 = c1w.transpose(2, 3, 1, 0).reshape(25 * cin, oc1)
    w1 = jnp.pad(w1, ((0, 0), (0, _OC1_PAD - oc1)))
    b1 = jnp.pad(c1b, (0, _OC1_PAD - oc1)).reshape(1, _OC1_PAD).astype(jnp.float32)

    # conv2: pad input channels 6 -> 8 (matches the padded conv1 activation,
    # padded channels are exactly zero so the extra rows are zero weights).
    w2 = jnp.pad(c2w, ((0, 0), (0, _OC1_PAD - oc1), (0, 0), (0, 0)))
    w2 = w2.transpose(2, 3, 1, 0).reshape(25 * _OC1_PAD, oc2)
    b2 = c2b.reshape(1, oc2).astype(jnp.float32)

    # fc1: rows arrive in PyTorch (c, h, w) flatten order; kernels flatten the
    # pooled activation as (h, w, c) -> permute rows once; pad 120 -> 128 cols.
    f1 = params["fc1_w"].reshape(oc2, 5, 5, 120).transpose(1, 2, 0, 3)
    f1 = f1.reshape(oc2 * 25, 120)
    f1 = jnp.pad(f1, ((0, 0), (0, 128 - 120)))
    f1b = jnp.pad(params["fc1_b"], (0, 128 - 120)).reshape(1, 128).astype(jnp.float32)

    f2 = jnp.pad(params["fc2_w"], ((0, 128 - 120), (0, 128 - 84)))
    f2b = jnp.pad(params["fc2_b"], (0, 128 - 84)).reshape(1, 128).astype(jnp.float32)

    f3 = jnp.pad(params["fc3_w"], ((0, 128 - 84), (0, nout_pad - out_features)))
    f3b = jnp.pad(params["fc3_b"], (0, nout_pad - out_features))
    f3b = f3b.reshape(1, nout_pad).astype(jnp.float32)

    return {
        "w1": w1.astype(cdt), "b1": b1,
        "w2": w2.astype(cdt), "b2": b2,
        "fc1_w": f1.astype(cdt), "fc1_b": f1b,
        "fc2_w": f2.astype(cdt), "fc2_b": f2b,
        "fc3_w": f3.astype(cdt), "fc3_b": f3b,
    }


# ----------------------------------------------------------------------------
# LeNet forward
# ----------------------------------------------------------------------------
def lenet_forward(x_nchw, params, size=32):
    pad = {28: 2, 32: 0}[size]
    B = x_nchw.shape[0]
    out_features = params["fc3_b"].shape[0]
    kp = prep_params(params)

    # NCHW -> NHWC once, on the tiny network input; activations stay NHWC.
    x = jnp.transpose(x_nchw, (0, 2, 3, 1))
    if pad:
        x = jnp.pad(x, ((0, 0), (pad, pad), (pad, pad), (0, 0)))
    x = x.astype(jnp.bfloat16)

    h = conv_stage(x, kp["w1"], kp["b1"], kp["w2"], kp["b2"])     # (B, 5, 5, 16) bf16
    h = h.reshape(B, -1)                                          # (B, 400), (h,w,c) order
    out = fc_stage(h, kp["fc1_w"], kp["fc1_b"], kp["fc2_w"], kp["fc2_b"],
                   kp["fc3_w"], kp["fc3_b"])                      # (B, 128) f32, lane-dense
    return out[:, :out_features]


if __name__ == "__main__":
    IN_CHANNELS = 3
    OUT_FEATURES = 10
    SIZE = 32
    BATCH = 2

    key = jax.random.PRNGKey(0)
    k_param, k_x = jax.random.split(key)
    params = init_params(k_param, IN_CHANNELS, OUT_FEATURES)
    x = jax.random.normal(k_x, (BATCH, IN_CHANNELS, SIZE, SIZE), jnp.float32)

    fwd = jax.jit(functools.partial(lenet_forward, size=SIZE))
    out = fwd(x, params)
    jax.block_until_ready(out)
    assert out.shape == (BATCH, OUT_FEATURES)
    print("KERNEL_OK")
</pallas_src>

<mosaic_0001>
module attributes {stable_mosaic.version = 11 : i64} {
  func.func @_conv_stage_kernel(%arg0: i32, %arg1: memref<1x32x32x3xbf16, #tpu.memory_space<vmem>>, %arg2: memref<75x8xbf16, #tpu.memory_space<vmem>>, %arg3: memref<1x8xf32, #tpu.memory_space<vmem>>, %arg4: memref<200x16xbf16, #tpu.memory_space<vmem>>, %arg5: memref<1x16xf32, #tpu.memory_space<vmem>>, %arg6: memref<1x5x5x16xbf16, #tpu.memory_space<vmem>>, %arg7: memref<14x14x8xbf16, #tpu.memory_space<vmem>>) attributes {dimension_semantics = [#tpu.dimension_semantics<parallel>], iteration_bounds = array<i64: 2>, scalar_prefetch = 0 : i64, scratch_operands = 1 : i64, tpu.core_type = #tpu.core_type<tc>, window_params = [{transform_indices = @transform_0, window_bounds = array<i64: 1, 32, 32, 3>}, {pipeline_mode = #tpu.pipeline_mode<synchronous>, transform_indices = @transform_1, window_bounds = array<i64: 75, 8>}, {pipeline_mode = #tpu.pipeline_mode<synchronous>, transform_indices = @transform_2, window_bounds = array<i64: 1, 8>}, {pipeline_mode = #tpu.pipeline_mode<synchronous>, transform_indices = @transform_3, window_bounds = array<i64: 200, 16>}, {pipeline_mode = #tpu.pipeline_mode<synchronous>, transform_indices = @transform_4, window_bounds = array<i64: 1, 16>}, {transform_indices = @transform_5, window_bounds = array<i64: 1, 5, 5, 16>}]} {
    %c0 = arith.constant 0 : index
    %c0_0 = arith.constant 0 : index
    %0 = vector.load %arg2[%c0, %c0_0] : memref<75x8xbf16, #tpu.memory_space<vmem>>, vector<75x8xbf16>
    %c0_1 = arith.constant 0 : index
    %c0_2 = arith.constant 0 : index
    %1 = vector.load %arg3[%c0_1, %c0_2] : memref<1x8xf32, #tpu.memory_space<vmem>>, vector<1x8xf32>
    %2 = tpu.iota {dimensions = array<i32: 0>} : vector<14x28xi32>
    %3 = tpu.iota {dimensions = array<i32: 1>} : vector<14x28xi32>
    %c2_i32 = arith.constant 2 : i32
    %4 = vector.broadcast %c2_i32 : i32 to vector<14x28xi32>
    %5 = arith.muli %4, %2 : vector<14x28xi32>
    %6 = arith.cmpi eq, %3, %5 : vector<14x28xi32>
    %7 = arith.extui %6 : vector<14x28xi1> to vector<14x28xi32>
    %8 = arith.sitofp %7 : vector<14x28xi32> to vector<14x28xf32>
    %c2_i32_3 = arith.constant 2 : i32
    %9 = vector.broadcast %c2_i32_3 : i32 to vector<14x28xi32>
    %10 = arith.muli %9, %2 : vector<14x28xi32>
    %c1_i32 = arith.constant 1 : i32
    %11 = vector.broadcast %c1_i32 : i32 to vector<14x28xi32>
    %12 = arith.addi %10, %11 : vector<14x28xi32>
    %13 = arith.cmpi eq, %3, %12 : vector<14x28xi32>
    %14 = arith.extui %13 : vector<14x28xi1> to vector<14x28xi32>
    %15 = arith.sitofp %14 : vector<14x28xi32> to vector<14x28xf32>
    %c0_i32 = arith.constant 0 : i32
    %c14_i32 = arith.constant 14 : i32
    %16 = arith.addi %c0_i32, %c14_i32 : i32
    %c1_i32_4 = arith.constant 1 : i32
    scf.for %arg8 = %c0_i32 to %16 step %c1_i32_4  : i32 {
      %c2_i32_16 = arith.constant 2 : i32
      %34 = arith.muli %c2_i32_16, %arg8 : i32
      %c0_i32_17 = arith.constant 0 : i32
      %35 = arith.addi %34, %c0_i32_17 : i32
      %c0_i32_18 = arith.constant 0 : i32
      %36 = arith.addi %35, %c0_i32_18 : i32
      %c0_19 = arith.constant 0 : index
      %37 = arith.index_cast %36 : i32 to index
      %c0_20 = arith.constant 0 : index
      %c0_21 = arith.constant 0 : index
      %38 = vector.load %arg1[%c0_19, %37, %c0_20, %c0_21] : memref<1x32x32x3xbf16, #tpu.memory_space<vmem>>, vector<1x1x28x3xbf16>
      %39 = vector.shape_cast %38 : vector<1x1x28x3xbf16> to vector<28x3xbf16>
      %c0_i32_22 = arith.constant 0 : i32
      %40 = arith.addi %35, %c0_i32_22 : i32
      %c0_23 = arith.constant 0 : index
      %41 = arith.index_cast %40 : i32 to index
      %c1 = arith.constant 1 : index
      %c0_24 = arith.constant 0 : index
      %42 = vector.load %arg1[%c0_23, %41, %c1, %c0_24] : memref<1x32x32x3xbf16, #tpu.memory_space<vmem>>, vector<1x1x28x3xbf16>
      %43 = vector.shape_cast %42 : vector<1x1x28x3xbf16> to vector<28x3xbf16>
      %c0_i32_25 = arith.constant 0 : i32
      %44 = arith.addi %35, %c0_i32_25 : i32
      %c0_26 = arith.constant 0 : index
      %45 = arith.index_cast %44 : i32 to index
      %c2 = arith.constant 2 : index
      %c0_27 = arith.constant 0 : index
      %46 = vector.load %arg1[%c0_26, %45, %c2, %c0_27] : memref<1x32x32x3xbf16, #tpu.memory_space<vmem>>, vector<1x1x28x3xbf16>
      %47 = vector.shape_cast %46 : vector<1x1x28x3xbf16> to vector<28x3xbf16>
      %c0_i32_28 = arith.constant 0 : i32
      %48 = arith.addi %35, %c0_i32_28 : i32
      %c0_29 = arith.constant 0 : index
      %49 = arith.index_cast %48 : i32 to index
      %c3 = arith.constant 3 : index
      %c0_30 = arith.constant 0 : index
      %50 = vector.load %arg1[%c0_29, %49, %c3, %c0_30] : memref<1x32x32x3xbf16, #tpu.memory_space<vmem>>, vector<1x1x28x3xbf16>
      %51 = vector.shape_cast %50 : vector<1x1x28x3xbf16> to vector<28x3xbf16>
      %c0_i32_31 = arith.constant 0 : i32
      %52 = arith.addi %35, %c0_i32_31 : i32
      %c0_32 = arith.constant 0 : index
      %53 = arith.index_cast %52 : i32 to index
      %c4 = arith.constant 4 : index
      %c0_33 = arith.constant 0 : index
      %54 = vector.load %arg1[%c0_32, %53, %c4, %c0_33] : memref<1x32x32x3xbf16, #tpu.memory_space<vmem>>, vector<1x1x28x3xbf16>
      %55 = vector.shape_cast %54 : vector<1x1x28x3xbf16> to vector<28x3xbf16>
      %c1_i32_34 = arith.constant 1 : i32
      %56 = arith.addi %35, %c1_i32_34 : i32
      %c0_35 = arith.constant 0 : index
      %57 = arith.index_cast %56 : i32 to index
      %c0_36 = arith.constant 0 : index
      %c0_37 = arith.constant 0 : index
      %58 = vector.load %arg1[%c0_35, %57, %c0_36, %c0_37] : memref<1x32x32x3xbf16, #tpu.memory_space<vmem>>, vector<1x1x28x3xbf16>
      %59 = vector.shape_cast %58 : vector<1x1x28x3xbf16> to vector<28x3xbf16>
      %c1_i32_38 = arith.constant 1 : i32
      %60 = arith.addi %35, %c1_i32_38 : i32
      %c0_39 = arith.constant 0 : index
      %61 = arith.index_cast %60 : i32 to index
      %c1_40 = arith.constant 1 : index
      %c0_41 = arith.constant 0 : index
      %62 = vector.load %arg1[%c0_39, %61, %c1_40, %c0_41] : memref<1x32x32x3xbf16, #tpu.memory_space<vmem>>, vector<1x1x28x3xbf16>
      %63 = vector.shape_cast %62 : vector<1x1x28x3xbf16> to vector<28x3xbf16>
      %c1_i32_42 = arith.constant 1 : i32
      %64 = arith.addi %35, %c1_i32_42 : i32
      %c0_43 = arith.constant 0 : index
      %65 = arith.index_cast %64 : i32 to index
      %c2_44 = arith.constant 2 : index
      %c0_45 = arith.constant 0 : index
      %66 = vector.load %arg1[%c0_43, %65, %c2_44, %c0_45] : memref<1x32x32x3xbf16, #tpu.memory_space<vmem>>, vector<1x1x28x3xbf16>
      %67 = vector.shape_cast %66 : vector<1x1x28x3xbf16> to vector<28x3xbf16>
      %c1_i32_46 = arith.constant 1 : i32
      %68 = arith.addi %35, %c1_i32_46 : i32
      %c0_47 = arith.constant 0 : index
      %69 = arith.index_cast %68 : i32 to index
      %c3_48 = arith.constant 3 : index
      %c0_49 = arith.constant 0 : index
      %70 = vector.load %arg1[%c0_47, %69, %c3_48, %c0_49] : memref<1x32x32x3xbf16, #tpu.memory_space<vmem>>, vector<1x1x28x3xbf16>
      %71 = vector.shape_cast %70 : vector<1x1x28x3xbf16> to vector<28x3xbf16>
      %c1_i32_50 = arith.constant 1 : i32
      %72 = arith.addi %35, %c1_i32_50 : i32
      %c0_51 = arith.constant 0 : index
      %73 = arith.index_cast %72 : i32 to index
      %c4_52 = arith.constant 4 : index
      %c0_53 = arith.constant 0 : index
      %74 = vector.load %arg1[%c0_51, %73, %c4_52, %c0_53] : memref<1x32x32x3xbf16, #tpu.memory_space<vmem>>, vector<1x1x28x3xbf16>
      %75 = vector.shape_cast %74 : vector<1x1x28x3xbf16> to vector<28x3xbf16>
      %c2_i32_54 = arith.constant 2 : i32
      %76 = arith.addi %35, %c2_i32_54 : i32
      %c0_55 = arith.constant 0 : index
      %77 = arith.index_cast %76 : i32 to index
      %c0_56 = arith.constant 0 : index
      %c0_57 = arith.constant 0 : index
      %78 = vector.load %arg1[%c0_55, %77, %c0_56, %c0_57] : memref<1x32x32x3xbf16, #tpu.memory_space<vmem>>, vector<1x1x28x3xbf16>
      %79 = vector.shape_cast %78 : vector<1x1x28x3xbf16> to vector<28x3xbf16>
      %c2_i32_58 = arith.constant 2 : i32
      %80 = arith.addi %35, %c2_i32_58 : i32
      %c0_59 = arith.constant 0 : index
      %81 = arith.index_cast %80 : i32 to index
      %c1_60 = arith.constant 1 : index
      %c0_61 = arith.constant 0 : index
      %82 = vector.load %arg1[%c0_59, %81, %c1_60, %c0_61] : memref<1x32x32x3xbf16, #tpu.memory_space<vmem>>, vector<1x1x28x3xbf16>
      %83 = vector.shape_cast %82 : vector<1x1x28x3xbf16> to vector<28x3xbf16>
      %c2_i32_62 = arith.constant 2 : i32
      %84 = arith.addi %35, %c2_i32_62 : i32
      %c0_63 = arith.constant 0 : index
      %85 = arith.index_cast %84 : i32 to index
      %c2_64 = arith.constant 2 : index
      %c0_65 = arith.constant 0 : index
      %86 = vector.load %arg1[%c0_63, %85, %c2_64, %c0_65] : memref<1x32x32x3xbf16, #tpu.memory_space<vmem>>, vector<1x1x28x3xbf16>
      %87 = vector.shape_cast %86 : vector<1x1x28x3xbf16> to vector<28x3xbf16>
      %c2_i32_66 = arith.constant 2 : i32
      %88 = arith.addi %35, %c2_i32_66 : i32
      %c0_67 = arith.constant 0 : index
      %89 = arith.index_cast %88 : i32 to index
      %c3_68 = arith.constant 3 : index
      %c0_69 = arith.constant 0 : index
      %90 = vector.load %arg1[%c0_67, %89, %c3_68, %c0_69] : memref<1x32x32x3xbf16, #tpu.memory_space<vmem>>, vector<1x1x28x3xbf16>
      %91 = vector.shape_cast %90 : vector<1x1x28x3xbf16> to vector<28x3xbf16>
      %c2_i32_70 = arith.constant 2 : i32
      %92 = arith.addi %35, %c2_i32_70 : i32
      %c0_71 = arith.constant 0 : index
      %93 = arith.index_cast %92 : i32 to index
      %c4_72 = arith.constant 4 : index
      %c0_73 = arith.constant 0 : index
      %94 = vector.load %arg1[%c0_71, %93, %c4_72, %c0_73] : memref<1x32x32x3xbf16, #tpu.memory_space<vmem>>, vector<1x1x28x3xbf16>
      %95 = vector.shape_cast %94 : vector<1x1x28x3xbf16> to vector<28x3xbf16>
      %c3_i32 = arith.constant 3 : i32
      %96 = arith.addi %35, %c3_i32 : i32
      %c0_74 = arith.constant 0 : index
      %97 = arith.index_cast %96 : i32 to index
      %c0_75 = arith.constant 0 : index
      %c0_76 = arith.constant 0 : index
      %98 = vector.load %arg1[%c0_74, %97, %c0_75, %c0_76] : memref<1x32x32x3xbf16, #tpu.memory_space<vmem>>, vector<1x1x28x3xbf16>
      %99 = vector.shape_cast %98 : vector<1x1x28x3xbf16> to vector<28x3xbf16>
      %c3_i32_77 = arith.constant 3 : i32
      %100 = arith.addi %35, %c3_i32_77 : i32
      %c0_78 = arith.constant 0 : index
      %101 = arith.index_cast %100 : i32 to index
      %c1_79 = arith.constant 1 : index
      %c0_80 = arith.constant 0 : index
      %102 = vector.load %arg1[%c0_78, %101, %c1_79, %c0_80] : memref<1x32x32x3xbf16, #tpu.memory_space<vmem>>, vector<1x1x28x3xbf16>
      %103 = vector.shape_cast %102 : vector<1x1x28x3xbf16> to vector<28x3xbf16>
      %c3_i32_81 = arith.constant 3 : i32
      %104 = arith.addi %35, %c3_i32_81 : i32
      %c0_82 = arith.constant 0 : index
      %105 = arith.index_cast %104 : i32 to index
      %c2_83 = arith.constant 2 : index
      %c0_84 = arith.constant 0 : index
      %106 = vector.load %arg1[%c0_82, %105, %c2_83, %c0_84] : memref<1x32x32x3xbf16, #tpu.memory_space<vmem>>, vector<1x1x28x3xbf16>
      %107 = vector.shape_cast %106 : vector<1x1x28x3xbf16> to vector<28x3xbf16>
      %c3_i32_85 = arith.constant 3 : i32
      %108 = arith.addi %35, %c3_i32_85 : i32
      %c0_86 = arith.constant 0 : index
      %109 = arith.index_cast %108 : i32 to index
      %c3_87 = arith.constant 3 : index
      %c0_88 = arith.constant 0 : index
      %110 = vector.load %arg1[%c0_86, %109, %c3_87, %c0_88] : memref<1x32x32x3xbf16, #tpu.memory_space<vmem>>, vector<1x1x28x3xbf16>
      %111 = vector.shape_cast %110 : vector<1x1x28x3xbf16> to vector<28x3xbf16>
      %c3_i32_89 = arith.constant 3 : i32
      %112 = arith.addi %35, %c3_i32_89 : i32
      %c0_90 = arith.constant 0 : index
      %113 = arith.index_cast %112 : i32 to index
      %c4_91 = arith.constant 4 : index
      %c0_92 = arith.constant 0 : index
      %114 = vector.load %arg1[%c0_90, %113, %c4_91, %c0_92] : memref<1x32x32x3xbf16, #tpu.memory_space<vmem>>, vector<1x1x28x3xbf16>
      %115 = vector.shape_cast %114 : vector<1x1x28x3xbf16> to vector<28x3xbf16>
      %c4_i32 = arith.constant 4 : i32
      %116 = arith.addi %35, %c4_i32 : i32
      %c0_93 = arith.constant 0 : index
      %117 = arith.index_cast %116 : i32 to index
      %c0_94 = arith.constant 0 : index
      %c0_95 = arith.constant 0 : index
      %118 = vector.load %arg1[%c0_93, %117, %c0_94, %c0_95] : memref<1x32x32x3xbf16, #tpu.memory_space<vmem>>, vector<1x1x28x3xbf16>
      %119 = vector.shape_cast %118 : vector<1x1x28x3xbf16> to vector<28x3xbf16>
      %c4_i32_96 = arith.constant 4 : i32
      %120 = arith.addi %35, %c4_i32_96 : i32
      %c0_97 = arith.constant 0 : index
      %121 = arith.index_cast %120 : i32 to index
      %c1_98 = arith.constant 1 : index
      %c0_99 = arith.constant 0 : index
      %122 = vector.load %arg1[%c0_97, %121, %c1_98, %c0_99] : memref<1x32x32x3xbf16, #tpu.memory_space<vmem>>, vector<1x1x28x3xbf16>
      %123 = vector.shape_cast %122 : vector<1x1x28x3xbf16> to vector<28x3xbf16>
      %c4_i32_100 = arith.constant 4 : i32
      %124 = arith.addi %35, %c4_i32_100 : i32
      %c0_101 = arith.constant 0 : index
      %125 = arith.index_cast %124 : i32 to index
      %c2_102 = arith.constant 2 : index
      %c0_103 = arith.constant 0 : index
      %126 = vector.load %arg1[%c0_101, %125, %c2_102, %c0_103] : memref<1x32x32x3xbf16, #tpu.memory_space<vmem>>, vector<1x1x28x3xbf16>
      %127 = vector.shape_cast %126 : vector<1x1x28x3xbf16> to vector<28x3xbf16>
      %c4_i32_104 = arith.constant 4 : i32
      %128 = arith.addi %35, %c4_i32_104 : i32
      %c0_105 = arith.constant 0 : index
      %129 = arith.index_cast %128 : i32 to index
      %c3_106 = arith.constant 3 : index
      %c0_107 = arith.constant 0 : index
      %130 = vector.load %arg1[%c0_105, %129, %c3_106, %c0_107] : memref<1x32x32x3xbf16, #tpu.memory_space<vmem>>, vector<1x1x28x3xbf16>
      %131 = vector.shape_cast %130 : vector<1x1x28x3xbf16> to vector<28x3xbf16>
      %c4_i32_108 = arith.constant 4 : i32
      %132 = arith.addi %35, %c4_i32_108 : i32
      %c0_109 = arith.constant 0 : index
      %133 = arith.index_cast %132 : i32 to index
      %c4_110 = arith.constant 4 : index
      %c0_111 = arith.constant 0 : index
      %134 = vector.load %arg1[%c0_109, %133, %c4_110, %c0_111] : memref<1x32x32x3xbf16, #tpu.memory_space<vmem>>, vector<1x1x28x3xbf16>
      %135 = vector.shape_cast %134 : vector<1x1x28x3xbf16> to vector<28x3xbf16>
      %136 = tpu.concatenate %39, %43, %47, %51, %55, %59, %63, %67, %71, %75, %79, %83, %87, %91, %95, %99 in 1 : vector<28x3xbf16>, vector<28x3xbf16>, vector<28x3xbf16>, vector<28x3xbf16>, vector<28x3xbf16>, vector<28x3xbf16>, vector<28x3xbf16>, vector<28x3xbf16>, vector<28x3xbf16>, vector<28x3xbf16>, vector<28x3xbf16>, vector<28x3xbf16>, vector<28x3xbf16>, vector<28x3xbf16>, vector<28x3xbf16>, vector<28x3xbf16> -> vector<28x48xbf16>
      %137 = tpu.concatenate %103, %107, %111, %115, %119, %123, %127, %131, %135 in 1 : vector<28x3xbf16>, vector<28x3xbf16>, vector<28x3xbf16>, vector<28x3xbf16>, vector<28x3xbf16>, vector<28x3xbf16>, vector<28x3xbf16>, vector<28x3xbf16>, vector<28x3xbf16> -> vector<28x27xbf16>
      %138 = tpu.concatenate %136, %137 in 1 : vector<28x48xbf16>, vector<28x27xbf16> -> vector<28x75xbf16>
      %cst = arith.constant dense<0.000000e+00> : vector<28x8xf32>
      %139 = tpu.matmul %138, %0, %cst {dimension_numbers = #tpu.dot_dimension_numbers<[1], [0], [0], [1], [0, 0, 1, 1], [], []>} : vector<28x75xbf16>, vector<75x8xbf16>, vector<28x8xf32> -> vector<28x8xf32>
      %c2_i32_112 = arith.constant 2 : i32
      %140 = arith.muli %c2_i32_112, %arg8 : i32
      %c1_i32_113 = arith.constant 1 : i32
      %141 = arith.addi %140, %c1_i32_113 : i32
      %c0_i32_114 = arith.constant 0 : i32
      %142 = arith.addi %141, %c0_i32_114 : i32
      %c0_115 = arith.constant 0 : index
      %143 = arith.index_cast %142 : i32 to index
      %c0_116 = arith.constant 0 : index
      %c0_117 = arith.constant 0 : index
      %144 = vector.load %arg1[%c0_115, %143, %c0_116, %c0_117] : memref<1x32x32x3xbf16, #tpu.memory_space<vmem>>, vector<1x1x28x3xbf16>
      %145 = vector.shape_cast %144 : vector<1x1x28x3xbf16> to vector<28x3xbf16>
      %c0_i32_118 = arith.constant 0 : i32
      %146 = arith.addi %141, %c0_i32_118 : i32
      %c0_119 = arith.constant 0 : index
      %147 = arith.index_cast %146 : i32 to index
      %c1_120 = arith.constant 1 : index
      %c0_121 = arith.constant 0 : index
      %148 = vector.load %arg1[%c0_119, %147, %c1_120, %c0_121] : memref<1x32x32x3xbf16, #tpu.memory_space<vmem>>, vector<1x1x28x3xbf16>
      %149 = vector.shape_cast %148 : vector<1x1x28x3xbf16> to vector<28x3xbf16>
      %c0_i32_122 = arith.constant 0 : i32
      %150 = arith.addi %141, %c0_i32_122 : i32
      %c0_123 = arith.constant 0 : index
      %151 = arith.index_cast %150 : i32 to index
      %c2_124 = arith.constant 2 : index
      %c0_125 = arith.constant 0 : index
      %152 = vector.load %arg1[%c0_123, %151, %c2_124, %c0_125] : memref<1x32x32x3xbf16, #tpu.memory_space<vmem>>, vector<1x1x28x3xbf16>
      %153 = vector.shape_cast %152 : vector<1x1x28x3xbf16> to vector<28x3xbf16>
      %c0_i32_126 = arith.constant 0 : i32
      %154 = arith.addi %141, %c0_i32_126 : i32
      %c0_127 = arith.constant 0 : index
      %155 = arith.index_cast %154 : i32 to index
      %c3_128 = arith.constant 3 : index
      %c0_129 = arith.constant 0 : index
      %156 = vector.load %arg1[%c0_127, %155, %c3_128, %c0_129] : memref<1x32x32x3xbf16, #tpu.memory_space<vmem>>, vector<1x1x28x3xbf16>
      %157 = vector.shape_cast %156 : vector<1x1x28x3xbf16> to vector<28x3xbf16>
      %c0_i32_130 = arith.constant 0 : i32
      %158 = arith.addi %141, %c0_i32_130 : i32
      %c0_131 = arith.constant 0 : index
      %159 = arith.index_cast %158 : i32 to index
      %c4_132 = arith.constant 4 : index
      %c0_133 = arith.constant 0 : index
      %160 = vector.load %arg1[%c0_131, %159, %c4_132, %c0_133] : memref<1x32x32x3xbf16, #tpu.memory_space<vmem>>, vector<1x1x28x3xbf16>
      %161 = vector.shape_cast %160 : vector<1x1x28x3xbf16> to vector<28x3xbf16>
      %c1_i32_134 = arith.constant 1 : i32
      %162 = arith.addi %141, %c1_i32_134 : i32
      %c0_135 = arith.constant 0 : index
      %163 = arith.index_cast %162 : i32 to index
      %c0_136 = arith.constant 0 : index
      %c0_137 = arith.constant 0 : index
      %164 = vector.load %arg1[%c0_135, %163, %c0_136, %c0_137] : memref<1x32x32x3xbf16, #tpu.memory_space<vmem>>, vector<1x1x28x3xbf16>
      %165 = vector.shape_cast %164 : vector<1x1x28x3xbf16> to vector<28x3xbf16>
      %c1_i32_138 = arith.constant 1 : i32
      %166 = arith.addi %141, %c1_i32_138 : i32
      %c0_139 = arith.constant 0 : index
      %167 = arith.index_cast %166 : i32 to index
      %c1_140 = arith.constant 1 : index
      %c0_141 = arith.constant 0 : index
      %168 = vector.load %arg1[%c0_139, %167, %c1_140, %c0_141] : memref<1x32x32x3xbf16, #tpu.memory_space<vmem>>, vector<1x1x28x3xbf16>
      %169 = vector.shape_cast %168 : vector<1x1x28x3xbf16> to vector<28x3xbf16>
      %c1_i32_142 = arith.constant 1 : i32
      %170 = arith.addi %141, %c1_i32_142 : i32
      %c0_143 = arith.constant 0 : index
      %171 = arith.index_cast %170 : i32 to index
      %c2_144 = arith.constant 2 : index
      %c0_145 = arith.constant 0 : index
      %172 = vector.load %arg1[%c0_143, %171, %c2_144, %c0_145] : memref<1x32x32x3xbf16, #tpu.memory_space<vmem>>, vector<1x1x28x3xbf16>
      %173 = vector.shape_cast %172 : vector<1x1x28x3xbf16> to vector<28x3xbf16>
      %c1_i32_146 = arith.constant 1 : i32
      %174 = arith.addi %141, %c1_i32_146 : i32
      %c0_147 = arith.constant 0 : index
      %175 = arith.index_cast %174 : i32 to index
      %c3_148 = arith.constant 3 : index
      %c0_149 = arith.constant 0 : index
      %176 = vector.load %arg1[%c0_147, %175, %c3_148, %c0_149] : memref<1x32x32x3xbf16, #tpu.memory_space<vmem>>, vector<1x1x28x3xbf16>
      %177 = vector.shape_cast %176 : vector<1x1x28x3xbf16> to vector<28x3xbf16>
      %c1_i32_150 = arith.constant 1 : i32
      %178 = arith.addi %141, %c1_i32_150 : i32
      %c0_151 = arith.constant 0 : index
      %179 = arith.index_cast %178 : i32 to index
      %c4_152 = arith.constant 4 : index
      %c0_153 = arith.constant 0 : index
      %180 = vector.load %arg1[%c0_151, %179, %c4_152, %c0_153] : memref<1x32x32x3xbf16, #tpu.memory_space<vmem>>, vector<1x1x28x3xbf16>
      %181 = vector.shape_cast %180 : vector<1x1x28x3xbf16> to vector<28x3xbf16>
      %c2_i32_154 = arith.constant 2 : i32
      %182 = arith.addi %141, %c2_i32_154 : i32
      %c0_155 = arith.constant 0 : index
      %183 = arith.index_cast %182 : i32 to index
      %c0_156 = arith.constant 0 : index
      %c0_157 = arith.constant 0 : index
      %184 = vector.load %arg1[%c0_155, %183, %c0_156, %c0_157] : memref<1x32x32x3xbf16, #tpu.memory_space<vmem>>, vector<1x1x28x3xbf16>
      %185 = vector.shape_cast %184 : vector<1x1x28x3xbf16> to vector<28x3xbf16>
      %c2_i32_158 = arith.constant 2 : i32
      %186 = arith.addi %141, %c2_i32_158 : i32
      %c0_159 = arith.constant 0 : index
      %187 = arith.index_cast %186 : i32 to index
      %c1_160 = arith.constant 1 : index
      %c0_161 = arith.constant 0 : index
      %188 = vector.load %arg1[%c0_159, %187, %c1_160, %c0_161] : memref<1x32x32x3xbf16, #tpu.memory_space<vmem>>, vector<1x1x28x3xbf16>
      %189 = vector.shape_cast %188 : vector<1x1x28x3xbf16> to vector<28x3xbf16>
      %c2_i32_162 = arith.constant 2 : i32
      %190 = arith.addi %141, %c2_i32_162 : i32
      %c0_163 = arith.constant 0 : index
      %191 = arith.index_cast %190 : i32 to index
      %c2_164 = arith.constant 2 : index
      %c0_165 = arith.constant 0 : index
      %192 = vector.load %arg1[%c0_163, %191, %c2_164, %c0_165] : memref<1x32x32x3xbf16, #tpu.memory_space<vmem>>, vector<1x1x28x3xbf16>
      %193 = vector.shape_cast %192 : vector<1x1x28x3xbf16> to vector<28x3xbf16>
      %c2_i32_166 = arith.constant 2 : i32
      %194 = arith.addi %141, %c2_i32_166 : i32
      %c0_167 = arith.constant 0 : index
      %195 = arith.index_cast %194 : i32 to index
      %c3_168 = arith.constant 3 : index
      %c0_169 = arith.constant 0 : index
      %196 = vector.load %arg1[%c0_167, %195, %c3_168, %c0_169] : memref<1x32x32x3xbf16, #tpu.memory_space<vmem>>, vector<1x1x28x3xbf16>
      %197 = vector.shape_cast %196 : vector<1x1x28x3xbf16> to vector<28x3xbf16>
      %c2_i32_170 = arith.constant 2 : i32
      %198 = arith.addi %141, %c2_i32_170 : i32
      %c0_171 = arith.constant 0 : index
      %199 = arith.index_cast %198 : i32 to index
      %c4_172 = arith.constant 4 : index
      %c0_173 = arith.constant 0 : index
      %200 = vector.load %arg1[%c0_171, %199, %c4_172, %c0_173] : memref<1x32x32x3xbf16, #tpu.memory_space<vmem>>, vector<1x1x28x3xbf16>
      %201 = vector.shape_cast %200 : vector<1x1x28x3xbf16> to vector<28x3xbf16>
      %c3_i32_174 = arith.constant 3 : i32
      %202 = arith.addi %141, %c3_i32_174 : i32
      %c0_175 = arith.constant 0 : index
      %203 = arith.index_cast %202 : i32 to index
      %c0_176 = arith.constant 0 : index
      %c0_177 = arith.constant 0 : index
      %204 = vector.load %arg1[%c0_175, %203, %c0_176, %c0_177] : memref<1x32x32x3xbf16, #tpu.memory_space<vmem>>, vector<1x1x28x3xbf16>
      %205 = vector.shape_cast %204 : vector<1x1x28x3xbf16> to vector<28x3xbf16>
      %c3_i32_178 = arith.constant 3 : i32
      %206 = arith.addi %141, %c3_i32_178 : i32
      %c0_179 = arith.constant 0 : index
      %207 = arith.index_cast %206 : i32 to index
      %c1_180 = arith.constant 1 : index
      %c0_181 = arith.constant 0 : index
      %208 = vector.load %arg1[%c0_179, %207, %c1_180, %c0_181] : memref<1x32x32x3xbf16, #tpu.memory_space<vmem>>, vector<1x1x28x3xbf16>
      %209 = vector.shape_cast %208 : vector<1x1x28x3xbf16> to vector<28x3xbf16>
      %c3_i32_182 = arith.constant 3 : i32
      %210 = arith.addi %141, %c3_i32_182 : i32
      %c0_183 = arith.constant 0 : index
      %211 = arith.index_cast %210 : i32 to index
      %c2_184 = arith.constant 2 : index
      %c0_185 = arith.constant 0 : index
      %212 = vector.load %arg1[%c0_183, %211, %c2_184, %c0_185] : memref<1x32x32x3xbf16, #tpu.memory_space<vmem>>, vector<1x1x28x3xbf16>
      %213 = vector.shape_cast %212 : vector<1x1x28x3xbf16> to vector<28x3xbf16>
      %c3_i32_186 = arith.constant 3 : i32
      %214 = arith.addi %141, %c3_i32_186 : i32
      %c0_187 = arith.constant 0 : index
      %215 = arith.index_cast %214 : i32 to index
      %c3_188 = arith.constant 3 : index
      %c0_189 = arith.constant 0 : index
      %216 = vector.load %arg1[%c0_187, %215, %c3_188, %c0_189] : memref<1x32x32x3xbf16, #tpu.memory_space<vmem>>, vector<1x1x28x3xbf16>
      %217 = vector.shape_cast %216 : vector<1x1x28x3xbf16> to vector<28x3xbf16>
      %c3_i32_190 = arith.constant 3 : i32
      %218 = arith.addi %141, %c3_i32_190 : i32
      %c0_191 = arith.constant 0 : index
      %219 = arith.index_cast %218 : i32 to index
      %c4_192 = arith.constant 4 : index
      %c0_193 = arith.constant 0 : index
      %220 = vector.load %arg1[%c0_191, %219, %c4_192, %c0_193] : memref<1x32x32x3xbf16, #tpu.memory_space<vmem>>, vector<1x1x28x3xbf16>
      %221 = vector.shape_cast %220 : vector<1x1x28x3xbf16> to vector<28x3xbf16>
      %c4_i32_194 = arith.constant 4 : i32
      %222 = arith.addi %141, %c4_i32_194 : i32
      %c0_195 = arith.constant 0 : index
      %223 = arith.index_cast %222 : i32 to index
      %c0_196 = arith.constant 0 : index
      %c0_197 = arith.constant 0 : index
      %224 = vector.load %arg1[%c0_195, %223, %c0_196, %c0_197] : memref<1x32x32x3xbf16, #tpu.memory_space<vmem>>, vector<1x1x28x3xbf16>
      %225 = vector.shape_cast %224 : vector<1x1x28x3xbf16> to vector<28x3xbf16>
      %c4_i32_198 = arith.constant 4 : i32
      %226 = arith.addi %141, %c4_i32_198 : i32
      %c0_199 = arith.constant 0 : index
      %227 = arith.index_cast %226 : i32 to index
      %c1_200 = arith.constant 1 : index
      %c0_201 = arith.constant 0 : index
      %228 = vector.load %arg1[%c0_199, %227, %c1_200, %c0_201] : memref<1x32x32x3xbf16, #tpu.memory_space<vmem>>, vector<1x1x28x3xbf16>
      %229 = vector.shape_cast %228 : vector<1x1x28x3xbf16> to vector<28x3xbf16>
      %c4_i32_202 = arith.constant 4 : i32
      %230 = arith.addi %141, %c4_i32_202 : i32
      %c0_203 = arith.constant 0 : index
      %231 = arith.index_cast %230 : i32 to index
      %c2_204 = arith.constant 2 : index
      %c0_205 = arith.constant 0 : index
      %232 = vector.load %arg1[%c0_203, %231, %c2_204, %c0_205] : memref<1x32x32x3xbf16, #tpu.memory_space<vmem>>, vector<1x1x28x3xbf16>
      %233 = vector.shape_cast %232 : vector<1x1x28x3xbf16> to vector<28x3xbf16>
      %c4_i32_206 = arith.constant 4 : i32
      %234 = arith.addi %141, %c4_i32_206 : i32
      %c0_207 = arith.constant 0 : index
      %235 = arith.index_cast %234 : i32 to index
      %c3_208 = arith.constant 3 : index
      %c0_209 = arith.constant 0 : index
      %236 = vector.load %arg1[%c0_207, %235, %c3_208, %c0_209] : memref<1x32x32x3xbf16, #tpu.memory_space<vmem>>, vector<1x1x28x3xbf16>
      %237 = vector.shape_cast %236 : vector<1x1x28x3xbf16> to vector<28x3xbf16>
      %c4_i32_210 = arith.constant 4 : i32
      %238 = arith.addi %141, %c4_i32_210 : i32
      %c0_211 = arith.constant 0 : index
      %239 = arith.index_cast %238 : i32 to index
      %c4_212 = arith.constant 4 : index
      %c0_213 = arith.constant 0 : index
      %240 = vector.load %arg1[%c0_211, %239, %c4_212, %c0_213] : memref<1x32x32x3xbf16, #tpu.memory_space<vmem>>, vector<1x1x28x3xbf16>
      %241 = vector.shape_cast %240 : vector<1x1x28x3xbf16> to vector<28x3xbf16>
      %242 = tpu.concatenate %145, %149, %153, %157, %161, %165, %169, %173, %177, %181, %185, %189, %193, %197, %201, %205 in 1 : vector<28x3xbf16>, vector<28x3xbf16>, vector<28x3xbf16>, vector<28x3xbf16>, vector<28x3xbf16>, vector<28x3xbf16>, vector<28x3xbf16>, vector<28x3xbf16>, vector<28x3xbf16>, vector<28x3xbf16>, vector<28x3xbf16>, vector<28x3xbf16>, vector<28x3xbf16>, vector<28x3xbf16>, vector<28x3xbf16>, vector<28x3xbf16> -> vector<28x48xbf16>
      %243 = tpu.concatenate %209, %213, %217, %221, %225, %229, %233, %237, %241 in 1 : vector<28x3xbf16>, vector<28x3xbf16>, vector<28x3xbf16>, vector<28x3xbf16>, vector<28x3xbf16>, vector<28x3xbf16>, vector<28x3xbf16>, vector<28x3xbf16>, vector<28x3xbf16> -> vector<28x27xbf16>
      %244 = tpu.concatenate %242, %243 in 1 : vector<28x48xbf16>, vector<28x27xbf16> -> vector<28x75xbf16>
      %cst_214 = arith.constant dense<0.000000e+00> : vector<28x8xf32>
      %245 = tpu.matmul %244, %0, %cst_214 {dimension_numbers = #tpu.dot_dimension_numbers<[1], [0], [0], [1], [0, 0, 1, 1], [], []>} : vector<28x75xbf16>, vector<75x8xbf16>, vector<28x8xf32> -> vector<28x8xf32>
      %246 = arith.maximumf %139, %245 : vector<28x8xf32>
      %cst_215 = arith.constant dense<0.000000e+00> : vector<14x8xf32>
      %247 = tpu.matmul %8, %246, %cst_215 {dimension_numbers = #tpu.dot_dimension_numbers<[1], [0], [0], [1], [0, 0, 1, 1], [], []>} : vector<14x28xf32>, vector<28x8xf32>, vector<14x8xf32> -> vector<14x8xf32>
      %cst_216 = arith.constant dense<0.000000e+00> : vector<14x8xf32>
      %248 = tpu.matmul %15, %246, %cst_216 {dimension_numbers = #tpu.dot_dimension_numbers<[1], [0], [0], [1], [0, 0, 1, 1], [], []>} : vector<14x28xf32>, vector<28x8xf32>, vector<14x8xf32> -> vector<14x8xf32>
      %249 = arith.maximumf %247, %248 : vector<14x8xf32>
      %250 = vector.broadcast %1 : vector<1x8xf32> to vector<14x8xf32>
      %251 = arith.addf %249, %250 : vector<14x8xf32>
      %252 = math.tanh %251 : vector<14x8xf32>
      %253 = arith.truncf %252 : vector<14x8xf32> to vector<14x8xbf16>
      %254 = arith.index_cast %arg8 : i32 to index
      %c0_217 = arith.constant 0 : index
      %c0_218 = arith.constant 0 : index
      %255 = vector.load %arg7[%254, %c0_217, %c0_218] : memref<14x14x8xbf16, #tpu.memory_space<vmem>>, vector<1x14x8xbf16>
      %256 = vector.shape_cast %255 : vector<1x14x8xbf16> to vector<14x8xbf16>
      %257 = vector.shape_cast %253 : vector<14x8xbf16> to vector<1x14x8xbf16>
      tpu.vector_store %arg7[%254, %c0_217, %c0_218], %257 {strides = array<i32>} : memref<14x14x8xbf16, #tpu.memory_space<vmem>>, vector<1x14x8xbf16>,
    }
    %c14_i32_5 = arith.constant 14 : i32
    %c0_6 = arith.constant 0 : index
    %c0_7 = arith.constant 0 : index
    %17 = vector.load %arg4[%c0_6, %c0_7] : memref<200x16xbf16, #tpu.memory_space<vmem>>, vector<200x16xbf16>
    %c0_8 = arith.constant 0 : index
    %c0_9 = arith.constant 0 : index
    %18 = vector.load %arg5[%c0_8, %c0_9] : memref<1x16xf32, #tpu.memory_space<vmem>>, vector<1x16xf32>
    %19 = tpu.iota {dimensions = array<i32: 0>} : vector<5x10xi32>
    %20 = tpu.iota {dimensions = array<i32: 1>} : vector<5x10xi32>
    %c2_i32_10 = arith.constant 2 : i32
    %21 = vector.broadcast %c2_i32_10 : i32 to vector<5x10xi32>
    %22 = arith.muli %21, %19 : vector<5x10xi32>
    %23 = arith.cmpi eq, %20, %22 : vector<5x10xi32>
    %24 = arith.extui %23 : vector<5x10xi1> to vector<5x10xi32>
    %25 = arith.sitofp %24 : vector<5x10xi32> to vector<5x10xf32>
    %c2_i32_11 = arith.constant 2 : i32
    %26 = vector.broadcast %c2_i32_11 : i32 to vector<5x10xi32>
    %27 = arith.muli %26, %19 : vector<5x10xi32>
    %c1_i32_12 = arith.constant 1 : i32
    %28 = vector.broadcast %c1_i32_12 : i32 to vector<5x10xi32>
    %29 = arith.addi %27, %28 : vector<5x10xi32>
    %30 = arith.cmpi eq, %20, %29 : vector<5x10xi32>
    %31 = arith.extui %30 : vector<5x10xi1> to vector<5x10xi32>
    %32 = arith.sitofp %31 : vector<5x10xi32> to vector<5x10xf32>
    %c0_i32_13 = arith.constant 0 : i32
    %c5_i32 = arith.constant 5 : i32
    %33 = arith.addi %c0_i32_13, %c5_i32 : i32
    %c1_i32_14 = arith.constant 1 : i32
    scf.for %arg8 = %c0_i32_13 to %33 step %c1_i32_14  : i32 {
      %c2_i32_16 = arith.constant 2 : i32
      %34 = arith.muli %c2_i32_16, %arg8 : i32
      %c0_i32_17 = arith.constant 0 : i32
      %35 = arith.addi %34, %c0_i32_17 : i32
      %c0_i32_18 = arith.constant 0 : i32
      %36 = arith.addi %35, %c0_i32_18 : i32
      %37 = arith.index_cast %36 : i32 to index
      %c0_19 = arith.constant 0 : index
      %c0_20 = arith.constant 0 : index
      %38 = vector.load %arg7[%37, %c0_19, %c0_20] : memref<14x14x8xbf16, #tpu.memory_space<vmem>>, vector<1x10x8xbf16>
      %39 = vector.shape_cast %38 : vector<1x10x8xbf16> to vector<10x8xbf16>
      %c0_i32_21 = arith.constant 0 : i32
      %40 = arith.addi %35, %c0_i32_21 : i32
      %41 = arith.index_cast %40 : i32 to index
      %c1 = arith.constant 1 : index
      %c0_22 = arith.constant 0 : index
      %42 = vector.load %arg7[%41, %c1, %c0_22] : memref<14x14x8xbf16, #tpu.memory_space<vmem>>, vector<1x10x8xbf16>
      %43 = vector.shape_cast %42 : vector<1x10x8xbf16> to vector<10x8xbf16>
      %c0_i32_23 = arith.constant 0 : i32
      %44 = arith.addi %35, %c0_i32_23 : i32
      %45 = arith.index_cast %44 : i32 to index
      %c2 = arith.constant 2 : index
      %c0_24 = arith.constant 0 : index
      %46 = vector.load %arg7[%45, %c2, %c0_24] : memref<14x14x8xbf16, #tpu.memory_space<vmem>>, vector<1x10x8xbf16>
      %47 = vector.shape_cast %46 : vector<1x10x8xbf16> to vector<10x8xbf16>
      %c0_i32_25 = arith.constant 0 : i32
      %48 = arith.addi %35, %c0_i32_25 : i32
      %49 = arith.index_cast %48 : i32 to index
      %c3 = arith.constant 3 : index
      %c0_26 = arith.constant 0 : index
      %50 = vector.load %arg7[%49, %c3, %c0_26] : memref<14x14x8xbf16, #tpu.memory_space<vmem>>, vector<1x10x8xbf16>
      %51 = vector.shape_cast %50 : vector<1x10x8xbf16> to vector<10x8xbf16>
      %c0_i32_27 = arith.constant 0 : i32
      %52 = arith.addi %35, %c0_i32_27 : i32
      %53 = arith.index_cast %52 : i32 to index
      %c4 = arith.constant 4 : index
      %c0_28 = arith.constant 0 : index
      %54 = vector.load %arg7[%53, %c4, %c0_28] : memref<14x14x8xbf16, #tpu.memory_space<vmem>>, vector<1x10x8xbf16>
      %55 = vector.shape_cast %54 : vector<1x10x8xbf16> to vector<10x8xbf16>
      %c1_i32_29 = arith.constant 1 : i32
      %56 = arith.addi %35, %c1_i32_29 : i32
      %57 = arith.index_cast %56 : i32 to index
      %c0_30 = arith.constant 0 : index
      %c0_31 = arith.constant 0 : index
      %58 = vector.load %arg7[%57, %c0_30, %c0_31] : memref<14x14x8xbf16, #tpu.memory_space<vmem>>, vector<1x10x8xbf16>
      %59 = vector.shape_cast %58 : vector<1x10x8xbf16> to vector<10x8xbf16>
      %c1_i32_32 = arith.constant 1 : i32
      %60 = arith.addi %35, %c1_i32_32 : i32
      %61 = arith.index_cast %60 : i32 to index
      %c1_33 = arith.constant 1 : index
      %c0_34 = arith.constant 0 : index
      %62 = vector.load %arg7[%61, %c1_33, %c0_34] : memref<14x14x8xbf16, #tpu.memory_space<vmem>>, vector<1x10x8xbf16>
      %63 = vector.shape_cast %62 : vector<1x10x8xbf16> to vector<10x8xbf16>
      %c1_i32_35 = arith.constant 1 : i32
      %64 = arith.addi %35, %c1_i32_35 : i32
      %65 = arith.index_cast %64 : i32 to index
      %c2_36 = arith.constant 2 : index
      %c0_37 = arith.constant 0 : index
      %66 = vector.load %arg7[%65, %c2_36, %c0_37] : memref<14x14x8xbf16, #tpu.memory_space<vmem>>, vector<1x10x8xbf16>
      %67 = vector.shape_cast %66 : vector<1x10x8xbf16> to vector<10x8xbf16>
      %c1_i32_38 = arith.constant 1 : i32
      %68 = arith.addi %35, %c1_i32_38 : i32
      %69 = arith.index_cast %68 : i32 to index
      %c3_39 = arith.constant 3 : index
      %c0_40 = arith.constant 0 : index
      %70 = vector.load %arg7[%69, %c3_39, %c0_40] : memref<14x14x8xbf16, #tpu.memory_space<vmem>>, vector<1x10x8xbf16>
      %71 = vector.shape_cast %70 : vector<1x10x8xbf16> to vector<10x8xbf16>
      %c1_i32_41 = arith.constant 1 : i32
      %72 = arith.addi %35, %c1_i32_41 : i32
      %73 = arith.index_cast %72 : i32 to index
      %c4_42 = arith.constant 4 : index
      %c0_43 = arith.constant 0 : index
      %74 = vector.load %arg7[%73, %c4_42, %c0_43] : memref<14x14x8xbf16, #tpu.memory_space<vmem>>, vector<1x10x8xbf16>
      %75 = vector.shape_cast %74 : vector<1x10x8xbf16> to vector<10x8xbf16>
      %c2_i32_44 = arith.constant 2 : i32
      %76 = arith.addi %35, %c2_i32_44 : i32
      %77 = arith.index_cast %76 : i32 to index
      %c0_45 = arith.constant 0 : index
      %c0_46 = arith.constant 0 : index
      %78 = vector.load %arg7[%77, %c0_45, %c0_46] : memref<14x14x8xbf16, #tpu.memory_space<vmem>>, vector<1x10x8xbf16>
      %79 = vector.shape_cast %78 : vector<1x10x8xbf16> to vector<10x8xbf16>
      %c2_i32_47 = arith.constant 2 : i32
      %80 = arith.addi %35, %c2_i32_47 : i32
      %81 = arith.index_cast %80 : i32 to index
      %c1_48 = arith.constant 1 : index
      %c0_49 = arith.constant 0 : index
      %82 = vector.load %arg7[%81, %c1_48, %c0_49] : memref<14x14x8xbf16, #tpu.memory_space<vmem>>, vector<1x10x8xbf16>
      %83 = vector.shape_cast %82 : vector<1x10x8xbf16> to vector<10x8xbf16>
      %c2_i32_50 = arith.constant 2 : i32
      %84 = arith.addi %35, %c2_i32_50 : i32
      %85 = arith.index_cast %84 : i32 to index
      %c2_51 = arith.constant 2 : index
      %c0_52 = arith.constant 0 : index
      %86 = vector.load %arg7[%85, %c2_51, %c0_52] : memref<14x14x8xbf16, #tpu.memory_space<vmem>>, vector<1x10x8xbf16>
      %87 = vector.shape_cast %86 : vector<1x10x8xbf16> to vector<10x8xbf16>
      %c2_i32_53 = arith.constant 2 : i32
      %88 = arith.addi %35, %c2_i32_53 : i32
      %89 = arith.index_cast %88 : i32 to index
      %c3_54 = arith.constant 3 : index
      %c0_55 = arith.constant 0 : index
      %90 = vector.load %arg7[%89, %c3_54, %c0_55] : memref<14x14x8xbf16, #tpu.memory_space<vmem>>, vector<1x10x8xbf16>
      %91 = vector.shape_cast %90 : vector<1x10x8xbf16> to vector<10x8xbf16>
      %c2_i32_56 = arith.constant 2 : i32
      %92 = arith.addi %35, %c2_i32_56 : i32
      %93 = arith.index_cast %92 : i32 to index
      %c4_57 = arith.constant 4 : index
      %c0_58 = arith.constant 0 : index
      %94 = vector.load %arg7[%93, %c4_57, %c0_58] : memref<14x14x8xbf16, #tpu.memory_space<vmem>>, vector<1x10x8xbf16>
      %95 = vector.shape_cast %94 : vector<1x10x8xbf16> to vector<10x8xbf16>
      %c3_i32 = arith.constant 3 : i32
      %96 = arith.addi %35, %c3_i32 : i32
      %97 = arith.index_cast %96 : i32 to index
      %c0_59 = arith.constant 0 : index
      %c0_60 = arith.constant 0 : index
      %98 = vector.load %arg7[%97, %c0_59, %c0_60] : memref<14x14x8xbf16, #tpu.memory_space<vmem>>, vector<1x10x8xbf16>
      %99 = vector.shape_cast %98 : vector<1x10x8xbf16> to vector<10x8xbf16>
      %c3_i32_61 = arith.constant 3 : i32
      %100 = arith.addi %35, %c3_i32_61 : i32
      %101 = arith.index_cast %100 : i32 to index
      %c1_62 = arith.constant 1 : index
      %c0_63 = arith.constant 0 : index
      %102 = vector.load %arg7[%101, %c1_62, %c0_63] : memref<14x14x8xbf16, #tpu.memory_space<vmem>>, vector<1x10x8xbf16>
      %103 = vector.shape_cast %102 : vector<1x10x8xbf16> to vector<10x8xbf16>
      %c3_i32_64 = arith.constant 3 : i32
      %104 = arith.addi %35, %c3_i32_64 : i32
      %105 = arith.index_cast %104 : i32 to index
      %c2_65 = arith.constant 2 : index
      %c0_66 = arith.constant 0 : index
      %106 = vector.load %arg7[%105, %c2_65, %c0_66] : memref<14x14x8xbf16, #tpu.memory_space<vmem>>, vector<1x10x8xbf16>
      %107 = vector.shape_cast %106 : vector<1x10x8xbf16> to vector<10x8xbf16>
      %c3_i32_67 = arith.constant 3 : i32
      %108 = arith.addi %35, %c3_i32_67 : i32
      %109 = arith.index_cast %108 : i32 to index
      %c3_68 = arith.constant 3 : index
      %c0_69 = arith.constant 0 : index
      %110 = vector.load %arg7[%109, %c3_68, %c0_69] : memref<14x14x8xbf16, #tpu.memory_space<vmem>>, vector<1x10x8xbf16>
      %111 = vector.shape_cast %110 : vector<1x10x8xbf16> to vector<10x8xbf16>
      %c3_i32_70 = arith.constant 3 : i32
      %112 = arith.addi %35, %c3_i32_70 : i32
      %113 = arith.index_cast %112 : i32 to index
      %c4_71 = arith.constant 4 : index
      %c0_72 = arith.constant 0 : index
      %114 = vector.load %arg7[%113, %c4_71, %c0_72] : memref<14x14x8xbf16, #tpu.memory_space<vmem>>, vector<1x10x8xbf16>
      %115 = vector.shape_cast %114 : vector<1x10x8xbf16> to vector<10x8xbf16>
      %c4_i32 = arith.constant 4 : i32
      %116 = arith.addi %35, %c4_i32 : i32
      %117 = arith.index_cast %116 : i32 to index
      %c0_73 = arith.constant 0 : index
      %c0_74 = arith.constant 0 : index
      %118 = vector.load %arg7[%117, %c0_73, %c0_74] : memref<14x14x8xbf16, #tpu.memory_space<vmem>>, vector<1x10x8xbf16>
      %119 = vector.shape_cast %118 : vector<1x10x8xbf16> to vector<10x8xbf16>
      %c4_i32_75 = arith.constant 4 : i32
      %120 = arith.addi %35, %c4_i32_75 : i32
      %121 = arith.index_cast %120 : i32 to index
      %c1_76 = arith.constant 1 : index
      %c0_77 = arith.constant 0 : index
      %122 = vector.load %arg7[%121, %c1_76, %c0_77] : memref<14x14x8xbf16, #tpu.memory_space<vmem>>, vector<1x10x8xbf16>
      %123 = vector.shape_cast %122 : vector<1x10x8xbf16> to vector<10x8xbf16>
      %c4_i32_78 = arith.constant 4 : i32
      %124 = arith.addi %35, %c4_i32_78 : i32
      %125 = arith.index_cast %124 : i32 to index
      %c2_79 = arith.constant 2 : index
      %c0_80 = arith.constant 0 : index
      %126 = vector.load %arg7[%125, %c2_79, %c0_80] : memref<14x14x8xbf16, #tpu.memory_space<vmem>>, vector<1x10x8xbf16>
      %127 = vector.shape_cast %126 : vector<1x10x8xbf16> to vector<10x8xbf16>
      %c4_i32_81 = arith.constant 4 : i32
      %128 = arith.addi %35, %c4_i32_81 : i32
      %129 = arith.index_cast %128 : i32 to index
      %c3_82 = arith.constant 3 : index
      %c0_83 = arith.constant 0 : index
      %130 = vector.load %arg7[%129, %c3_82, %c0_83] : memref<14x14x8xbf16, #tpu.memory_space<vmem>>, vector<1x10x8xbf16>
      %131 = vector.shape_cast %130 : vector<1x10x8xbf16> to vector<10x8xbf16>
      %c4_i32_84 = arith.constant 4 : i32
      %132 = arith.addi %35, %c4_i32_84 : i32
      %133 = arith.index_cast %132 : i32 to index
      %c4_85 = arith.constant 4 : index
      %c0_86 = arith.constant 0 : index
      %134 = vector.load %arg7[%133, %c4_85, %c0_86] : memref<14x14x8xbf16, #tpu.memory_space<vmem>>, vector<1x10x8xbf16>
      %135 = vector.shape_cast %134 : vector<1x10x8xbf16> to vector<10x8xbf16>
      %136 = tpu.concatenate %39, %43, %47, %51, %55, %59, %63, %67, %71, %75, %79, %83, %87, %91, %95, %99 in 1 : vector<10x8xbf16>, vector<10x8xbf16>, vector<10x8xbf16>, vector<10x8xbf16>, vector<10x8xbf16>, vector<10x8xbf16>, vector<10x8xbf16>, vector<10x8xbf16>, vector<10x8xbf16>, vector<10x8xbf16>, vector<10x8xbf16>, vector<10x8xbf16>, vector<10x8xbf16>, vector<10x8xbf16>, vector<10x8xbf16>, vector<10x8xbf16> -> vector<10x128xbf16>
      %137 = tpu.concatenate %103, %107, %111, %115, %119, %123, %127, %131, %135 in 1 : vector<10x8xbf16>, vector<10x8xbf16>, vector<10x8xbf16>, vector<10x8xbf16>, vector<10x8xbf16>, vector<10x8xbf16>, vector<10x8xbf16>, vector<10x8xbf16>, vector<10x8xbf16> -> vector<10x72xbf16>
      %138 = tpu.concatenate %136, %137 in 1 : vector<10x128xbf16>, vector<10x72xbf16> -> vector<10x200xbf16>
      %cst = arith.constant dense<0.000000e+00> : vector<10x16xf32>
      %139 = tpu.matmul %138, %17, %cst {dimension_numbers = #tpu.dot_dimension_numbers<[1], [0], [0], [1], [0, 0, 1, 1], [], []>} : vector<10x200xbf16>, vector<200x16xbf16>, vector<10x16xf32> -> vector<10x16xf32>
      %c2_i32_87 = arith.constant 2 : i32
      %140 = arith.muli %c2_i32_87, %arg8 : i32
      %c1_i32_88 = arith.constant 1 : i32
      %141 = arith.addi %140, %c1_i32_88 : i32
      %c0_i32_89 = arith.constant 0 : i32
      %142 = arith.addi %141, %c0_i32_89 : i32
      %143 = arith.index_cast %142 : i32 to index
      %c0_90 = arith.constant 0 : index
      %c0_91 = arith.constant 0 : index
      %144 = vector.load %arg7[%143, %c0_90, %c0_91] : memref<14x14x8xbf16, #tpu.memory_space<vmem>>, vector<1x10x8xbf16>
      %145 = vector.shape_cast %144 : vector<1x10x8xbf16> to vector<10x8xbf16>
      %c0_i32_92 = arith.constant 0 : i32
      %146 = arith.addi %141, %c0_i32_92 : i32
      %147 = arith.index_cast %146 : i32 to index
      %c1_93 = arith.constant 1 : index
      %c0_94 = arith.constant 0 : index
      %148 = vector.load %arg7[%147, %c1_93, %c0_94] : memref<14x14x8xbf16, #tpu.memory_space<vmem>>, vector<1x10x8xbf16>
      %149 = vector.shape_cast %148 : vector<1x10x8xbf16> to vector<10x8xbf16>
      %c0_i32_95 = arith.constant 0 : i32
      %150 = arith.addi %141, %c0_i32_95 : i32
      %151 = arith.index_cast %150 : i32 to index
      %c2_96 = arith.constant 2 : index
      %c0_97 = arith.constant 0 : index
      %152 = vector.load %arg7[%151, %c2_96, %c0_97] : memref<14x14x8xbf16, #tpu.memory_space<vmem>>, vector<1x10x8xbf16>
      %153 = vector.shape_cast %152 : vector<1x10x8xbf16> to vector<10x8xbf16>
      %c0_i32_98 = arith.constant 0 : i32
      %154 = arith.addi %141, %c0_i32_98 : i32
      %155 = arith.index_cast %154 : i32 to index
      %c3_99 = arith.constant 3 : index
      %c0_100 = arith.constant 0 : index
      %156 = vector.load %arg7[%155, %c3_99, %c0_100] : memref<14x14x8xbf16, #tpu.memory_space<vmem>>, vector<1x10x8xbf16>
      %157 = vector.shape_cast %156 : vector<1x10x8xbf16> to vector<10x8xbf16>
      %c0_i32_101 = arith.constant 0 : i32
      %158 = arith.addi %141, %c0_i32_101 : i32
      %159 = arith.index_cast %158 : i32 to index
      %c4_102 = arith.constant 4 : index
      %c0_103 = arith.constant 0 : index
      %160 = vector.load %arg7[%159, %c4_102, %c0_103] : memref<14x14x8xbf16, #tpu.memory_space<vmem>>, vector<1x10x8xbf16>
      %161 = vector.shape_cast %160 : vector<1x10x8xbf16> to vector<10x8xbf16>
      %c1_i32_104 = arith.constant 1 : i32
      %162 = arith.addi %141, %c1_i32_104 : i32
      %163 = arith.index_cast %162 : i32 to index
      %c0_105 = arith.constant 0 : index
      %c0_106 = arith.constant 0 : index
      %164 = vector.load %arg7[%163, %c0_105, %c0_106] : memref<14x14x8xbf16, #tpu.memory_space<vmem>>, vector<1x10x8xbf16>
      %165 = vector.shape_cast %164 : vector<1x10x8xbf16> to vector<10x8xbf16>
      %c1_i32_107 = arith.constant 1 : i32
      %166 = arith.addi %141, %c1_i32_107 : i32
      %167 = arith.index_cast %166 : i32 to index
      %c1_108 = arith.constant 1 : index
      %c0_109 = arith.constant 0 : index
      %168 = vector.load %arg7[%167, %c1_108, %c0_109] : memref<14x14x8xbf16, #tpu.memory_space<vmem>>, vector<1x10x8xbf16>
      %169 = vector.shape_cast %168 : vector<1x10x8xbf16> to vector<10x8xbf16>
      %c1_i32_110 = arith.constant 1 : i32
      %170 = arith.addi %141, %c1_i32_110 : i32
      %171 = arith.index_cast %170 : i32 to index
      %c2_111 = arith.constant 2 : index
      %c0_112 = arith.constant 0 : index
      %172 = vector.load %arg7[%171, %c2_111, %c0_112] : memref<14x14x8xbf16, #tpu.memory_space<vmem>>, vector<1x10x8xbf16>
      %173 = vector.shape_cast %172 : vector<1x10x8xbf16> to vector<10x8xbf16>
      %c1_i32_113 = arith.constant 1 : i32
      %174 = arith.addi %141, %c1_i32_113 : i32
      %175 = arith.index_cast %174 : i32 to index
      %c3_114 = arith.constant 3 : index
      %c0_115 = arith.constant 0 : index
      %176 = vector.load %arg7[%175, %c3_114, %c0_115] : memref<14x14x8xbf16, #tpu.memory_space<vmem>>, vector<1x10x8xbf16>
      %177 = vector.shape_cast %176 : vector<1x10x8xbf16> to vector<10x8xbf16>
      %c1_i32_116 = arith.constant 1 : i32
      %178 = arith.addi %141, %c1_i32_116 : i32
      %179 = arith.index_cast %178 : i32 to index
      %c4_117 = arith.constant 4 : index
      %c0_118 = arith.constant 0 : index
      %180 = vector.load %arg7[%179, %c4_117, %c0_118] : memref<14x14x8xbf16, #tpu.memory_space<vmem>>, vector<1x10x8xbf16>
      %181 = vector.shape_cast %180 : vector<1x10x8xbf16> to vector<10x8xbf16>
      %c2_i32_119 = arith.constant 2 : i32
      %182 = arith.addi %141, %c2_i32_119 : i32
      %183 = arith.index_cast %182 : i32 to index
      %c0_120 = arith.constant 0 : index
      %c0_121 = arith.constant 0 : index
      %184 = vector.load %arg7[%183, %c0_120, %c0_121] : memref<14x14x8xbf16, #tpu.memory_space<vmem>>, vector<1x10x8xbf16>
      %185 = vector.shape_cast %184 : vector<1x10x8xbf16> to vector<10x8xbf16>
      %c2_i32_122 = arith.constant 2 : i32
      %186 = arith.addi %141, %c2_i32_122 : i32
      %187 = arith.index_cast %186 : i32 to index
      %c1_123 = arith.constant 1 : index
      %c0_124 = arith.constant 0 : index
      %188 = vector.load %arg7[%187, %c1_123, %c0_124] : memref<14x14x8xbf16, #tpu.memory_space<vmem>>, vector<1x10x8xbf16>
      %189 = vector.shape_cast %188 : vector<1x10x8xbf16> to vector<10x8xbf16>
      %c2_i32_125 = arith.constant 2 : i32
      %190 = arith.addi %141, %c2_i32_125 : i32
      %191 = arith.index_cast %190 : i32 to index
      %c2_126 = arith.constant 2 : index
      %c0_127 = arith.constant 0 : index
      %192 = vector.load %arg7[%191, %c2_126, %c0_127] : memref<14x14x8xbf16, #tpu.memory_space<vmem>>, vector<1x10x8xbf16>
      %193 = vector.shape_cast %192 : vector<1x10x8xbf16> to vector<10x8xbf16>
      %c2_i32_128 = arith.constant 2 : i32
      %194 = arith.addi %141, %c2_i32_128 : i32
      %195 = arith.index_cast %194 : i32 to index
      %c3_129 = arith.constant 3 : index
      %c0_130 = arith.constant 0 : index
      %196 = vector.load %arg7[%195, %c3_129, %c0_130] : memref<14x14x8xbf16, #tpu.memory_space<vmem>>, vector<1x10x8xbf16>
      %197 = vector.shape_cast %196 : vector<1x10x8xbf16> to vector<10x8xbf16>
      %c2_i32_131 = arith.constant 2 : i32
      %198 = arith.addi %141, %c2_i32_131 : i32
      %199 = arith.index_cast %198 : i32 to index
      %c4_132 = arith.constant 4 : index
      %c0_133 = arith.constant 0 : index
      %200 = vector.load %arg7[%199, %c4_132, %c0_133] : memref<14x14x8xbf16, #tpu.memory_space<vmem>>, vector<1x10x8xbf16>
      %201 = vector.shape_cast %200 : vector<1x10x8xbf16> to vector<10x8xbf16>
      %c3_i32_134 = arith.constant 3 : i32
      %202 = arith.addi %141, %c3_i32_134 : i32
      %203 = arith.index_cast %202 : i32 to index
      %c0_135 = arith.constant 0 : index
      %c0_136 = arith.constant 0 : index
      %204 = vector.load %arg7[%203, %c0_135, %c0_136] : memref<14x14x8xbf16, #tpu.memory_space<vmem>>, vector<1x10x8xbf16>
      %205 = vector.shape_cast %204 : vector<1x10x8xbf16> to vector<10x8xbf16>
      %c3_i32_137 = arith.constant 3 : i32
      %206 = arith.addi %141, %c3_i32_137 : i32
      %207 = arith.index_cast %206 : i32 to index
      %c1_138 = arith.constant 1 : index
      %c0_139 = arith.constant 0 : index
      %208 = vector.load %arg7[%207, %c1_138, %c0_139] : memref<14x14x8xbf16, #tpu.memory_space<vmem>>, vector<1x10x8xbf16>
      %209 = vector.shape_cast %208 : vector<1x10x8xbf16> to vector<10x8xbf16>
      %c3_i32_140 = arith.constant 3 : i32
      %210 = arith.addi %141, %c3_i32_140 : i32
      %211 = arith.index_cast %210 : i32 to index
      %c2_141 = arith.constant 2 : index
      %c0_142 = arith.constant 0 : index
      %212 = vector.load %arg7[%211, %c2_141, %c0_142] : memref<14x14x8xbf16, #tpu.memory_space<vmem>>, vector<1x10x8xbf16>
      %213 = vector.shape_cast %212 : vector<1x10x8xbf16> to vector<10x8xbf16>
      %c3_i32_143 = arith.constant 3 : i32
      %214 = arith.addi %141, %c3_i32_143 : i32
      %215 = arith.index_cast %214 : i32 to index
      %c3_144 = arith.constant 3 : index
      %c0_145 = arith.constant 0 : index
      %216 = vector.load %arg7[%215, %c3_144, %c0_145] : memref<14x14x8xbf16, #tpu.memory_space<vmem>>, vector<1x10x8xbf16>
      %217 = vector.shape_cast %216 : vector<1x10x8xbf16> to vector<10x8xbf16>
      %c3_i32_146 = arith.constant 3 : i32
      %218 = arith.addi %141, %c3_i32_146 : i32
      %219 = arith.index_cast %218 : i32 to index
      %c4_147 = arith.constant 4 : index
      %c0_148 = arith.constant 0 : index
      %220 = vector.load %arg7[%219, %c4_147, %c0_148] : memref<14x14x8xbf16, #tpu.memory_space<vmem>>, vector<1x10x8xbf16>
      %221 = vector.shape_cast %220 : vector<1x10x8xbf16> to vector<10x8xbf16>
      %c4_i32_149 = arith.constant 4 : i32
      %222 = arith.addi %141, %c4_i32_149 : i32
      %223 = arith.index_cast %222 : i32 to index
      %c0_150 = arith.constant 0 : index
      %c0_151 = arith.constant 0 : index
      %224 = vector.load %arg7[%223, %c0_150, %c0_151] : memref<14x14x8xbf16, #tpu.memory_space<vmem>>, vector<1x10x8xbf16>
      %225 = vector.shape_cast %224 : vector<1x10x8xbf16> to vector<10x8xbf16>
      %c4_i32_152 = arith.constant 4 : i32
      %226 = arith.addi %141, %c4_i32_152 : i32
      %227 = arith.index_cast %226 : i32 to index
      %c1_153 = arith.constant 1 : index
      %c0_154 = arith.constant 0 : index
      %228 = vector.load %arg7[%227, %c1_153, %c0_154] : memref<14x14x8xbf16, #tpu.memory_space<vmem>>, vector<1x10x8xbf16>
      %229 = vector.shape_cast %228 : vector<1x10x8xbf16> to vector<10x8xbf16>
      %c4_i32_155 = arith.constant 4 : i32
      %230 = arith.addi %141, %c4_i32_155 : i32
      %231 = arith.index_cast %230 : i32 to index
      %c2_156 = arith.constant 2 : index
      %c0_157 = arith.constant 0 : index
      %232 = vector.load %arg7[%231, %c2_156, %c0_157] : memref<14x14x8xbf16, #tpu.memory_space<vmem>>, vector<1x10x8xbf16>
      %233 = vector.shape_cast %232 : vector<1x10x8xbf16> to vector<10x8xbf16>
      %c4_i32_158 = arith.constant 4 : i32
      %234 = arith.addi %141, %c4_i32_158 : i32
      %235 = arith.index_cast %234 : i32 to index
      %c3_159 = arith.constant 3 : index
      %c0_160 = arith.constant 0 : index
      %236 = vector.load %arg7[%235, %c3_159, %c0_160] : memref<14x14x8xbf16, #tpu.memory_space<vmem>>, vector<1x10x8xbf16>
      %237 = vector.shape_cast %236 : vector<1x10x8xbf16> to vector<10x8xbf16>
      %c4_i32_161 = arith.constant 4 : i32
      %238 = arith.addi %141, %c4_i32_161 : i32
      %239 = arith.index_cast %238 : i32 to index
      %c4_162 = arith.constant 4 : index
      %c0_163 = arith.constant 0 : index
      %240 = vector.load %arg7[%239, %c4_162, %c0_163] : memref<14x14x8xbf16, #tpu.memory_space<vmem>>, vector<1x10x8xbf16>
      %241 = vector.shape_cast %240 : vector<1x10x8xbf16> to vector<10x8xbf16>
      %242 = tpu.concatenate %145, %149, %153, %157, %161, %165, %169, %173, %177, %181, %185, %189, %193, %197, %201, %205 in 1 : vector<10x8xbf16>, vector<10x8xbf16>, vector<10x8xbf16>, vector<10x8xbf16>, vector<10x8xbf16>, vector<10x8xbf16>, vector<10x8xbf16>, vector<10x8xbf16>, vector<10x8xbf16>, vector<10x8xbf16>, vector<10x8xbf16>, vector<10x8xbf16>, vector<10x8xbf16>, vector<10x8xbf16>, vector<10x8xbf16>, vector<10x8xbf16> -> vector<10x128xbf16>
      %243 = tpu.concatenate %209, %213, %217, %221, %225, %229, %233, %237, %241 in 1 : vector<10x8xbf16>, vector<10x8xbf16>, vector<10x8xbf16>, vector<10x8xbf16>, vector<10x8xbf16>, vector<10x8xbf16>, vector<10x8xbf16>, vector<10x8xbf16>, vector<10x8xbf16> -> vector<10x72xbf16>
      %244 = tpu.concatenate %242, %243 in 1 : vector<10x128xbf16>, vector<10x72xbf16> -> vector<10x200xbf16>
      %cst_164 = arith.constant dense<0.000000e+00> : vector<10x16xf32>
      %245 = tpu.matmul %244, %17, %cst_164 {dimension_numbers = #tpu.dot_dimension_numbers<[1], [0], [0], [1], [0, 0, 1, 1], [], []>} : vector<10x200xbf16>, vector<200x16xbf16>, vector<10x16xf32> -> vector<10x16xf32>
      %246 = arith.maximumf %139, %245 : vector<10x16xf32>
      %cst_165 = arith.constant dense<0.000000e+00> : vector<5x16xf32>
      %247 = tpu.matmul %25, %246, %cst_165 {dimension_numbers = #tpu.dot_dimension_numbers<[1], [0], [0], [1], [0, 0, 1, 1], [], []>} : vector<5x10xf32>, vector<10x16xf32>, vector<5x16xf32> -> vector<5x16xf32>
      %cst_166 = arith.constant dense<0.000000e+00> : vector<5x16xf32>
      %248 = tpu.matmul %32, %246, %cst_166 {dimension_numbers = #tpu.dot_dimension_numbers<[1], [0], [0], [1], [0, 0, 1, 1], [], []>} : vector<5x10xf32>, vector<10x16xf32>, vector<5x16xf32> -> vector<5x16xf32>
      %249 = arith.maximumf %247, %248 : vector<5x16xf32>
      %250 = vector.broadcast %18 : vector<1x16xf32> to vector<5x16xf32>
      %251 = arith.addf %249, %250 : vector<5x16xf32>
      %252 = math.tanh %251 : vector<5x16xf32>
      %253 = arith.truncf %252 : vector<5x16xf32> to vector<5x16xbf16>
      %c0_167 = arith.constant 0 : index
      %254 = arith.index_cast %arg8 : i32 to index
      %c0_168 = arith.constant 0 : index
      %c0_169 = arith.constant 0 : index
      %255 = vector.load %arg6[%c0_167, %254, %c0_168, %c0_169] : memref<1x5x5x16xbf16, #tpu.memory_space<vmem>>, vector<1x1x5x16xbf16>
      %256 = vector.shape_cast %255 : vector<1x1x5x16xbf16> to vector<5x16xbf16>
      %257 = vector.shape_cast %253 : vector<5x16xbf16> to vector<1x1x5x16xbf16>
      tpu.vector_store %arg6[%c0_167, %254, %c0_168, %c0_169], %257 {strides = array<i32>} : memref<1x5x5x16xbf16, #tpu.memory_space<vmem>>, vector<1x1x5x16xbf16>,
    }
    %c5_i32_15 = arith.constant 5 : i32
    return
  }
  func.func @transform_0(%arg0: i32) -> (i32, i32, i32, i32) {
    %c0_i32 = arith.constant 0 : i32
    %c0_i32_0 = arith.constant 0 : i32
    %c0_i32_1 = arith.constant 0 : i32
    %c0_i32_2 = arith.constant 0 : i32
    return %arg0, %c0_i32, %c0_i32_0, %c0_i32_1 : i32, i32, i32, i32
  }
  func.func @transform_1(%arg0: i32) -> (i32, i32) {
    %c0_i32 = arith.constant 0 : i32
    %c0_i32_0 = arith.constant 0 : i32
    %c0_i32_1 = arith.constant 0 : i32
    return %c0_i32, %c0_i32_0 : i32, i32
  }
  func.func @transform_2(%arg0: i32) -> (i32, i32) {
    %c0_i32 = arith.constant 0 : i32
    %c0_i32_0 = arith.constant 0 : i32
    %c0_i32_1 = arith.constant 0 : i32
    return %c0_i32, %c0_i32_0 : i32, i32
  }
  func.func @transform_3(%arg0: i32) -> (i32, i32) {
    %c0_i32 = arith.constant 0 : i32
    %c0_i32_0 = arith.constant 0 : i32
    %c0_i32_1 = arith.constant 0 : i32
    return %c0_i32, %c0_i32_0 : i32, i32
  }
  func.func @transform_4(%arg0: i32) -> (i32, i32) {
    %c0_i32 = arith.constant 0 : i32
    %c0_i32_0 = arith.constant 0 : i32
    %c0_i32_1 = arith.constant 0 : i32
    return %c0_i32, %c0_i32_0 : i32, i32
  }
  func.func @transform_5(%arg0: i32) -> (i32, i32, i32, i32) {
    %c0_i32 = arith.constant 0 : i32
    %c0_i32_0 = arith.constant 0 : i32
    %c0_i32_1 = arith.constant 0 : i32
    %c0_i32_2 = arith.constant 0 : i32
    return %arg0, %c0_i32, %c0_i32_0, %c0_i32_1 : i32, i32, i32, i32
  }
}

module attributes {stable_mosaic.version = 11 : i64} {
  func.func @_fc_stack_kernel(%arg0: i32, %arg1: memref<8x400xbf16, #tpu.memory_space<vmem>>, %arg2: memref<400x128xbf16, #tpu.memory_space<vmem>>, %arg3: memref<1x128xf32, #tpu.memory_space<vmem>>, %arg4: memref<128x128xbf16, #tpu.memory_space<vmem>>, %arg5: memref<1x128xf32, #tpu.memory_space<vmem>>, %arg6: memref<128x128xbf16, #tpu.memory_space<vmem>>, %arg7: memref<1x128xf32, #tpu.memory_space<vmem>>, %arg8: memref<8x128xf32, #tpu.memory_space<vmem>>) attributes {dimension_semantics = [#tpu.dimension_semantics<parallel>], iteration_bounds = array<i64: 1>, scalar_prefetch = 0 : i64, scratch_operands = 0 : i64, tpu.core_type = #tpu.core_type<tc>, window_params = [{transform_indices = @transform_0, window_bounds = array<i64: 8, 400>}, {pipeline_mode = #tpu.pipeline_mode<synchronous>, transform_indices = @transform_1, window_bounds = array<i64: 400, 128>}, {pipeline_mode = #tpu.pipeline_mode<synchronous>, transform_indices = @transform_2, window_bounds = array<i64: 1, 128>}, {pipeline_mode = #tpu.pipeline_mode<synchronous>, transform_indices = @transform_3, window_bounds = array<i64: 128, 128>}, {pipeline_mode = #tpu.pipeline_mode<synchronous>, transform_indices = @transform_4, window_bounds = array<i64: 1, 128>}, {pipeline_mode = #tpu.pipeline_mode<synchronous>, transform_indices = @transform_5, window_bounds = array<i64: 128, 128>}, {pipeline_mode = #tpu.pipeline_mode<synchronous>, transform_indices = @transform_6, window_bounds = array<i64: 1, 128>}, {transform_indices = @transform_7, window_bounds = array<i64: 8, 128>}]} {
    %c0 = arith.constant 0 : index
    %c0_0 = arith.constant 0 : index
    %0 = vector.load %arg1[%c0, %c0_0] : memref<8x400xbf16, #tpu.memory_space<vmem>>, vector<8x400xbf16>
    %c0_1 = arith.constant 0 : index
    %c0_2 = arith.constant 0 : index
    %1 = vector.load %arg2[%c0_1, %c0_2] : memref<400x128xbf16, #tpu.memory_space<vmem>>, vector<400x128xbf16>
    %cst = arith.constant dense<0.000000e+00> : vector<8x128xf32>
    %2 = tpu.matmul %0, %1, %cst {dimension_numbers = #tpu.dot_dimension_numbers<[1], [0], [0], [1], [0, 0, 1, 1], [], []>} : vector<8x400xbf16>, vector<400x128xbf16>, vector<8x128xf32> -> vector<8x128xf32>
    %c0_3 = arith.constant 0 : index
    %c0_4 = arith.constant 0 : index
    %3 = vector.load %arg3[%c0_3, %c0_4] : memref<1x128xf32, #tpu.memory_space<vmem>>, vector<1x128xf32>
    %4 = vector.broadcast %3 : vector<1x128xf32> to vector<8x128xf32>
    %5 = arith.addf %2, %4 : vector<8x128xf32>
    %6 = math.tanh %5 : vector<8x128xf32>
    %7 = arith.truncf %6 : vector<8x128xf32> to vector<8x128xbf16>
    %c0_5 = arith.constant 0 : index
    %c0_6 = arith.constant 0 : index
    %8 = vector.load %arg4[%c0_5, %c0_6] : memref<128x128xbf16, #tpu.memory_space<vmem>>, vector<128x128xbf16>
    %cst_7 = arith.constant dense<0.000000e+00> : vector<8x128xf32>
    %9 = tpu.matmul %7, %8, %cst_7 {dimension_numbers = #tpu.dot_dimension_numbers<[1], [0], [0], [1], [0, 0, 1, 1], [], []>} : vector<8x128xbf16>, vector<128x128xbf16>, vector<8x128xf32> -> vector<8x128xf32>
    %c0_8 = arith.constant 0 : index
    %c0_9 = arith.constant 0 : index
    %10 = vector.load %arg5[%c0_8, %c0_9] : memref<1x128xf32, #tpu.memory_space<vmem>>, vector<1x128xf32>
    %11 = vector.broadcast %10 : vector<1x128xf32> to vector<8x128xf32>
    %12 = arith.addf %9, %11 : vector<8x128xf32>
    %13 = math.tanh %12 : vector<8x128xf32>
    %14 = arith.truncf %13 : vector<8x128xf32> to vector<8x128xbf16>
    %c0_10 = arith.constant 0 : index
    %c0_11 = arith.constant 0 : index
    %15 = vector.load %arg6[%c0_10, %c0_11] : memref<128x128xbf16, #tpu.memory_space<vmem>>, vector<128x128xbf16>
    %cst_12 = arith.constant dense<0.000000e+00> : vector<8x128xf32>
    %16 = tpu.matmul %14, %15, %cst_12 {dimension_numbers = #tpu.dot_dimension_numbers<[1], [0], [0], [1], [0, 0, 1, 1], [], []>} : vector<8x128xbf16>, vector<128x128xbf16>, vector<8x128xf32> -> vector<8x128xf32>
    %c0_13 = arith.constant 0 : index
    %c0_14 = arith.constant 0 : index
    %17 = vector.load %arg7[%c0_13, %c0_14] : memref<1x128xf32, #tpu.memory_space<vmem>>, vector<1x128xf32>
    %18 = vector.broadcast %17 : vector<1x128xf32> to vector<8x128xf32>
    %19 = arith.addf %16, %18 : vector<8x128xf32>
    %c0_15 = arith.constant 0 : index
    %c0_16 = arith.constant 0 : index
    %20 = vector.load %arg8[%c0_15, %c0_16] : memref<8x128xf32, #tpu.memory_space<vmem>>, vector<8x128xf32>
    tpu.vector_store %arg8[%c0_15, %c0_16], %19 {strides = array<i32>} : memref<8x128xf32, #tpu.memory_space<vmem>>, vector<8x128xf32>,
    return
  }
  func.func @transform_0(%arg0: i32) -> (i32, i32) {
    %c0_i32 = arith.constant 0 : i32
    %c0_i32_0 = arith.constant 0 : i32
    return %arg0, %c0_i32 : i32, i32
  }
  func.func @transform_1(%arg0: i32) -> (i32, i32) {
    %c0_i32 = arith.constant 0 : i32
    %c0_i32_0 = arith.constant 0 : i32
    %c0_i32_1 = arith.constant 0 : i32
    return %c0_i32, %c0_i32_0 : i32, i32
  }
  func.func @transform_2(%arg0: i32) -> (i32, i32) {
    %c0_i32 = arith.constant 0 : i32
    %c0_i32_0 = arith.constant 0 : i32
    %c0_i32_1 = arith.constant 0 : i32
    return %c0_i32, %c0_i32_0 : i32, i32
  }
  func.func @transform_3(%arg0: i32) -> (i32, i32) {
    %c0_i32 = arith.constant 0 : i32
    %c0_i32_0 = arith.constant 0 : i32
    %c0_i32_1 = arith.constant 0 : i32
    return %c0_i32, %c0_i32_0 : i32, i32
  }
  func.func @transform_4(%arg0: i32) -> (i32, i32) {
    %c0_i32 = arith.constant 0 : i32
    %c0_i32_0 = arith.constant 0 : i32
    %c0_i32_1 = arith.constant 0 : i32
    return %c0_i32, %c0_i32_0 : i32, i32
  }
  func.func @transform_5(%arg0: i32) -> (i32, i32) {
    %c0_i32 = arith.constant 0 : i32
    %c0_i32_0 = arith.constant 0 : i32
    %c0_i32_1 = arith.constant 0 : i32
    return %c0_i32, %c0_i32_0 : i32, i32
  }
  func.func @transform_6(%arg0: i32) -> (i32, i32) {
    %c0_i32 = arith.constant 0 : i32
    %c0_i32_0 = arith.constant 0 : i32
    %c0_i32_1 = arith.constant 0 : i32
    return %c0_i32, %c0_i32_0 : i32, i32
  }
  func.func @transform_7(%arg0: i32) -> (i32, i32) {
    %c0_i32 = arith.constant 0 : i32
    %c0_i32_0 = arith.constant 0 : i32
    return %arg0, %c0_i32 : i32, i32
  }
}

</mosaic_0001>

<bundles_post_ra>
// kernel: lenet_forward.3
= control target key start
LH: loop header
LB: loop body
LE: loop exit
PB: predicated region body
PF: predicated region fallthrough
CT: control target
= control target key end

     0   :  { %v745_v0 = vmov 0   ;;  %vm249_vm0 = vcmask 130048   ;;  %v746_v32 = vmov 0.0   ;;  %vm747_vm1 = vmmov 0   ;;  %s956_s1 = inlined_call_operand.vmem [shape: bf16[400,128], index: 1, kind: input, shape index: {}]   ;;  %s957_s0 = inlined_call_operand.vmem [shape: bf16[8,400], index: 0, kind: input, shape index: {}]   ;;  %s958_s3 = inlined_call_operand.vmem [shape: bf16[128,128], index: 3, kind: input, shape index: {}]   ;;  %s959_s5 = inlined_call_operand.vmem [shape: bf16[128,128], index: 5, kind: input, shape index: {}]   ;;  %s960_s2 = inlined_call_operand.vmem [shape: f32[1,128], index: 2, kind: input, shape index: {}]   ;;  %s961_s4 = inlined_call_operand.vmem [shape: f32[1,128], index: 4, kind: input, shape index: {}]   ;;  %s962_s6 = inlined_call_operand.vmem [shape: f32[1,128], index: 6, kind: input, shape index: {}]   ;;  %s963_s7 = inlined_call_operand.vmem [shape: f32[8,128], index: 7, kind: output, shape index: {}]  }
   0x1   :  { %293 = vmatprep.subr.bf16.mxu1 %v745_v0  ;;  %v696_v1 = vld [vmem:[%s956_s1 + $0x40] sm:$0xff]   ;;  %v699_v4 = vld [vmem:[%s956_s1 + $0x48] sm:$0xff]   ;;  %v702_v7 = vld [vmem:[%s956_s1 + $0x50] sm:$0xff]  }
   0x2   :  { %v697_v2 = vld [vmem:[%s956_s1 + $0x80] sm:$0xff]   ;;  %613 = vmatprep.subr.bf16.mxu0 %v696_v1  ;;  %v700_v5 = vld [vmem:[%s956_s1 + $0x88] sm:$0xff]   ;;  %v703_v8 = vld [vmem:[%s956_s1 + $0x90] sm:$0xff]  }
   0x3   :  { %v698_v3 = vld [vmem:[%s956_s1] sm:$0xff]   ;;  %294 = vmatpush1.bf16.msra.mxu1 %v697_v2  ;;  %v701_v6 = vld [vmem:[%s956_s1 + $0x8] sm:$0xff]   ;;  %v704_v9 = vld [vmem:[%s956_s1 + $0x10] sm:$0xff]  }
   0x4   :  { %614 = vmatpush3.bf16.msra.mxu0 %v698_v3  ;;  %295 = vmatprep.subr.bf16.mxu1 %v745_v0  ;;  %v705_v10 = vld [vmem:[%s956_s1 + $0x58] sm:$0xff]   ;;  %v708_v13 = vld [vmem:[%s956_s1 + $0x60] sm:$0xff]   ;;  %v711_v16 = vld [vmem:[%s956_s1 + $0x68] sm:$0xff]  }
   0x5   :  { %615 = vmatprep.subr.bf16.mxu0 %v699_v4  ;;  %v706_v11 = vld [vmem:[%s956_s1 + $0x98] sm:$0xff]   ;;  %v709_v14 = vld [vmem:[%s956_s1 + $0xa0] sm:$0xff]   ;;  %v712_v17 = vld [vmem:[%s956_s1 + $0xa8] sm:$0xff]  }
   0x6   :  { %v707_v12 = vld [vmem:[%s956_s1 + $0x18] sm:$0xff]   ;;  %v710_v15 = vld [vmem:[%s956_s1 + $0x20] sm:$0xff]   ;;  %v713_v18 = vld [vmem:[%s956_s1 + $0x28] sm:$0xff]  }
   0x7   :  { %296 = vmatpush1.bf16.msra.mxu1 %v700_v5  ;;  %v714_v19 = vld [vmem:[%s956_s1 + $0x70] sm:$0xff]   ;;  %v27_v22 = vld [vmem:[%s957_s0] sm:$0xff]  ;;  %v717_v23 = vld [vmem:[%s956_s1 + $0x78] sm:$0xff]  }
   0x8   :  { %616 = vmatpush3.bf16.msra.mxu0 %v701_v6  ;;  %297 = vmatprep.subr.bf16.mxu1 %v745_v0  ;;  %v715_v20 = vld [vmem:[%s956_s1 + $0xb0] sm:$0xff]   ;;  %v566_v24 = vcombine.high %v27_v22, %v27_v22  ;;  %v28_v25 = vld [vmem:[%s957_s0 + $0x8] sm:$0xff]  ;;  %v718_v27 = vld [vmem:[%s956_s1 + $0xb8] sm:$0xff]   ;;  %v565_v30 = vcombine.low %v27_v22, %v27_v22 }
   0x9   :  { %617 = vmatprep.subr.bf16.mxu0 %v702_v7  ;;  %v716_v21 = vld [vmem:[%s956_s1 + $0x30] sm:$0xff]   ;;  %v568_v26 = vcombine.high %v28_v25, %v28_v25  ;;  %v719_v28 = vld [vmem:[%s956_s1 + $0x38] sm:$0xff]   ;;  %v722_v29 = vld [vmem:[%s956_s1 + $0xc0] sm:$0xff]   ;;  %v567_v33 = vcombine.low %v28_v25, %v28_v25 }
   0xa   :  { %285 = vmatprep.mubr.bf16.mxu0 %v566_v24  ;;  %v725_v31 = vld [vmem:[%s958_s3] sm:$0xff]   ;;  %v726_v34 = vld [vmem:[%s958_s3 + $0x8] sm:$0xff]   ;;  %v727_v35 = vld [vmem:[%s958_s3 + $0x10] sm:$0xff]  }
   0xb   :  { %298 = vmatpush1.bf16.msra.mxu1 %v703_v8  ;;  %594 = vmatprep.mubr.msk.bf16.mxu1 %vm249_vm0, %v568_v26  ;;  %v728_v36 = vld [vmem:[%s958_s3 + $0x18] sm:$0xff]   ;;  %v729_v37 = vld [vmem:[%s958_s3 + $0x20] sm:$0xff]   ;;  %v730_v38 = vld [vmem:[%s958_s3 + $0x28] sm:$0xff]  }
   0xc   :  { %618 = vmatpush3.bf16.msra.mxu0 %v704_v9  ;;  %299 = vmatprep.subr.bf16.mxu1 %v745_v0  ;;  %v731_v39 = vld [vmem:[%s958_s3 + $0x30] sm:$0xff]   ;;  %v732_v40 = vld [vmem:[%s958_s3 + $0x38] sm:$0xff]   ;;  %v733_v41 = vld [vmem:[%s959_s5] sm:$0xff]  }
   0xd   :  { %619 = vmatprep.subr.bf16.mxu0 %v705_v10  ;;  %v734_v42 = vld [vmem:[%s959_s5 + $0x8] sm:$0xff]   ;;  %v735_v43 = vld [vmem:[%s959_s5 + $0x10] sm:$0xff]   ;;  %v736_v44 = vld [vmem:[%s959_s5 + $0x18] sm:$0xff]  }
   0xe   :  { %v564_v47 = vld [vmem:[%s960_s2] ss:$0 sm:$0xff]  ;;  %v738_v60 = vld [vmem:[%s959_s5 + $0x28] sm:$0xff]   ;;  %v739_v61 = vld [vmem:[%s959_s5 + $0x30] sm:$0xff]  }
   0xf   :  { %300 = vmatpush1.bf16.msra.mxu1 %v706_v11  ;;  %v737_v59 = vld [vmem:[%s959_s5 + $0x20] sm:$0xff]   ;;  %v740_v62 = vld [vmem:[%s959_s5 + $0x38] sm:$0xff]  }
  0x10   :  { %620 = vmatpush3.bf16.msra.mxu0 %v707_v12  ;;  %301 = vmatprep.subr.bf16.mxu1 %v745_v0  ;;  %v595_v63 = vld [vmem:[%s961_s4] ss:$0 sm:$0xff] }
  0x11   :  { %621 = vmatprep.subr.bf16.mxu0 %v708_v13  ;;  %v604_v7 = vld [vmem:[%s962_s6] ss:$0 sm:$0xff] }
  0x13   :  { %302 = vmatpush1.bf16.msra.mxu1 %v709_v14 }
  0x14   :  { %622 = vmatpush3.bf16.msra.mxu0 %v710_v15  ;;  %303 = vmatprep.subr.bf16.mxu1 %v745_v0 }
  0x15   :  { %623 = vmatprep.subr.bf16.mxu0 %v711_v16 }
  0x17   :  { %304 = vmatpush1.bf16.msra.mxu1 %v712_v17 }
  0x18   :  { %624 = vmatpush3.bf16.msra.mxu0 %v713_v18  ;;  %305 = vmatprep.subr.bf16.mxu1 %v745_v0 }
  0x19   :  { %625 = vmatprep.subr.bf16.mxu0 %v714_v19 }
  0x1b   :  { %306 = vmatpush1.bf16.msra.mxu1 %v715_v20 }
  0x1c   :  { %626 = vmatpush3.bf16.msra.mxu0 %v716_v21  ;;  %307 = vmatprep.subr.bf16.mxu1 %v745_v0 }
  0x1d   :  { %627 = vmatprep.subr.bf16.mxu0 %v717_v23 }
  0x1f   :  { %308 = vmatpush1.bf16.msra.mxu1 %v718_v27 }
  0x20   :  { %628 = vmatpush3.bf16.msra.mxu0 %v719_v28  ;;  %309 = vmatprep.subr.bf16.mxu1 %v745_v0 }
  0x21   :  { %653 = vmatprep.subr.bf16.mxu0 %v746_v32 }
  0x23   :  { %286 = vmatmul.mubr.bf16.vlgmr.msra.gmra.mrb[0].mxu0 %v565_v30  ;;  %310 = vmatpush1.bf16.msra.mxu1 %v722_v29 }
  0x24   :  { %654 = vmatpush3.bf16.msra.mxu0 %v725_v31  ;;  %673 = vmatprep.subr.bf16.mxu1 %v746_v32 }
  0x25   :  { %655 = vmatprep.subr.bf16.mxu0 %v746_v32  ;;  %669 = vmatprep.mubr.msk.bf16.mxu0 %vm747_vm1, %v746_v32 }
  0x26   :  { %326 = vmatmul.mubr.bf16.vlgmr.msra.gmra.mrb[0].mxu1 %v567_v33 }
  0x27   :  { %689 = vmatprep.mubr.msk.bf16.mxu1 %vm747_vm1, %v746_v32  ;;  %674 = vmatpush3.bf16.msra.mxu1 %v733_v41 }
  0x28   :  { %656 = vmatpush3.bf16.msra.mxu0 %v726_v34  ;;  %675 = vmatprep.subr.bf16.mxu1 %v746_v32 }
  0x29   :  { %657 = vmatprep.subr.bf16.mxu0 %v746_v32 }
  0x2b   :  { %676 = vmatpush3.bf16.msra.mxu1 %v734_v42 }
  0x2c   :  { %658 = vmatpush3.bf16.msra.mxu0 %v727_v35  ;;  %677 = vmatprep.subr.bf16.mxu1 %v746_v32 }
  0x2d   :  { %659 = vmatprep.subr.bf16.mxu0 %v746_v32 }
  0x2f   :  { %678 = vmatpush3.bf16.msra.mxu1 %v735_v43 }
  0x30   :  { %660 = vmatpush3.bf16.msra.mxu0 %v728_v36  ;;  %679 = vmatprep.subr.bf16.mxu1 %v746_v32 }
  0x31   :  { %661 = vmatprep.subr.bf16.mxu0 %v746_v32 }
  0x33   :  { %680 = vmatpush3.bf16.msra.mxu1 %v736_v44 }
  0x34   :  { %662 = vmatpush3.bf16.msra.mxu0 %v729_v37  ;;  %681 = vmatprep.subr.bf16.mxu1 %v746_v32 }
  0x35   :  { %663 = vmatprep.subr.bf16.mxu0 %v746_v32 }
  0x37   :  { %682 = vmatpush3.bf16.msra.mxu1 %v737_v59 }
  0x38   :  { %664 = vmatpush3.bf16.msra.mxu0 %v730_v38  ;;  %683 = vmatprep.subr.bf16.mxu1 %v746_v32 }
  0x39   :  { %665 = vmatprep.subr.bf16.mxu0 %v746_v32 }
  0x3b   :  { %684 = vmatpush3.bf16.msra.mxu1 %v738_v60 }
  0x3c   :  { %666 = vmatpush3.bf16.msra.mxu0 %v731_v39  ;;  %685 = vmatprep.subr.bf16.mxu1 %v746_v32 }
  0x3d   :  { %667 = vmatprep.subr.bf16.mxu0 %v746_v32 }
  0x3f   :  { %686 = vmatpush3.bf16.msra.mxu1 %v739_v61 }
  0x40   :  { %668 = vmatpush3.bf16.msra.mxu0 %v732_v40  ;;  %687 = vmatprep.subr.bf16.mxu1 %v746_v32 }
  0x43   :  { %688 = vmatpush3.bf16.msra.mxu1 %v740_v62 }
  0xf6   :  { %v629_v45 = vpop.f32.mrb[0].mxu0 }
  0xf7   :  { %v630_v46 = vpop.f32.mrb[1].mxu0 }
  0xf8   :  { %v631_v48 = vadd.f32 %v630_v46, %v629_v45  ;;  %v632_v49 = vpop.f32.mrb[2].mxu0 }
  0xf9   :  { %v633_v50 = vpop.f32.mrb[3].mxu0  ;;  %v327_v51 = vpop.f32.mrb[0].mxu1 }
  0xfa   :  { %v288_v52 = vadd.f32 %v631_v48, %v564_v47  ;;  %v329_v53 = vpop.f32.mrb[1].mxu1 }
  0xfb   :  { %v330_v54 = vpop.f32.mrb[2].mxu1 }
  0xfc   :  { %v328_v55 = vadd.f32 %v327_v51, %v288_v52  ;;  %v331_v56 = vpop.f32.mrb[3].mxu1 }
  0xfe   :  { %741 = vtanh.f32 %v328_v55 }
 0x108   :  { %v742_v57 = vpop.eup %741 }
 0x109   :  { %v334_v58 = vpack.c.bf16 %v742_v57, %v742_v57 }
 0x10b   :  { %670 = vmatmul.mubr.bf16.vlgmr.msra.gmra.mrb[4].mxu0 %v334_v58 }
 0x1de   :  { %v440_v0 = vpop.f32.mrb[4].mxu0 }
 0x1df   :  { %v441_v1 = vadd.f32 %v595_v63, %v440_v0  ;;  %v671_v2 = vpop.f32.mrb[5].mxu0 }
 0x1e0   :  { %v443_v3 = vpop.f32.mrb[6].mxu0 }
 0x1e1   :  { %743 = vtanh.f32 %v441_v1  ;;  %v672_v4 = vpop.f32.mrb[7].mxu0 }
 0x1eb   :  { %v744_v5 = vpop.eup %743 }
 0x1ec   :  { %v447_v6 = vpack.c.bf16 %v744_v5, %v744_v5 }
 0x1ee   :  { %690 = vmatmul.mubr.bf16.vlgmr.msra.gmra.mrb[4].mxu1 %v447_v6 }
 0x2c1   :  { %v553_v8 = vpop.f32.mrb[4].mxu1 }
 0x2c2   :  { %v554_v9 = vadd.f32 %v604_v7, %v553_v8  ;;  %v691_v10 = vpop.f32.mrb[5].mxu1 }
 0x2c3   :  { %v556_v11 = vpop.f32.mrb[6].mxu1 }
 0x2c4   :  { %559 = vst [vmem:[%s963_s7] sm:$0xff] %v554_v9  ;;  %v692_v12 = vpop.f32.mrb[7].mxu1 }

// kernel: lenet_forward.2
= control target key start
LH: loop header
LB: loop body
LE: loop exit
PB: predicated region body
PF: predicated region fallthrough
CT: control target
= control target key end

     0   :  { %s3085_s18 = smov 0   ;;  %s4223_s0 = inlined_call_operand.vmem [shape: bf16[2,32,32,3], index: 0, kind: input, shape index: {}]   ;;  %s4224_s1 = inlined_call_operand.vmem [shape: bf16[75,8], index: 1, kind: input, shape index: {}]   ;;  %s4225_s2 = inlined_call_operand.vmem [shape: f32[1,8], index: 2, kind: input, shape index: {}]   ;;  %s4226_s3 = inlined_call_operand.vmem [shape: bf16[200,16], index: 3, kind: input, shape index: {}]   ;;  %s4227_s4 = inlined_call_operand.vmem [shape: f32[1,16], index: 4, kind: input, shape index: {}]   ;;  %s4228_s5 = inlined_call_operand.vmem [shape: bf16[2,5,5,16], index: 5, kind: output, shape index: {}]  }
   0x1 LB: > { %s2498_s19 = sadd.s32 4294967295, %s3006_s18   ;;  %p2502_p0 = scmp.ge.s32.totalorder %s3006_s18, 1  ;;  %s3006_s18 = sphi %s3085_s18, %s15_s18  }
   0x2   : > { %p187_p1 = scmp.lt.s32.totalorder %s3006_s18, 3 }
   0x4   : > { %p188_p2 = pnand %p2502_p0, %p187_p1 }
   0x6   : > { %191 = sbr.rel (%p188_p2) target bundleno = 1471 (0x5bf), region = 40 }
   0xd   : > { %p215_p3 = scmp.lt.s32.totalorder %s2498_s19, 1  ;;  %v3096_v0 = vld [vmem:[%s4224_s1] sm:$0xf]  ;;  %v3101_v1 = vld [vmem:[%s4224_s1 + $0x4] sm:$0xf]  ;;  %v237_v2 = vlaneseq  ;;  %v3016_v18 = vmov 0.0  }
   0xe   : > { %v3106_v3 = vld [vmem:[%s4224_s1 + $0x8] sm:$0xf]  ;;  %v3111_v4 = vld [vmem:[%s4224_s1 + $0xc] sm:$0xf]  ;;  %v3116_v5 = vld [vmem:[%s4224_s1 + $0x10] sm:$0xf] }
   0xf   : > { %4235 = vst [vmem:[#allocation3_spill] sm:$0xff] %v3116_v5  ;;  %s4274_s19 = smov (!%p215_p3, %s2498_s19), 1  ;;  %v3121_v6 = vld [vmem:[%s4224_s1 + $0x14] sm:$0xf]  ;;  %v3126_v7 = vld [vmem:[%s4224_s1 + $0x18] sm:$0xf] }
  0x10   : > { %4236 = vst [vmem:[#allocation4_spill] sm:$0xff] %v3121_v6  ;;  %4237 = vst [vmem:[#allocation5_spill] sm:$0xff] %v3126_v7  ;;  %v238_v8 = vshrl.u32 %v237_v2, 7  ;;  %v3131_v9 = vld [vmem:[%s4224_s1 + $0x1c] sm:$0xf]  ;;  %s2714_s15 = sshll.u32 %s4274_s19, 9 }
  0x11   : > { %4238 = vst [vmem:[#allocation6_spill] sm:$0xff] %v3131_v9  ;;  %v3136_v10 = vld [vmem:[%s4224_s1 + $0x20] sm:$0xf]  ;;  %v3141_v11 = vld [vmem:[%s4224_s1 + $0x24] sm:$0x3]  ;;  %s2856_s16 = smul.u32 20, %s4274_s19  ;;  %s3151_s23 = scalar_lea.vmem %s4223_s0, %s2714_s15 }
  0x12   : > { %4239 = vst [vmem:[#allocation7_spill] sm:$0xff] %v3136_v10  ;;  %4240 = vst [vmem:[#allocation8_spill] sm:$0xff] %v3141_v11  ;;  %v3146_v12 = vld [vmem:[%s4225_s2] ss:$0 sm:$0xff]  ;;  %v239_v13 = vadd.s32 8, %v238_v8  ;;  %v241_v14 = vand.u32 127, %v237_v2 }
  0x13   : > { %4241 = vst [vmem:[#allocation9_spill] sm:$0xff] %v3146_v12  ;;  %v242_v15 = vmul.u32 2, %v238_v8  ;;  %s3156_s26 = scalar_lea.vmem %s4228_s5, %s2856_s16  ;;  %s3166_s19 = smov 0  }
  0x14   : > { %v243_v16 = vmul.u32 2, %v239_v13 }
  0x15   : > { %vm244_vm0 = vcmp.eq.s32.totalorder %v241_v14, %v242_v15  ;;  %v250_v17 = vadd.s32 1, %v242_v15 }
  0x16   : > { %vm245_vm1 = vcmp.eq.s32.totalorder %v241_v14, %v243_v16  ;;  %v3158_v19 = vsel %vm244_vm0, 1.0, %v3016_v18  ;;  %v251_v20 = vadd.s32 1, %v243_v16 }
  0x17   : > { %4242 = vst [vmem:[#allocation10_spill] sm:$0xff] %v3158_v19  ;;  %v3160_v21 = vsel %vm245_vm1, 1.0, %v3016_v18  ;;  %vm252_vm2 = vcmp.eq.s32.totalorder %v241_v14, %v250_v17 }
  0x18   : > { %4243 = vst [vmem:[#allocation11_spill] sm:$0xff] %v3160_v21  ;;  %vm253_vm3 = vcmp.eq.s32.totalorder %v241_v14, %v251_v20  ;;  %v3162_v22 = vsel %vm252_vm2, 1.0, %v3016_v18 }
  0x19   : > { %4244 = vst [vmem:[#allocation12_spill] sm:$0xff] %v3162_v22  ;;  %v3164_v23 = vsel %vm253_vm3, 1.0, %v3016_v18 }
  0x1a   : > { %4245 = vst [vmem:[#allocation13_spill] sm:$0xff] %v3164_v23 }
  0x1b LB: >> { %s2716_s27 = sshll.u32 %s3010_s19, 5  ;;  %vm360_vm4 = vcmask 1046528   ;;  %vm371_vm5 = vsmask.f32 6400  ;;  %vm337_vm6 = vsmask.f32 7424  ;;  %s3010_s19 = sphi %s3166_s19, %s263_s19  }
  0x1c   : >> { %s3173_s28 = scalar_lea.vmem %s3151_s23, %s2716_s27  ;;  %s3017_s29 = smov 6   ;;  %vm723_vm7 = vsmask.f32 256  ;;  %vm396_vm8 = vcmask 1045504   ;;  %vm578_vm9 = vcmask 23552   ;;  %vm584_vm10 = vcmask 48128  }
  0x1d   : >> { %v2536_v24 = vld [vmem:[%s3173_s28 + $0x34] sm:$0xf]  ;;  %v3177_v25 = vld [vmem:[%s3173_s28 + $0x38] sm:$0xf]  ;;  %v2540_v26 = vld [vmem:[%s3173_s28 + $0x30] sm:$0xe] }
  0x1e   : >> { %v2541_v27 = vld [vmem:[%s3173_s28 + $0x3c] sm:$0xf]  ;;  %v3181_v28 = vcombine.low %v2540_v26, %v2536_v24  ;;  %v2535_v29 = vld [vmem:[%s3173_s28 + $0x30] sm:$0xf]  ;;  %v2545_v34 = vld [vmem:[%s3173_s28 + $0x40] sm:$0xf] }
  0x1f   : >> { %v2539_v30 = vld [vmem:[%s3173_s28 + $0x3c] sm:$0x7]  ;;  %v3186_v31 = vcombine.low %v3177_v25, %v2541_v27  ;;  %v3188_v32 = vcombine.low %v2535_v29, %v2536_v24  ;;  %v2546_v35 = vld [vmem:[%s3173_s28 + $0x44] sm:$0xf]  ;;  %v3196_v36 = vld [vmem:[%s3173_s28 + $0x48] sm:$0xf] }
  0x20   : >> { %v3191_v33 = vcombine.low %v3177_v25, %v2539_v30  ;;  %v4230_v37 = vrot.slane %v3181_v28, 1  ;;  %v2550_v38 = vld [vmem:[%s3173_s28 + $0x40] sm:$0xe]  ;;  %v2551_v39 = vld [vmem:[%s3173_s28 + $0x4c] sm:$0xf]  ;;  %v3201_v40 = vcombine.low %v2545_v34, %v2546_v35  ;;  %v4231_v41 = vshrl.u32 %v3181_v28, 16 }
  0x21   : >> { %v683_v42 = vrot.slane %v3186_v31, 1  ;;  %v2580_v45 = vcombine.low %v2550_v38, %v2546_v35  ;;  %v2549_v46 = vld [vmem:[%s3173_s28 + $0x4c] sm:$0x7]  ;;  %v2581_v47 = vcombine.low %v3196_v36, %v2551_v39  ;;  %v2542_v49 = vld [vmem:[%s3173_s28 + $0x30] sm:$0xc]  ;;  %v701_v50 = vshrl.u32 %v3186_v31, 16 }
  0x22   : >> { %v668_v43 = vshll.u32 %v3191_v33, 16  ;;  %v672_v44 = vshrl.u32 %v3191_v33, 16  ;;  %v3210_v48 = vcombine.low %v3196_v36, %v2549_v46  ;;  %v704_v51 = vshll.u32 %v3186_v31, 16  ;;  %v2552_v56 = vld [vmem:[%s3173_s28 + $0x40] sm:$0xc]  ;;  %s3018_s30 = smov 3  }
  0x23   : >> { %v684_v52 = vsel %vm360_vm4, %v4230_v37, %v683_v42  ;;  %v775_v54 = vrot.slane %v2580_v45, 1  ;;  %v3222_v55 = vcombine.low %v2542_v49, %v2536_v24  ;;  %v3226_v57 = vrot.slane %v2581_v47, 1  ;;  %v2592_v30 = vld [vmem:[%s3173_s28 + $0x50] sm:$0xf]  ;;  %s3019_s6 = smov 9   ;;  %s3020_s7 = smov 12  }
  0x24   : >> { %4246 = vst [vmem:[#allocation14_spill] sm:$0xff] %v3210_v48  ;;  %v3220_v53 = vrot.slane %v668_v43, 1  ;;  %685 = vrot.lane.b32.xlu1 %v684_v52, %s3017_s29  ;;  %v761_v58 = vshll.u32 %v3210_v48, 16  ;;  %v765_v59 = vshrl.u32 %v3210_v48, 16  ;;  %v703_v60 = vrot.slane %v701_v50, 1  ;;  %s3021_s8 = smov 15  }
  0x25   : >> { %v693_v62 = vshrl.u32 %v3222_v55, 16  ;;  %v696_v63 = vshll.u32 %v3222_v55, 16  ;;  %v706_v2 = vrot.slane %v704_v51, 2  ;;  %v3237_v8 = vsel %vm360_vm4, %v775_v54, %v3226_v57  ;;  %v3252_v43 = vld [vmem:[%s3173_s28 + $0x54] sm:$0xf]  ;;  %s3022_s9 = smov 18  }
  0x26   : >> { %v3231_v61 = vor.u32 %v672_v44, %v3220_v53  ;;  %v763_v13 = vrot.slane %v761_v58, 1  ;;  %v4229_v14 = vshll.u32 %v3181_v28, 16  ;;  %v2582_v15 = vcombine.low %v2552_v56, %v2546_v35  ;;  %s3023_s10 = smov 21   ;;  %v268_v5 = vld [vmem:[%s3173_s28] sm:$0xf]  ;;  %s3024_s11 = smov 24  }
  0x27   : >> { %v695_v16 = vrot.slane %v693_v62, 1  ;;  %v698_v17 = vrot.slane %v696_v63, 2  ;;  %v3242_v18 = vor.u32 %v706_v2, %v703_v60  ;;  %v794_v20 = vshrl.u32 %v2581_v47, 16  ;;  %s3025_s12 = smov 27   ;;  %s3026_s13 = smov 30  }
  0x28   : >> { %677 = vrot.lane.b32.xlu0 %v3231_v61, %s3018_s30  ;;  %1104 = vrot.lane.b32.xlu1 %v3237_v8, %s3017_s29  ;;  %v3246_v24 = vor.u32 %v765_v59, %v763_v13  ;;  %v665_v26 = vrot.slane %v4229_v14, 1  ;;  %v786_v27 = vshrl.u32 %v2582_v15, 16  ;;  %v789_v29 = vshll.u32 %v2582_v15, 16  ;;  %v2548_v15 = vld [vmem:[%s3173_s28 + $0x4c] sm:$0x3]  ;;  %s3027_s14 = smov 33  }
  0x29   : >> { %v699_v34 = vor.u32 %v698_v17, %v695_v16  ;;  %v796_v35 = vrot.slane %v794_v20, 1  ;;  %v797_v38 = vshll.u32 %v2581_v47, 16  ;;  %v754_v39 = vshrl.u32 %v2580_v45, 16  ;;  %s3028_s15 = smov 36   ;;  %s3029_s16 = smov 39  }
  0x2a   : >> { %v666_v44 = vor.u32 %v665_v26, %v4231_v41  ;;  %v788_v46 = vrot.slane %v786_v27, 1  ;;  %v791_v49 = vrot.slane %v789_v29, 2  ;;  %v756_v50 = vshll.u32 %v2580_v45, 16  ;;  %s3030_s17 = smov 42   ;;  %s3031_s20 = smov 45  }
  0x2b   : >> { %v708_v51 = vsel %vm371_vm5, %v699_v34, %v3242_v18  ;;  %v799_v52 = vrot.slane %v797_v38, 2  ;;  %v725_v54 = vshrl.u32 %v3201_v40, 16  ;;  %v728_v47 = vshll.u32 %v3201_v40, 16  ;;  %v2594_v34 = vld [vmem:[%s3173_s28 + $0x58] sm:$0xf]  ;;  %s3033_s21 = smov 48  }
  0x2c   : >> { %1102 = vrot.lane.b32.xlu0 %v3246_v24, %s3018_s30  ;;  %709 = vrot.lane.b32.xlu1 %v708_v51, %s3019_s6  ;;  %v671_v56 = vsel %vm337_vm6, %v666_v44, %v3220_v53  ;;  %v792_v58 = vor.u32 %v791_v49, %v788_v46  ;;  %v758_v45 = vrot.slane %v756_v50, 1  ;;  %v3266_v59 = vcombine.low %v2592_v30, %v3252_v43  ;;  %v2597_v30 = vld [vmem:[%s3173_s28 + $0x50] sm:$0xe]  ;;  %v2595_v38 = vld [vmem:[%s3173_s28 + $0x5c] sm:$0x3]  ;;  %s2724_s22 = sshll.u32 %s3010_s19, 3 }
  0x2d   : >> { %v3268_v60 = vor.u32 %v799_v52, %v796_v35  ;;  %v3270_v62 = vrot.slane %v725_v54, 7  ;;  %v3289_v29 = vcombine.low %v3196_v36, %v2548_v15  ;;  %v3298_v35 = vcombine.low %v2597_v30, %v3252_v43  ;;  %v3307_v46 = vld [vmem:[%s3173_s28 + $0x8] sm:$0xf]  ;;  %v272_v49 = vld [vmem:[%s3173_s28 + $0xc] sm:$0x7]  ;;  %s1502_s24 = scalar_lea.vmem [#allocation2], %s2724_s22 }
  0x2e   : >> { %v759_v63 = vor.u32 %v758_v45, %v754_v39  ;;  %v1123_v2 = vshrl.u32 %v3266_v59, 16  ;;  %v1126_v27 = vshll.u32 %v3266_v59, 16  ;;  %v2596_v39 = vld [vmem:[%s3173_s28 + $0x5c] sm:$0x7]  ;;  %v2601_v44 = vcombine.low %v2594_v34, %v2595_v38  ;;  %v273_v52 = vld [vmem:[%s3173_s28] sm:$0xe] }
  0x2f   : >> { %v3277_v16 = vsel %vm371_vm5, %v792_v58, %v3268_v60  ;;  %v730_v20 = vor.u32 %v728_v47, %v3270_v62  ;;  %4247 = vst [vmem:[#allocation15_spill] sm:$0xff] %v3289_v29  ;;  %v732_v36 = vshrl.u32 %v3289_v29, 16  ;;  %v3311_v50 = vcombine.low %v2594_v34, %v2596_v39  ;;  %v2598_v58 = vld [vmem:[%s3173_s28 + $0x5c] sm:$0xf]  ;;  %v3322_v45 = vld [vmem:[%s3173_s28 + $0x4] sm:$0xf] }
  0x30   : >> { %675 = vrot.lane.b32.xlu0 %v671_v56, %s3018_s30  ;;  %1108 = vrot.lane.b32.xlu1 %v3277_v16, %s3019_s6  ;;  %v3282_v17 = vsel %vm337_vm6, %v759_v63, %v763_v13  ;;  %v3285_v26 = vrot.slane %v1123_v2, 7  ;;  %v1154_v51 = vshll.u32 %v3298_v35, 16  ;;  %v735_v47 = vshll.u32 %v3289_v29, 16  ;;  %v3317_v56 = vld [vmem:[%s3173_s28 + $0x18] sm:$0xf]  ;;  %s263_s19 = sadd.s32 1, %s3010_s19  }
  0x31   : >> { %v734_v54 = vrot.slane %v732_v36, 7  ;;  %v3325_v63 = vcombine.low %v3307_v46, %v272_v49  ;;  %v2520_v2 = vld [vmem:[%s3173_s28 + $0x10] sm:$0xe]  ;;  %v1152_v15 = vshrl.u32 %v3298_v35, 16  ;;  %v2556_v30 = vcombine.low %v273_v52, %v3322_v45  ;;  %v3338_v39 = vld [vmem:[%s3173_s28 + $0x14] sm:$0xf] }
  0x32   : >> { %v1128_v13 = vor.u32 %v1126_v27, %v3285_v26  ;;  %v2599_v27 = vld [vmem:[%s3173_s28 + $0x50] sm:$0xc]  ;;  %v1156_v38 = vrot.slane %v1154_v51, 1  ;;  %v1159_v36 = vshll.u32 %v3311_v50, 16  ;;  %v2562_v52 = vcombine.low %v2520_v2, %v3338_v39  ;;  %p260_p4 = scmp.ge.s32.totalorder %s263_s19, 14  }
  0x33   : >> { %v737_v37 = vor.u32 %v735_v47, %v734_v54  ;;  %v361_v41 = vrot.slane %v2556_v30, 1  ;;  %v3345_v12 = vcombine.low %v2594_v34, %v2598_v58  ;;  %v3348_v23 = vcombine.low %v2599_v27, %v3252_v43  ;;  %v2521_v58 = vld [vmem:[%s3173_s28 + $0x1c] sm:$0xf] }
  0x34   : >> { %1100 = vrot.lane.b32.xlu0 %v3282_v17, %s3018_s30  ;;  %739 = vrot.lane.b32.xlu1 %v730_v20, %s3020_s7  ;;  %v1130_v20 = vshrl.u32 %v2601_v44, 16  ;;  %v1133_v14 = vshll.u32 %v2601_v44, 16  ;;  %v4248_v54 = vrot.slane %v3325_v63, 1  ;;  %v443_v34 = vrot.slane %v2562_v52, 1 }
  0x35   : >> { %v1157_v43 = vor.u32 %v1156_v38, %v1152_v15  ;;  %v3366_v2 = vrot.slane %v1159_v36, 1  ;;  %v373_v27 = vshrl.u32 %v2556_v30, 16  ;;  %v738_v22 = vsel %vm723_vm7, %v3270_v62, %v737_v37 }
  0x36   : >> { %v3361_v47 = vsel %vm360_vm4, %v361_v41, %v4248_v54  ;;  %v454_v15 = vshrl.u32 %v2562_v52, 16  ;;  %v457_v38 = vshll.u32 %v2562_v52, 16  ;;  %v2529_v52 = vld [vmem:[%s3173_s28 + $0x2c] sm:$0x7]  ;;  %vm589_vm11 = vcmask 72704  }
  0x37   : >> { %v375_v54 = vrot.slane %v373_v27, 1  ;;  %vm594_vm12 = vcmask 97280   ;;  %vm599_vm13 = vcmask 121856   ;;  %vm604_vm14 = vcmask 146432  }
  0x38   : >> { %687 = vrot.lane.b32.xlu0 %v683_v42, %s3017_s29  ;;  %1137 = vrot.lane.b32.xlu1 %v1128_v13, %s3020_s7  ;;  %v2519_v42 = vld [vmem:[%s3173_s28 + $0x1c] sm:$0x7]  ;;  %v274_v13 = vld [vmem:[%s3173_s28 + $0xc] sm:$0xf]  ;;  %vm609_vm15 = vcmask 171008   ;;  %vm614_vm0 = vcmask 195584  }
  0x39   : >> { %v3341_v49 = vcombine.low %v3317_v56, %v2519_v42  ;;  %v3354_v21 = vcombine.low %v3307_v46, %v274_v13  ;;  %v1132_v42 = vrot.slane %v1130_v20, 7  ;;  %v376_v13 = vshll.u32 %v2556_v30, 16 }
  0x3a   : >> { %vm895_vm1 = vcmask 1044480   ;;  %vm619_vm2 = vcmask 220160   ;;  %vm624_vm3 = vcmask 244736  }
  0x3b   : >> { %v3351_v51 = vrot.slane %v3341_v49, 1  ;;  %v381_v41 = vshrl.u32 %v3354_v21, 16  ;;  %v384_v20 = vshll.u32 %v3354_v21, 16  ;;  %v378_v19 = vrot.slane %v376_v13, 2 }
  0x3c   : >> { %1106 = vrot.lane.b32.xlu0 %v3226_v57, %s3017_s29  ;;  %746 = vrot.lane.b32.xlu1 %v3201_v40, %s3021_s8  ;;  %v1135_v37 = vor.u32 %v1133_v14, %v1132_v42  ;;  %v1162_v13 = vsel %vm337_vm6, %v1157_v43, %v3366_v2  ;;  %v459_v14 = vrot.slane %v457_v38, 2  ;;  %v3390_v42 = vld [vmem:[%s3173_s28 + $0x28] sm:$0xf]  ;;  %v1187_v43 = vshll.u32 %v3348_v23, 16 }
  0x3d   : >> { %v3372_v44 = vsel %vm360_vm4, %v443_v34, %v3351_v51  ;;  %v383_v62 = vrot.slane %v381_v41, 1  ;;  %v386_v30 = vrot.slane %v384_v20, 2  ;;  %v379_v36 = vor.u32 %v378_v19, %v375_v54  ;;  %v2530_v54 = vld [vmem:[%s3173_s28 + $0x20] sm:$0xe] }
  0x3e   : >> { %v456_v34 = vrot.slane %v454_v15, 1  ;;  %v1173_v41 = vrot.slane %v3298_v35, 1  ;;  %v1184_v15 = vshrl.u32 %v3348_v23, 16  ;;  %v1136_v35 = vsel %vm723_vm7, %v3285_v26, %v1135_v37  ;;  %v2531_v23 = vld [vmem:[%s3173_s28 + $0x2c] sm:$0xf] }
  0x3f   : >> { %v3387_v29 = vor.u32 %v386_v30, %v383_v62  ;;  %v1192_v38 = vshrl.u32 %v3345_v12, 16  ;;  %v1195_v19 = vshll.u32 %v3345_v12, 16  ;;  %v4249_v37 = vrot.slane %v3345_v12, 1 }
  0x40   : >> { %711 = vrot.lane.b32.xlu0 %v3242_v18, %s3019_s6  ;;  %1144 = vrot.lane.b32.xlu1 %v3266_v59, %s3021_s8  ;;  %v3377_v59 = vcombine.low %v3317_v56, %v2521_v58  ;;  %v460_v30 = vor.u32 %v459_v14, %v456_v34  ;;  %v1186_v14 = vrot.slane %v1184_v15, 1  ;;  %vm644_vm7 = vcmask 343040  }
  0x41   : >> { %v3401_v62 = vsel %vm371_vm5, %v379_v36, %v3387_v29  ;;  %v1197_v11 = vrot.slane %v1195_v19, 2 }
  0x42   : >> { %v462_v58 = vshrl.u32 %v3377_v59, 16  ;;  %v465_v27 = vshll.u32 %v3377_v59, 16 }
  0x44   : >> { %1110 = vrot.lane.b32.xlu0 %v3268_v60, %s3019_s6  ;;  %768 = vrot.lane.b32.xlu1 %v3282_v17, %s3022_s9  ;;  %v464_v17 = vrot.slane %v462_v58, 1  ;;  %v467_v20 = vrot.slane %v465_v27, 2  ;;  %v3410_v27 = vld [vmem:[%s3173_s28 + $0x24] sm:$0xf] }
  0x45   : >> { %v2568_v36 = vcombine.low %v2530_v54, %v3410_v27  ;;  %v1194_v54 = vrot.slane %v1192_v38, 1  ;;  %v2538_v38 = vld [vmem:[%s3173_s28 + $0x3c] sm:$0x3] }
  0x46   : >> { %v3407_v58 = vor.u32 %v467_v20, %v464_v17  ;;  %v3430_v17 = vcombine.low %v3390_v42, %v2531_v23  ;;  %v1189_v20 = vrot.slane %v1187_v43, 2 }
  0x47   : >> { %v537_v10 = vshll.u32 %v2568_v36, 16  ;;  %v1198_v9 = vor.u32 %v1197_v11, %v1194_v54  ;;  %v4251_v54 = vrot.slane %v3181_v28, 1 }
  0x48   : >> { %741 = vrot.lane.b32.xlu0 %v738_v22, %s3020_s7  ;;  %1166 = vrot.lane.b32.xlu1 %v1162_v13, %s3022_s9  ;;  %v3413_v22 = vcombine.low %v3390_v42, %v2529_v52  ;;  %v3420_v34 = vsel %vm371_vm5, %v460_v30, %v3407_v58  ;;  %v1175_v13 = vsel %vm360_vm4, %v1173_v41, %v4249_v37  ;;  %v523_v52 = vrot.slane %v2568_v36, 1 }
  0x49   : >> { %v534_v30 = vshrl.u32 %v2568_v36, 16  ;;  %v542_v15 = vshrl.u32 %v3430_v17, 16  ;;  %v545_v23 = vshll.u32 %v3430_v17, 16  ;;  %v539_v7 = vrot.slane %v537_v10, 2 }
  0x4a   : >> { %v3423_v26 = vrot.slane %v3413_v22, 1  ;;  %v1190_v19 = vor.u32 %v1189_v20, %v1186_v14  ;;  %v1005_v10 = vshll.u32 %v3188_v32, 16  ;;  %v4250_v14 = vshrl.u32 %v3181_v28, 16 }
  0x4b   : >> { %v536_v37 = vrot.slane %v534_v30, 1  ;;  %v547_v43 = vrot.slane %v545_v23, 2  ;;  %v1003_v30 = vshrl.u32 %v3188_v32, 16 }
  0x4c   : >> { %1139 = vrot.lane.b32.xlu0 %v1136_v35, %s3020_s7  ;;  %778 = vrot.lane.b32.xlu1 %v3237_v8, %s3023_s10  ;;  %v2515_v35 = vld [vmem:[%s3173_s28 + $0x10] sm:$0xf]  ;;  %v3437_v41 = vsel %vm360_vm4, %v523_v52, %v3423_v26  ;;  %v544_v8 = vrot.slane %v542_v15, 1  ;;  %v1014_v15 = vrot.slane %v3191_v33, 1  ;;  %v1007_v11 = vrot.slane %v1005_v10, 1 }
  0x4d   : >> { %v3446_v36 = vcombine.low %v2515_v35, %v3338_v39  ;;  %v540_v52 = vor.u32 %v539_v7, %v536_v37  ;;  %v1020_v20 = vrot.slane %v4250_v14, 1  ;;  %v4252_v35 = vshll.u32 %v3181_v28, 16 }
  0x4e   : >> { %v3449_v6 = vor.u32 %v547_v43, %v544_v8  ;;  %v1028_v37 = vrot.slane %v3222_v55, 2  ;;  %v1199_v8 = vsel %vm371_vm5, %v1190_v19, %v1198_v9  ;;  %v429_v10 = vshll.u32 %v3341_v49, 16 }
  0x4f   : >> { %v1021_v23 = vrot.slane %v4252_v35, 2  ;;  %v424_v43 = vshll.u32 %v3446_v36, 16  ;;  %v346_v14 = vshll.u32 %v3325_v63, 16 }
  0x50   : >> { %748 = vrot.lane.b32.xlu0 %v3210_v48, %s3021_s8  ;;  %1176 = vrot.lane.b32.xlu1 %v1175_v13, %s3023_s10  ;;  %v3454_v48 = vcombine.low %v3177_v25, %v2538_v38  ;;  %v1163_v13 = vshrl.u32 %v3311_v50, 16  ;;  %v3462_v7 = vsel %vm371_vm5, %v540_v52, %v3449_v6  ;;  %v3469_v25 = vcombine.low %v268_v5, %v3322_v45 }
  0x51   : >> { %v1029_v5 = vrot.slane %v3186_v31, 2  ;;  %v1022_v38 = vor.u32 %v1021_v23, %v1020_v20  ;;  %v3511_v20 = vld [vmem:[%s3173_s28 + $0xc] sm:$0x3]  ;;  %v431_v35 = vrot.slane %v429_v10, 1 }
  0x52   : >> { %v1165_v52 = vor.u32 %v1163_v13, %v3366_v2  ;;  %v341_v19 = vshll.u32 %v3469_v25, 16  ;;  %v426_v2 = vrot.slane %v424_v43, 1  ;;  %v339_v13 = vshrl.u32 %v3469_v25, 16 }
  0x53   : >> { %v3494_v55 = vsel %vm396_vm8, %v1028_v37, %v1029_v5  ;;  %v2554_v23 = vcombine.low %v3307_v46, %v3511_v20  ;;  %v348_v37 = vrot.slane %v346_v14, 1  ;;  %v350_v43 = vshrl.u32 %v3325_v63, 16  ;;  %v2518_v14 = vld [vmem:[%s3173_s28 + $0x1c] sm:$0x3] }
  0x54   : >> { %1146 = vrot.lane.b32.xlu0 %v3311_v50, %s3021_s8  ;;  %802 = vrot.lane.b32.xlu1 %v3277_v16, %s3024_s11  ;;  %v3476_v50 = vsel %vm360_vm4, %v4251_v54, %v1014_v15  ;;  %v1008_v16 = vor.u32 %v1007_v11, %v1003_v30  ;;  %v3500_v30 = vsel %vm371_vm5, %v1022_v38, %v3242_v18  ;;  %v343_v11 = vrot.slane %v341_v19, 1  ;;  %v2522_v19 = vld [vmem:[%s3173_s28 + $0x10] sm:$0xc] }
  0x55   : >> { %v352_v38 = vor.u32 %v350_v43, %v348_v37  ;;  %vm629_vm4 = vcmask 269312   ;;  %vm634_vm5 = vcmask 293888  }
  0x56   : >> { %v3489_v28 = vsel %vm337_vm6, %v1008_v16, %v3220_v53  ;;  %v4253_v53 = vrot.slane %v3345_v12, 1  ;;  %v344_v12 = vor.u32 %v343_v11, %v339_v13  ;;  %v2525_v13 = vld [vmem:[%s3173_s28 + $0x20] sm:$0xf]  ;;  %v509_v11 = vshll.u32 %v3413_v22, 16 }
  0x58   : >> { %770 = vrot.lane.b32.xlu0 %v3246_v24, %s3022_s9  ;;  %1200 = vrot.lane.b32.xlu1 %v1199_v8, %s3024_s11  ;;  %v422_v24 = vshrl.u32 %v3446_v36, 16  ;;  %v349_v16 = vsel %vm337_vm6, %v344_v12, %v348_v37  ;;  %v2528_v12 = vld [vmem:[%s3173_s28 + $0x2c] sm:$0x3] }
  0x59   : >> { %v2566_v43 = vcombine.low %v3390_v42, %v2528_v12 }
  0x5a   : >> { %v427_v54 = vor.u32 %v426_v2, %v422_v24  ;;  %v398_v24 = vrot.slane %v3354_v21, 2  ;;  %v4254_v2 = vrot.slane %v3325_v63, 1  ;;  %v2565_v63 = vcombine.low %v2525_v13, %v3410_v27 }
  0x5c   : >> { %1168 = vrot.lane.b32.xlu0 %v1165_v52, %s3022_s9  ;;  %1178 = vrot.lane.b32.xlu1 %v4253_v53, %s3023_s10  ;;  %v432_v8 = vsel %vm337_vm6, %v427_v54, %v431_v35  ;;  %v478_v53 = vrot.slane %v3377_v59, 2  ;;  %v502_v59 = vshrl.u32 %v2565_v63, 16  ;;  %v511_v54 = vrot.slane %v509_v11, 1 }
  0x60   : >> { %780 = vrot.lane.b32.xlu0 %v3226_v57, %s3023_s10  ;;  %1202 = vrot.lane.b32.xlu1 %v1198_v9, %s3024_s11  ;;  %v433_v57 = vshrl.u32 %v3341_v49, 16  ;;  %v275_v9 = vld [vmem:[%s3173_s28] sm:$0xc] }
  0x62   : >> { %v435_v52 = vor.u32 %v433_v57, %v431_v35  ;;  %v3565_v35 = vcombine.low %v3317_v56, %v2518_v14 }
  0x64   : >> { %804 = vrot.lane.b32.xlu0 %v3268_v60, %s3024_s11  ;;  %963 = vrot.lane.b32.xlu1 %v432_v8, %s3018_s30  ;;  %v2558_v60 = vcombine.low %v275_v9, %v3322_v45 }
  0x66   : >> { %v397_v49 = vrot.slane %v2558_v60, 2 }
  0x68   : >> { %353 = vrot.lane.b32.xlu0 %v349_v16, %s3018_s30  ;;  %364 = vrot.lane.b32.xlu1 %v3361_v47, %s3017_s29  ;;  %v2564_v47 = vcombine.low %v2522_v19, %v3338_v39  ;;  %v399_v45 = vsel %vm396_vm8, %v397_v49, %v398_v24  ;;  %v504_v39 = vshll.u32 %v2565_v63, 16  ;;  %v513_v16 = vshrl.u32 %v3413_v22, 16 }
  0x6a   : >> { %v477_v10 = vrot.slane %v2564_v47, 2  ;;  %v515_v56 = vor.u32 %v513_v16, %v511_v54  ;;  %v4257_v16 = vld [vmem:[#allocation14_spill] sm:$0xff] }
  0x6c   : >> { %355 = vrot.lane.b32.xlu0 %v352_v38, %s3018_s30  ;;  %967 = vrot.lane.b32.xlu1 %v3372_v44, %s3017_s29  ;;  %v479_v21 = vsel %vm396_vm8, %v477_v10, %v478_v53  ;;  %v2532_v38 = vld [vmem:[%s3173_s28 + $0x20] sm:$0xc] }
  0x6d   : >> { %v2570_v22 = vcombine.low %v2532_v38, %v3410_v27 }
  0x6f   : >> { %v557_v9 = vrot.slane %v2570_v22, 2 }
  0x70   : >> { %965 = vrot.lane.b32.xlu0 %v435_v52, %s3018_s30  ;;  %389 = vrot.lane.b32.xlu1 %v3401_v62, %s3019_s6  ;;  %v506_v62 = vrot.slane %v504_v39, 1 }
  0x74   : >> { %366 = vrot.lane.b32.xlu0 %v4254_v2, %s3017_s29  ;;  %971 = vrot.lane.b32.xlu1 %v3420_v34, %s3019_s6 }
  0x78   : >> { %969 = vrot.lane.b32.xlu0 %v3351_v51, %s3017_s29  ;;  %400 = vrot.lane.b32.xlu1 %v399_v45, %s3020_s7 }
  0x7c   : >> { %391 = vrot.lane.b32.xlu0 %v3387_v29, %s3019_s6  ;;  %975 = vrot.lane.b32.xlu1 %v479_v21, %s3020_s7  ;;  %v507_v29 = vor.u32 %v506_v62, %v502_v59 }
  0x7e   : >> { %v512_v37 = vsel %vm337_vm6, %v507_v29, %v511_v54  ;;  %v4255_v29 = vld [vmem:[#allocation4_spill] sm:$0xff]  ;;  %v4256_v54 = vld [vmem:[#allocation3_spill] sm:$0xff] }
  0x7f   : >> { %v2585_v12 = vcombine.low %v4256_v54, %v4255_v29 }
  0x80   : >> { %973 = vrot.lane.b32.xlu0 %v3407_v58, %s3019_s6  ;;  %414 = vrot.lane.b32.xlu1 %v3446_v36, %s3021_s8 }
  0x84   : >> { %402 = vrot.lane.b32.xlu0 %v398_v24, %s3020_s7  ;;  %979 = vrot.lane.b32.xlu1 %v2565_v63, %s3021_s8 }
  0x88   : >> { %977 = vrot.lane.b32.xlu0 %v478_v53, %s3020_s7  ;;  %436 = vrot.lane.b32.xlu1 %v432_v8, %s3022_s9  ;;  %s3951_s7 = smov (%p260_p4), 0  }
  0x8c   : >> { %416 = vrot.lane.b32.xlu0 %v3565_v35, %s3021_s8  ;;  %983 = vrot.lane.b32.xlu1 %v512_v37, %s3022_s9 }
  0x90   : >> { %981 = vrot.lane.b32.xlu0 %v2566_v43, %s3021_s8  ;;  %446 = vrot.lane.b32.xlu1 %v3372_v44, %s3023_s10 }
  0x94   : >> { %438 = vrot.lane.b32.xlu0 %v435_v52, %s3022_s9  ;;  %987 = vrot.lane.b32.xlu1 %v3437_v41, %s3023_s10  ;;  %v3599_v52 = vrot.slane %v3430_v17, 2 }
  0x96   : >> { %v3581_v8 = vpop.permute.xlu1 %685 }
  0x98   : >> { %985 = vrot.lane.b32.xlu0 %v515_v56, %s3022_s9  ;;  %470 = vrot.lane.b32.xlu1 %v3420_v34, %s3024_s11 }
  0x9a   : >> { %v3587_v42 = vpop.permute.xlu0 %677  ;;  %v3590_v57 = vpop.permute.xlu1 %1104 }
  0x9b   : >> { %v810_v38 = vsel %vm578_vm9, %v3191_v33, %v3587_v42  ;;  %v4259_v33 = vld [vmem:[#allocation5_spill] sm:$0xff] }
  0x9c   : >> { %448 = vrot.lane.b32.xlu0 %v3351_v51, %s3023_s10  ;;  %991 = vrot.lane.b32.xlu1 %v3462_v7, %s3024_s11  ;;  %v559_v51 = vsel %vm396_vm8, %v557_v9, %v3599_v52 }
  0x9e   : >> { %v3596_v44 = vpop.permute.xlu0 %1102  ;;  %v3601_v60 = vpop.permute.xlu1 %709 }
  0xa0   : >> { %989 = vrot.lane.b32.xlu0 %v3423_v26, %s3023_s10  ;;  %480 = vrot.lane.b32.xlu1 %v479_v21, %s3025_s12 }
  0xa2   : >> { %v676_v27 = vpop.permute.xlu0 %675  ;;  %v3607_v34 = vpop.permute.xlu1 %1108 }
  0xa4   : >> { %472 = vrot.lane.b32.xlu0 %v3407_v58, %s3024_s11  ;;  %995 = vrot.lane.b32.xlu1 %v559_v51, %s3025_s12 }
  0xa6   : >> { %v1101_v19 = vpop.permute.xlu0 %1100  ;;  %v3611_v17 = vpop.permute.xlu1 %739 }
  0xa7   : >> { %v1205_v14 = vsel %vm578_vm9, %v3201_v40, %v1101_v19 }
  0xa8   : >> { %993 = vrot.lane.b32.xlu0 %v3449_v6, %s3024_s11  ;;  %494 = vrot.lane.b32.xlu1 %v2565_v63, %s3026_s13 }
  0xaa   : >> { %v3615_v49 = vpop.permute.xlu0 %687  ;;  %v3617_v24 = vpop.permute.xlu1 %1137 }
  0xac   : >> { %482 = vrot.lane.b32.xlu0 %v478_v53, %s3025_s12  ;;  %999 = vrot.lane.b32.xlu1 %v3188_v32, %s3026_s13 }
  0xae   : >> { %v3620_v47 = vpop.permute.xlu0 %1106  ;;  %v747_v2 = vpop.permute.xlu1 %746 }
  0xb0   : >> { %997 = vrot.lane.b32.xlu0 %v3599_v52, %s3025_s12  ;;  %516 = vrot.lane.b32.xlu1 %v512_v37, %s3027_s14  ;;  %v1209_v37 = vsel %vm584_vm10, %v1205_v14, %v3590_v57 }
  0xb2   : >> { %v3623_v58 = vpop.permute.xlu0 %711  ;;  %v3625_v45 = vpop.permute.xlu1 %1144 }
  0xb4   : >> { %496 = vrot.lane.b32.xlu0 %v2566_v43, %s3026_s13  ;;  %1010 = vrot.lane.b32.xlu1 %v3489_v28, %s3027_s14 }
  0xb6   : >> { %v1111_v10 = vpop.permute.xlu0 %1110  ;;  %v769_v13 = vpop.permute.xlu1 %768 }
  0xb8   : >> { %1001 = vrot.lane.b32.xlu0 %v3454_v48, %s3026_s13  ;;  %526 = vrot.lane.b32.xlu1 %v3437_v41, %s3028_s15  ;;  %v2583_v41 = vcombine.low %v3096_v0, %v3101_v1  ;;  %v3844_v0 = vld [vmem:[%s4226_s3 + $0x10] sm:$0xf] (%p260_p4)  ;;  %v3849_v1 = vld [vmem:[%s4226_s3 + $0x14] sm:$0xf] (%p260_p4) }
  0xba   : >> { %v3630_v53 = vpop.permute.xlu0 %741  ;;  %v3632_v21 = vpop.permute.xlu1 %1166  ;;  %2764 = vmatprep.subr.bf16.mxu0 %v2583_v41  ;;  %2778 = vmatprep.subr.bf16.mxu1 %v2583_v41 }
  0xbb   : >> { %2765 = vmatpush3.bf16.msra.mxu0 %v2583_v41  ;;  %2779 = vmatpush3.bf16.msra.mxu1 %v2583_v41 }
  0xbc   : >> { %518 = vrot.lane.b32.xlu0 %v515_v56, %s3027_s14  ;;  %1016 = vrot.lane.b32.xlu1 %v3476_v50, %s3028_s15  ;;  %v808_v50 = vsel %vm578_vm9, %v3188_v32, %v676_v27  ;;  %v1207_v56 = vsel %vm578_vm9, %v4257_v16, %v3596_v44  ;;  %v1213_v44 = vsel %vm589_vm11, %v1209_v37, %v3607_v34  ;;  %v4258_v27 = vld [vmem:[#allocation6_spill] sm:$0xff] }
  0xbd   : >> { %v812_v62 = vsel %vm584_vm10, %v808_v50, %v3581_v8  ;;  %v1211_v22 = vsel %vm584_vm10, %v1207_v56, %v3620_v47  ;;  %v2586_v42 = vcombine.low %v4259_v33, %v4258_v27 }
  0xbe   : >> { %v1140_v63 = vpop.permute.xlu0 %1139  ;;  %v779_v39 = vpop.permute.xlu1 %778  ;;  %v1215_v9 = vsel %vm589_vm11, %v1211_v22, %v1111_v10  ;;  %v4261_v10 = vld [vmem:[#allocation7_spill] sm:$0xff] }
  0xbf   : >> { %v1219_v19 = vsel %vm594_vm12, %v1215_v9, %v1140_v63 }
  0xc0   : >> { %1012 = vrot.lane.b32.xlu0 %v3231_v61, %s3027_s14  ;;  %550 = vrot.lane.b32.xlu1 %v3462_v7, %s3029_s16  ;;  %v2584_v7 = vcombine.low %v3106_v3, %v3111_v4  ;;  %v3854_v3 = vld [vmem:[%s4226_s3 + $0x18] sm:$0xf] (%p260_p4)  ;;  %v3859_v4 = vld [vmem:[%s4226_s3 + $0x1c] sm:$0xf] (%p260_p4) }
  0xc2   : >> { %v3638_v28 = vpop.permute.xlu0 %748  ;;  %v3642_v59 = vpop.permute.xlu1 %1176  ;;  %2766 = vmatprep.subr.bf16.mxu0 %v2584_v7  ;;  %2780 = vmatprep.subr.bf16.mxu1 %v2584_v7 }
  0xc3   : >> { %2767 = vmatpush3.bf16.msra.mxu0 %v2584_v7  ;;  %2781 = vmatpush3.bf16.msra.mxu1 %v2584_v7 }
  0xc4   : >> { %528 = vrot.lane.b32.xlu0 %v3423_v26, %s3028_s15  ;;  %1024 = vrot.lane.b32.xlu1 %v3500_v30, %s3029_s16  ;;  %v816_v26 = vsel %vm589_vm11, %v812_v62, %v3601_v60 }
  0xc5   : >> { %2768 = vmatprep.subr.bf16.mxu0 %v2585_v12  ;;  %2782 = vmatprep.subr.bf16.mxu1 %v2585_v12 }
  0xc6   : >> { %v1147_v61 = vpop.permute.xlu0 %1146  ;;  %v803_v11 = vpop.permute.xlu1 %802 }
  0xc7   : >> { %2769 = vmatpush3.bf16.msra.mxu0 %v2585_v12  ;;  %2783 = vmatpush3.bf16.msra.mxu1 %v2585_v12  ;;  %v1223_v47 = vsel %vm599_vm13, %v1219_v19, %v1147_v61 }
  0xc8   : >> { %1018 = vrot.lane.b32.xlu0 %v1014_v15, %s3028_s15  ;;  %560 = vrot.lane.b32.xlu1 %v559_v51, %s3030_s17  ;;  %v820_v15 = vsel %vm594_vm12, %v816_v26, %v3611_v17  ;;  %v1217_v51 = vsel %vm594_vm12, %v1213_v44, %v3617_v24  ;;  %v814_v24 = vsel %vm584_vm10, %v810_v38, %v3615_v49 }
  0xc9   : >> { %v824_v8 = vsel %vm599_vm13, %v820_v15, %v747_v2  ;;  %v1221_v34 = vsel %vm599_vm13, %v1217_v51, %v3625_v45  ;;  %2770 = vmatprep.subr.bf16.mxu0 %v2586_v42  ;;  %v4260_v2 = vld [vmem:[#allocation8_spill] sm:$0xff]  ;;  %v3032_v45 = vmov 65535   ;;  %2784 = vmatprep.subr.bf16.mxu1 %v2586_v42 }
  0xca   : >> { %v771_v30 = vpop.permute.xlu0 %770  ;;  %v1201_v43 = vpop.permute.xlu1 %1200  ;;  %v828_v57 = vsel %vm604_vm14, %v824_v8, %v769_v13  ;;  %v2587_v13 = vcombine.low %v4261_v10, %v4260_v2  ;;  %v1225_v63 = vsel %vm604_vm14, %v1221_v34, %v3632_v21  ;;  %v897_v41 = vsel %vm895_vm1, 4294967295, %v3032_v45 }
  0xcb   : >> { %2771 = vmatpush3.bf16.msra.mxu0 %v2586_v42  ;;  %v1229_v50 = vsel %vm609_vm15, %v1225_v63, %v3642_v59  ;;  %v898_v21 = vsel %vm396_vm8, %v897_v41, 0  ;;  %2785 = vmatpush3.bf16.msra.mxu1 %v2586_v42  ;;  %vm649_vm8 = vcmask 367616   ;;  %vm1503_vm1 = vcmask 60416  }
  0xcc   : >> { %552 = vrot.lane.b32.xlu0 %v3449_v6, %s3029_s16  ;;  %1031 = vrot.lane.b32.xlu1 %v3494_v55, %s3030_s17  ;;  %v832_v6 = vsel %vm609_vm15, %v828_v57, %v779_v39  ;;  %v1233_v62 = vsel %vm614_vm0, %v1229_v50, %v1201_v43 }
  0xcd   : >> { %v836_v55 = vsel %vm614_vm0, %v832_v6, %v803_v11  ;;  %v900_v11 = vand.u32 %v2587_v13, %v898_v21  ;;  %v1238_v29 = vshll.u32 %v1233_v62, 16  ;;  %v1236_v22 = vshrl.u32 %v1233_v62, 16 }
  0xce   : >> { %v1169_v60 = vpop.permute.xlu0 %1168  ;;  %v1179_v17 = vpop.permute.xlu1 %1178  ;;  %v841_v61 = vshll.u32 %v836_v55, 16 }
  0xcf   : >> { %v1227_v39 = vsel %vm604_vm14, %v1223_v47, %v1169_v60  ;;  %2772 = vmatprep.subr.bf16.mxu0 %v900_v11  ;;  %2786 = vmatprep.subr.bf16.mxu1 %v900_v11  ;;  %v1240_v43 = vrot.slane %v1238_v29, 1 }
  0xd0   : >> { %1026 = vrot.lane.b32.xlu0 %v3242_v18, %s3029_s16  ;;  %574 = vrot.lane.b32.xlu1 %v3188_v32, %s3031_s20  ;;  %v818_v18 = vsel %vm589_vm11, %v814_v24, %v3623_v58  ;;  %v1231_v58 = vsel %vm609_vm15, %v1227_v39, %v1179_v17 }
  0xd1   : >> { %v822_v7 = vsel %vm594_vm12, %v818_v18, %v3630_v53  ;;  %v843_v53 = vrot.slane %v841_v61, 1  ;;  %2773 = vmatpush3.bf16.msra.mxu0 %v900_v11  ;;  %2787 = vmatpush3.bf16.msra.mxu1 %v900_v11  ;;  %v1241_v31 = vor.u32 %v1240_v43, %v1236_v22 }
  0xd2   : >> { %v781_v49 = vpop.permute.xlu0 %780  ;;  %v1203_v32 = vpop.permute.xlu1 %1202  ;;  %v826_v14 = vsel %vm599_vm13, %v822_v7, %v3638_v28 }
  0xd3   : >> { %v830_v59 = vsel %vm604_vm14, %v826_v14, %v771_v30  ;;  %v1235_v26 = vsel %vm614_vm0, %v1231_v58, %v1203_v32 }
  0xd4   : >> { %562 = vrot.lane.b32.xlu0 %v3599_v52, %s3030_s17  ;;  %1035 = vrot.lane.b32.xlu1 %v3201_v40, %s3031_s20  ;;  %v834_v54 = vsel %vm609_vm15, %v830_v59, %v781_v49  ;;  %v839_v52 = vshrl.u32 %v836_v55, 16  ;;  %v1242_v15 = vshll.u32 %v1235_v26, 16  ;;  %v1246_v51 = vshrl.u32 %v1235_v26, 16 }
  0xd6   : >> { %v805_v12 = vpop.permute.xlu0 %804  ;;  %v964_v37 = vpop.permute.xlu1 %963  ;;  %v844_v40 = vor.u32 %v843_v53, %v839_v52  ;;  %v1244_v57 = vrot.slane %v1242_v15, 1 }
  0xd7   : >> { %v838_v28 = vsel %vm614_vm0, %v834_v54, %v805_v12  ;;  %v1040_v6 = vsel %vm578_vm9, %v3446_v36, %v964_v37 }
  0xd8   : >> { %v845_v30 = vshll.u32 %v838_v28, 16  ;;  %1033 = vrot.lane.b32.xlu0 %v1029_v5, %s3030_s17  ;;  %v849_v27 = vshrl.u32 %v838_v28, 16  ;;  %v1245_v42 = vsel %vm337_vm6, %v1241_v31, %v1244_v57  ;;  %v1248_v36 = vor.u32 %v1246_v51, %v1244_v57 }
  0xda   : >> { %v847_v16 = vrot.slane %v845_v30, 1  ;;  %v354_v56 = vpop.permute.xlu0 %353  ;;  %v365_v38 = vpop.permute.xlu1 %364 }
  0xdb   : >> { %v580_v8 = vsel %vm578_vm9, %v3469_v25, %v354_v56 }
  0xdc   : >> { %v586_v44 = vsel %vm584_vm10, %v580_v8, %v365_v38  ;;  %576 = vrot.lane.b32.xlu0 %v3454_v48, %s3031_s20  ;;  %v848_v9 = vsel %vm337_vm6, %v844_v40, %v847_v16  ;;  %v4262_v48 = vld [vmem:[#allocation15_spill] sm:$0xff]  ;;  %v851_v55 = vor.u32 %v849_v27, %v847_v16  ;;  %vm639_vm6 = vcmask 318464  }
  0xdd   : >> { %852 = vrot.lane.b32.xlu1 %v848_v9, %s3033_s21 }
  0xde   : >> { %v356_v5 = vpop.permute.xlu0 %355  ;;  %v968_v60 = vpop.permute.xlu1 %967 }
  0xdf   : >> { %v583_v25 = vsel %vm578_vm9, %v2554_v23, %v356_v5  ;;  %v1045_v33 = vsel %vm584_vm10, %v1040_v6, %v968_v60 }
  0xe0   : >> { %1037 = vrot.lane.b32.xlu0 %v4262_v48, %s3031_s20 }
  0xe1   : >> { %1249 = vrot.lane.b32.xlu1 %v1245_v42, %s3033_s21 }
  0xe2   : >> { %v966_v19 = vpop.permute.xlu0 %965  ;;  %v390_v17 = vpop.permute.xlu1 %389 }
  0xe3   : >> { %v591_v34 = vsel %vm589_vm11, %v586_v44, %v390_v17  ;;  %v1043_v2 = vsel %vm578_vm9, %v3565_v35, %v966_v19  ;;  %vm856_vm9 = vcmask 392192  }
  0xe4   : >> { %854 = vrot.lane.b32.xlu0 %v851_v55, %s3033_s21 }
  0xe5   : >> { %1251 = vrot.lane.b32.xlu1 %v1248_v36, %s3033_s21 }
  0xe6   : >> { %v367_v46 = vpop.permute.xlu0 %366  ;;  %v972_v23 = vpop.permute.xlu1 %971 }
  0xe7   : >> { %v588_v20 = vsel %vm584_vm10, %v583_v25, %v367_v46  ;;  %v1049_v47 = vsel %vm589_vm11, %v1045_v33, %v972_v23 }
  0xea   : >> { %v970_v10 = vpop.permute.xlu0 %969  ;;  %v401_v24 = vpop.permute.xlu1 %400 }
  0xeb   : >> { %v1047_v13 = vsel %vm584_vm10, %v1043_v2, %v970_v10  ;;  %v596_v63 = vsel %vm594_vm12, %v591_v34, %v401_v24  ;;  %vm890_vm10 = vcmask 613376  }
  0xee   : >> { %v392_v39 = vpop.permute.xlu0 %391  ;;  %v976_v41 = vpop.permute.xlu1 %975 }
  0xef   : >> { %v593_v45 = vsel %vm589_vm11, %v588_v20, %v392_v39  ;;  %v1053_v18 = vsel %vm594_vm12, %v1049_v47, %v976_v41 }
  0xf2   : >> { %v974_v50 = vpop.permute.xlu0 %973  ;;  %v415_v49 = vpop.permute.xlu1 %414 }
  0xf3   : >> { %v1051_v61 = vsel %vm589_vm11, %v1047_v13, %v974_v50  ;;  %v601_v21 = vsel %vm599_vm13, %v596_v63, %v415_v49  ;;  %vm1314_vm11 = vcmask 228352  }
  0xf6   : >> { %v403_v7 = vpop.permute.xlu0 %402  ;;  %v980_v62 = vpop.permute.xlu1 %979 }
  0xf7   : >> { %v598_v35 = vsel %vm594_vm12, %v593_v45, %v403_v7  ;;  %v1057_v32 = vsel %vm599_vm13, %v1053_v18, %v980_v62 }
  0xfa   : >> { %v978_v11 = vpop.permute.xlu0 %977  ;;  %v437_v58 = vpop.permute.xlu1 %436 }
  0xfb   : >> { %v1055_v14 = vsel %vm594_vm12, %v1051_v61, %v978_v11  ;;  %v606_v59 = vsel %vm604_vm14, %v601_v21, %v437_v58  ;;  %vm1321_vm12 = vcmask 1043456  }
  0xfe   : >> { %v417_v26 = vpop.permute.xlu0 %416  ;;  %v984_v29 = vpop.permute.xlu1 %983 }
  0xff   : >> { %v603_v53 = vsel %vm599_vm13, %v598_v35, %v417_v26  ;;  %v1061_v54 = vsel %vm604_vm14, %v1057_v32, %v984_v29 }
 0x102   : >> { %v982_v12 = vpop.permute.xlu0 %981  ;;  %v447_v37 = vpop.permute.xlu1 %446 }
 0x103   : >> { %v1059_v28 = vsel %vm599_vm13, %v1055_v14, %v982_v12  ;;  %v611_v24 = vsel %vm609_vm15, %v606_v59, %v447_v37  ;;  %vm3034_vm13 = vmmov 1  }
 0x106   : >> { %v439_v52 = vpop.permute.xlu0 %438  ;;  %v988_v30 = vpop.permute.xlu1 %987 }
 0x107   : >> { %v608_v15 = vsel %vm604_vm14, %v603_v53, %v439_v52  ;;  %v1065_v18 = vsel %vm609_vm15, %v1061_v54, %v988_v30 }
 0x10a   : >> { %v986_v40 = vpop.permute.xlu0 %985  ;;  %v471_v16 = vpop.permute.xlu1 %470 }
 0x10b   : >> { %v1063_v43 = vsel %vm604_vm14, %v1059_v28, %v986_v40  ;;  %v616_v63 = vsel %vm614_vm0, %v611_v24, %v471_v16  ;;  %vm2833_vm14 = vmpackc.low %vm1321_vm12, %vm3034_vm13 }
 0x10e   : >> { %v449_v56 = vpop.permute.xlu0 %448  ;;  %v992_v8 = vpop.permute.xlu1 %991 }
 0x10f   : >> { %v1069_v49 = vsel %vm614_vm0, %v1065_v18, %v992_v8  ;;  %v613_v62 = vsel %vm609_vm15, %v608_v15, %v449_v56  ;;  %v4266_v18 = vld [vmem:[#allocation13_spill] sm:$0xff] }
 0x112   : >> { %v990_v38 = vpop.permute.xlu0 %989  ;;  %v481_v22 = vpop.permute.xlu1 %480 }
 0x113   : >> { %v621_v39 = vsel %vm619_vm2, %v616_v63, %v481_v22  ;;  %v1067_v58 = vsel %vm609_vm15, %v1063_v43, %v990_v38  ;;  %vm1505_vm15 = vcmask 59392  }
 0x116   : >> { %v473_v57 = vpop.permute.xlu0 %472  ;;  %v996_v44 = vpop.permute.xlu1 %995 }
 0x117   : >> { %v1073_v7 = vsel %vm619_vm2, %v1069_v49, %v996_v44  ;;  %v618_v59 = vsel %vm614_vm0, %v613_v62, %v473_v57  ;;  %v4267_v62 = vld [vmem:[#allocation9_spill] sm:$0xff] }
 0x11a   : >> { %v994_v9 = vpop.permute.xlu0 %993  ;;  %v495_v31 = vpop.permute.xlu1 %494 }
 0x11b   : >> { %v626_v45 = vsel %vm624_vm3, %v621_v39, %v495_v31  ;;  %v1071_v54 = vsel %vm614_vm0, %v1067_v58, %v994_v9 }
 0x11e   : >> { %v483_v5 = vpop.permute.xlu0 %482  ;;  %v1000_v6 = vpop.permute.xlu1 %999 }
 0x11f   : >> { %v1077_v32 = vsel %vm624_vm3, %v1073_v7, %v1000_v6  ;;  %v623_v12 = vsel %vm619_vm2, %v618_v59, %v483_v5 }
 0x122   : >> { %v998_v25 = vpop.permute.xlu0 %997  ;;  %v517_v60 = vpop.permute.xlu1 %516 }
 0x123   : >> { %v631_v50 = vsel %vm629_vm4, %v626_v45, %v517_v60  ;;  %v1075_v52 = vsel %vm619_vm2, %v1071_v54, %v998_v25  ;;  %v3834_v54 = vld [vmem:[%s4226_s3 + $0x8] sm:$0xf] (%p260_p4) }
 0x126   : >> { %v497_v27 = vpop.permute.xlu0 %496  ;;  %v1011_v33 = vpop.permute.xlu1 %1010 }
 0x127   : >> { %v1081_v26 = vsel %vm629_vm4, %v1077_v32, %v1011_v33  ;;  %v628_v15 = vsel %vm624_vm3, %v623_v12, %v497_v27  ;;  %v3839_v12 = vld [vmem:[%s4226_s3 + $0xc] sm:$0xf] (%p260_p4) }
 0x12a   : >> { %v1002_v48 = vpop.permute.xlu0 %1001  ;;  %v527_v42 = vpop.permute.xlu1 %526 }
 0x12b   : >> { %v636_v21 = vsel %vm634_vm5, %v631_v50, %v527_v42  ;;  %v1079_v40 = vsel %vm624_vm3, %v1075_v52, %v1002_v48  ;;  %v3874_v52 = vld [vmem:[%s4226_s3 + $0x28] sm:$0xf] (%p260_p4) }
 0x12e   : >> { %v519_v51 = vpop.permute.xlu0 %518  ;;  %v1017_v19 = vpop.permute.xlu1 %1016 }
 0x12f   : >> { %v1085_v28 = vsel %vm634_vm5, %v1081_v26, %v1017_v19  ;;  %v633_v43 = vsel %vm629_vm4, %v628_v15, %v519_v51  ;;  %v4263_v19 = vld [vmem:[#allocation10_spill] sm:$0xff]  ;;  %v3879_v15 = vld [vmem:[%s4226_s3 + $0x2c] sm:$0xf] (%p260_p4) }
 0x132   : >> { %v1013_v55 = vpop.permute.xlu0 %1012  ;;  %v551_v17 = vpop.permute.xlu1 %550 }
 0x133   : >> { %v641_v35 = vsel %vm639_vm6, %v636_v21, %v551_v17  ;;  %v1083_v8 = vsel %vm629_vm4, %v1079_v40, %v1013_v55  ;;  %v4264_v55 = vld [vmem:[#allocation12_spill] sm:$0xff]  ;;  %v3889_v40 = vld [vmem:[%s4226_s3 + $0x34] sm:$0xf] (%p260_p4) }
 0x136   : >> { %v529_v36 = vpop.permute.xlu0 %528  ;;  %v1025_v34 = vpop.permute.xlu1 %1024 }
 0x137   : >> { %v1089_v30 = vsel %vm639_vm6, %v1085_v28, %v1025_v34  ;;  %v638_v38 = vsel %vm634_vm5, %v633_v43, %v529_v36  ;;  %v3864_v28 = vld [vmem:[%s4226_s3 + $0x20] sm:$0xf] (%p260_p4)  ;;  %v3894_v43 = vld [vmem:[%s4226_s3 + $0x38] sm:$0xf] (%p260_p4) }
 0x13a   : >> { %v1019_v46 = vpop.permute.xlu0 %1018  ;;  %v561_v20 = vpop.permute.xlu1 %560 }
 0x13b   : >> { %v646_v11 = vsel %vm644_vm7, %v641_v35, %v561_v20  ;;  %v1087_v44 = vsel %vm634_vm5, %v1083_v8, %v1019_v46  ;;  %v3909_v8 = vld [vmem:[%s4226_s3 + $0x44] sm:$0xf] (%p260_p4) }
 0x13e   : >> { %v553_v23 = vpop.permute.xlu0 %552  ;;  %v1032_v47 = vpop.permute.xlu1 %1031 }
 0x13f   : >> { %v1093_v16 = vsel %vm644_vm7, %v1089_v30, %v1032_v47  ;;  %v643_v9 = vsel %vm639_vm6, %v638_v38, %v553_v23  ;;  %v3884_v30 = vld [vmem:[%s4226_s3 + $0x30] sm:$0xf] (%p260_p4)  ;;  %v3914_v38 = vld [vmem:[%s4226_s3 + $0x48] sm:$0xf] (%p260_p4) }
 0x142   : >> { %v1027_v2 = vpop.permute.xlu0 %1026  ;;  %v575_v10 = vpop.permute.xlu1 %574 }
 0x143   : >> { %v651_v53 = vsel %vm649_vm8, %v646_v11, %v575_v10  ;;  %v1091_v5 = vsel %vm639_vm6, %v1087_v44, %v1027_v2  ;;  %v3929_v44 = vld [vmem:[%s4226_s3 + $0x54] sm:$0xf] (%p260_p4) }
 0x146   : >> { %v563_v13 = vpop.permute.xlu0 %562  ;;  %v1036_v61 = vpop.permute.xlu1 %1035 }
 0x147   : >> { %v1097_v22 = vsel %vm649_vm8, %v1093_v16, %v1036_v61  ;;  %v648_v6 = vsel %vm644_vm7, %v643_v9, %v563_v13  ;;  %v3899_v16 = vld [vmem:[%s4226_s3 + $0x3c] sm:$0xf] (%p260_p4)  ;;  %v3934_v9 = vld [vmem:[%s4226_s3 + $0x58] sm:$0xf] (%p260_p4) }
 0x14a   : >> { %v1034_v41 = vpop.permute.xlu0 %1033 }
 0x14b   : >> { %v1095_v25 = vsel %vm644_vm7, %v1091_v5, %v1034_v41  ;;  %v4265_v41 = vld [vmem:[#allocation11_spill] sm:$0xff] }
 0x14c   : > { %v3944_v5 = vld [vmem:[%s4226_s3 + $0x60] sm:$0xf] (%p260_p4) }
 0x14e   : >> { %v577_v14 = vpop.permute.xlu0 %576 }
 0x14f   : >> { %v853_v29 = vpop.permute.xlu1 %852  ;;  %v653_v60 = vsel %vm649_vm8, %v648_v6, %v577_v14  ;;  %v3949_v6 = vld [vmem:[%s4227_s4] ss:$0 sm:$0xff] (%p260_p4) }
 0x150   : >> { %v858_v37 = vsel %vm856_vm9, %v651_v53, %v853_v29  ;;  %v3824_v53 = vld [vmem:[%s4226_s3] sm:$0xf] (%p260_p4)  ;;  %v3829_v29 = vld [vmem:[%s4226_s3 + $0x4] sm:$0xf] (%p260_p4)  ;;  %4268 = vst [vmem:[#allocation16_spill] sm:$0xff] (%p260_p4), %v3949_v6 }
 0x151   : >> { %2774 = vmatprep.mubr.msk.bf16.mxu0 %vm890_vm10, %v858_v37  ;;  %v3869_v37 = vld [vmem:[%s4226_s3 + $0x24] sm:$0xf] (%p260_p4) }
 0x152   : >> { %v1038_v56 = vpop.permute.xlu0 %1037 }
 0x153   : >> { %v1250_v57 = vpop.permute.xlu1 %1249  ;;  %v1099_v33 = vsel %vm649_vm8, %v1095_v25, %v1038_v56  ;;  %v3904_v56 = vld [vmem:[%s4226_s3 + $0x40] sm:$0xf] (%p260_p4) }
 0x154   : >> { %v1254_v31 = vsel %vm856_vm9, %v1097_v22, %v1250_v57  ;;  %v3919_v22 = vld [vmem:[%s4226_s3 + $0x4c] sm:$0xf] (%p260_p4)  ;;  %v3924_v57 = vld [vmem:[%s4226_s3 + $0x50] sm:$0xf] (%p260_p4) }
 0x155   : >> { %2788 = vmatprep.mubr.msk.bf16.mxu1 %vm890_vm10, %v1254_v31  ;;  %v3939_v31 = vld [vmem:[%s4226_s3 + $0x5c] sm:$0xf] (%p260_p4) }
 0x156   : >> { %v855_v27 = vpop.permute.xlu0 %854 }
 0x157   : >> { %v860_v48 = vsel %vm856_vm9, %v653_v60, %v855_v27  ;;  %v1252_v42 = vpop.permute.xlu1 %1251 }
 0x158   : >> { %v1256_v51 = vsel %vm856_vm9, %v1099_v33, %v1252_v42  ;;  %2775 = vmatmul.mubr.msk.bf16.vlgmr.msra.gmra.mrb[0].mxu0 %vm890_vm10, %v860_v48 }
 0x159   : >> { %2789 = vmatmul.mubr.msk.bf16.vlgmr.msra.gmra.mrb[0].mxu1 %vm890_vm10, %v1256_v51  ;;  %2800 = vmatprep.mubr.msk.f32.mxu0 %vm1314_vm11, %v4263_v19 }
 0x15a   : >> { %2811 = vmatprep.mubr.msk.f32.mxu1 %vm1314_vm11, %v4264_v55 }
 0x22b   : >> { %v2776_v17 = vpop.f32.mrb[0].mxu0 }
 0x22c   : >> { %v936_v36 = vpop.f32.mrb[1].mxu0  ;;  %v2790_v34 = vpop.f32.mrb[0].mxu1 }
 0x22d   : >> { %v1312_v46 = vmax.f32 %v2776_v17, %v2790_v34  ;;  %v2777_v20 = vpop.f32.mrb[2].mxu0  ;;  %v1295_v23 = vpop.f32.mrb[1].mxu1 }
 0x22e   : >> { %v1310_v47 = vmax.f32 %v936_v36, %v1295_v23  ;;  %v939_v2 = vpop.f32.mrb[3].mxu0  ;;  %v2791_v10 = vpop.f32.mrb[2].mxu1 }
 0x22f   : >> { %v1313_v13 = vmax.f32 %v2777_v20, %v2791_v10  ;;  %v1298_v24 = vpop.f32.mrb[3].mxu1 }
 0x230   : >> { %v1311_v63 = vmax.f32 %v939_v2, %v1298_v24 }
 0x231   : >> { %v2832_v39 = vpack.c.bf16 %v1313_v13, %v1312_v46 }
 0x232   : >> { %v2828_v45 = vpack.c.bf16 %v1311_v63, %v1310_v47 }
 0x234   : >> { %2829 = vmatprep.subr.bf16.mxu0 %v2828_v45  ;;  %2839 = vmatprep.subr.bf16.mxu1 %v2828_v45 }
 0x235   : >> { %2831 = vmatpush3.bf16.msra.mxu0 %v2828_v45  ;;  %2841 = vmatpush3.bf16.msra.mxu1 %v2828_v45 }
 0x236   : >> { %2834 = vmatprep.subr.msk.bf16.mxu0 %vm2833_vm14, %v2832_v39  ;;  %2844 = vmatprep.subr.msk.bf16.mxu1 %vm2833_vm14, %v2832_v39 }
 0x239   : >> { %2837 = vmatpush3.bf16.msk.msra.mxu0 %vm2833_vm14, %v2832_v39  ;;  %2847 = vmatpush3.bf16.msk.msra.mxu1 %vm2833_vm14, %v2832_v39 }
 0x23c   : >> { %2801 = vmatmul.mubr.msk.f32.vlgmr.msra.gmra.mrb[4].mxu0 %vm1314_vm11, %v4265_v41  ;;  %2812 = vmatmul.mubr.msk.f32.vlgmr.msra.gmra.mrb[4].mxu1 %vm1314_vm11, %v4266_v18 }
 0x30f   : >> { %v2802_v50 = vpop.f32.mrb[4].mxu0  ;;  %v2813_v61 = vpop.f32.mrb[4].mxu1 }
 0x310   : >> { %v1482_v49 = vmax.f32 %v2802_v50, %v2813_v61  ;;  %v1391_v21 = vpop.f32.mrb[5].mxu0  ;;  %v1472_v7 = vpop.f32.mrb[5].mxu1 }
 0x311   : >> { %v1481_v35 = vmax.f32 %v1391_v21, %v1472_v7 }
 0x312   : >> { %v1490_v32 = vadd.f32 %v4267_v62, %v1482_v49 }
 0x313   : >> { %v1489_v11 = vadd.f32 %v4267_v62, %v1481_v35 }
 0x314   : >> { %2956 = vtanh.f32 %v1490_v32 }
 0x315   : >> { %2958 = vtanh.f32 %v1489_v11 }
 0x31c   : > { %262 = sbr.rel (!%p260_p4) target bundleno = 27 (0x1b), region = 98 }
 0x31e   : >> { %v2957_v14 = vpop.eup %2956 }
 0x31f   : >> { %v2959_v58 = vpop.eup %2958  ;;  %v2723_v59 = vpack.c.bf16 %v2957_v14, %v2957_v14 }
 0x320   : >> { %v2722_v26 = vpack.c.bf16 %v2959_v58, %v2959_v58 }
 0x321   : >> { %1506 = vst.msk [vmem:[%s1502_s24 + $0x4] sm:$0x7] %vm1505_vm15, %v2723_v59 }
 0x322   : >> { %1504 = vst.msk [vmem:[%s1502_s24] sm:$0xf] %vm1503_vm1, %v2722_v26 }
 0x323 LB: >> { %s2726_s8 = sshll.u32 %s3014_s7, 4  ;;  %s3035_s19 = smov 16   ;;  %vm1726_vm2 = vcmask 64512   ;;  %vm1730_vm3 = vcmask 130048   ;;  %vm1736_vm4 = vcmask 261120   ;;  %vm1739_vm5 = vcmask 326656   ;;  %s3014_s7 = sphi %s3951_s7, %s1538_s7  }
 0x324   : >> { %s3957_s23 = scalar_lea.vmem [#allocation2], %s2726_s8  ;;  %s3036_s9 = smov 8   ;;  %vm1745_vm6 = vcmask 457728   ;;  %vm1748_vm7 = vcmask 523264   ;;  %vm1751_vm8 = vcmask 588800   ;;  %vm1754_vm10 = vcmask 654336  }
 0x325   : >> { %s3037_s10 = smov 24   ;;  %s3038_s11 = smov 32   ;;  %vm1757_vm11 = vcmask 719872   ;;  %vm1760_vm13 = vcmask 785408   ;;  %vm1763_vm14 = vcmask 850944   ;;  %vm1766_vm15 = vcmask 916480  }
 0x326   : >> { %s3040_s12 = smov 40   ;;  %s3041_s13 = smov 48   ;;  %vm1769_vm1 = vcmask 982016  }
 0x327   : >> { %s3042_s14 = smov 56   ;;  %s3043_s15 = smov 64  }
 0x328   : >> { %s3044_s16 = smov 72   ;;  %s3045_s17 = smov 80  }
 0x329   : >> { %v2642_v25 = vld [vmem:[%s3957_s23 + $0x18] sm:$0xe]  ;;  %v2643_v60 = vld [vmem:[%s3957_s23 + $0x1c] sm:$0x7]  ;;  %v1545_v42 = vld [vmem:[%s3957_s23 + $0x4] sm:$0x3] }
 0x32a   : >> { %v2644_v27 = vld [vmem:[%s3957_s23 + $0x18] sm:$0xc]  ;;  %v3962_v33 = vcombine.low %v2642_v25, %v2643_v60  ;;  %v3965_v48 = vld [vmem:[%s3957_s23 + $0x1c] sm:$0x3]  ;;  %v1546_v51 = vld [vmem:[%s3957_s23] sm:$0xe] }
 0x32b   : >> { %v3970_v19 = vld [vmem:[%s3957_s23 + $0x4] sm:$0x7]  ;;  %v2655_v55 = vcombine.low %v1546_v51, %v1545_v42  ;;  %v3973_v17 = vld [vmem:[%s3957_s23] sm:$0xf]  ;;  %v3988_v10 = vcombine.low %v2642_v25, %v3965_v48  ;;  %v3994_v41 = vld [vmem:[%s3957_s23 + $0x8] sm:$0xf]  ;;  %v3996_v18 = vcombine.low %v2644_v27, %v2643_v60 }
 0x32c   : >> { %v3976_v36 = vld [vmem:[%s3957_s23 + $0x4] sm:$0x1]  ;;  %v1791_v34 = vrot.slane %v3962_v33, 1  ;;  %v2656_v46 = vcombine.low %v1546_v51, %v3970_v19  ;;  %v2654_v23 = vcombine.low %v3973_v17, %v1545_v42  ;;  %v2650_v2 = vld [vmem:[%s3957_s23 + $0x20] sm:$0xe]  ;;  %s3046_s20 = smov 88  }
 0x32d   : >> { %v3984_v47 = vld [vmem:[%s3957_s23 + $0x24] sm:$0x3]  ;;  %v1609_v13 = vrot.slane %v2655_v55, 1  ;;  %v2625_v61 = vld [vmem:[%s3957_s23 + $0xc] sm:$0x3]  ;;  %v1780_v21 = vshrl.u32 %v3988_v10, 16 }
 0x32e   : >> { %v2651_v24 = vld [vmem:[%s3957_s23 + $0x24] sm:$0x7]  ;;  %v2675_v63 = vcombine.low %v2650_v2, %v3984_v47  ;;  %1792 = vrot.lane.b32.xlu1 %v1791_v34, %s3035_s19  ;;  %v1600_v39 = vshll.u32 %v2654_v23, 16  ;;  %v1616_v50 = vshrl.u32 %v2656_v46, 16  ;;  %v2626_v49 = vld [vmem:[%s3957_s23 + $0x8] sm:$0xe]  ;;  %v2659_v32 = vcombine.low %v3994_v41, %v2625_v61 }
 0x32f   : >> { %v2676_v45 = vcombine.low %v2650_v2, %v2651_v24  ;;  %1610 = vrot.lane.b32.xlu0 %v1609_v13, %s3035_s19  ;;  %v1619_v7 = vshll.u32 %v2656_v46, 16  ;;  %v2652_v35 = vld [vmem:[%s3957_s23 + $0x20] sm:$0xc]  ;;  %v2660_v11 = vcombine.low %v2626_v49, %v2625_v61  ;;  %v4007_v14 = vld [vmem:[%s3957_s23 + $0xc] sm:$0x7]  ;;  %v1598_v58 = vshrl.u32 %v2654_v23, 16 }
 0x330   : >> { %v1602_v59 = vrot.slane %v1600_v39, 1  ;;  %v1830_v26 = vshrl.u32 %v2675_v63, 16  ;;  %v1832_v25 = vshll.u32 %v2675_v63, 16  ;;  %v1642_v27 = vshrl.u32 %v2659_v32, 16  ;;  %v2648_v61 = vld [vmem:[%s3957_s23 + $0x24] sm:$0x1] }
 0x331   : >> { %v4003_v62 = vrot.slane %v2676_v45, 1  ;;  %v4011_v60 = vrot.slane %v2660_v11, 1  ;;  %v1644_v42 = vshll.u32 %v2659_v32, 16  ;;  %v1782_v51 = vshll.u32 %v3988_v10, 16  ;;  %v2647_v45 = vld [vmem:[%s3957_s23 + $0x20] sm:$0xf] }
 0x332   : >> { %v2677_v55 = vcombine.low %v2652_v35, %v2651_v24  ;;  %v1834_v34 = vrot.slane %v1832_v25, 1  ;;  %v1798_v46 = vshrl.u32 %v3996_v18, 16  ;;  %v1801_v23 = vshll.u32 %v3996_v18, 16  ;;  %s3047_s21 = smov 96   ;;  %s3048_s22 = smov 104  }
 0x333   : >> { %2093 = vrot.lane.b32.xlu1 %v4003_v62, %s3035_s19  ;;  %v2661_v2 = vcombine.low %v2626_v49, %v4007_v14  ;;  %2015 = vrot.lane.b32.xlu0 %v4011_v60, %s3035_s19  ;;  %v1646_v13 = vrot.slane %v1644_v42, 1  ;;  %v1603_v63 = vor.u32 %v1602_v59, %v1598_v58  ;;  %v1784_v39 = vrot.slane %v1782_v51, 1  ;;  %s3049_s24 = smov 112   ;;  %s3050_s25 = smov 120  }
 0x334   : >> { %v4023_v24 = vor.u32 %v1834_v34, %v1830_v26  ;;  %v1618_v35 = vrot.slane %v1616_v50, 1  ;;  %v1621_v11 = vrot.slane %v1619_v7, 2  ;;  %v1800_v25 = vrot.slane %v1798_v46, 1  ;;  %v2695_v26 = vld [vmem:[%s3957_s23 + $0x2c] sm:$0x1]  ;;  %s2711_s27 = sshll.u32 %s3014_s7, 2 }
 0x335   : >> { %v4021_v32 = vor.u32 %v1646_v13, %v1642_v27  ;;  %v1803_v20 = vrot.slane %v1801_v23, 2  ;;  %v1848_v6 = vshrl.u32 %v2677_v55, 16  ;;  %v1851_v49 = vshll.u32 %v2677_v55, 16  ;;  %v4029_v27 = vld [vmem:[%s3957_s23 + $0x28] sm:$0xf]  ;;  %s2378_s28 = scalar_lea.vmem %s3156_s26, %s2711_s27  ;;  %s1538_s7 = sadd.s32 1, %s3014_s7  }
 0x336   : >> { %v1785_v58 = vor.u32 %v1784_v39, %v1780_v21  ;;  %v1660_v59 = vshrl.u32 %v2661_v2, 16  ;;  %v1663_v42 = vshll.u32 %v2661_v2, 16  ;;  %v4026_v51 = vcombine.low %v2647_v45, %v2648_v61  ;;  %v1548_v21 = vld [vmem:[%s3957_s23] sm:$0xc]  ;;  %p1535_p5 = scmp.ge.s32.totalorder %s1538_s7, 5  }
 0x337   : >> { %2013 = vrot.lane.b32.xlu1 %v4021_v32, %s3036_s9  ;;  %1604 = vrot.lane.b32.xlu0 %v1603_v63, %s3036_s9  ;;  %v1804_v34 = vor.u32 %v1803_v20, %v1800_v25  ;;  %v1622_v50 = vor.u32 %v1621_v11, %v1618_v35  ;;  %v1850_v7 = vrot.slane %v1848_v6, 1  ;;  %v1853_v46 = vrot.slane %v1851_v49, 2  ;;  %v2628_v11 = vld [vmem:[%s3957_s23 + $0x8] sm:$0xc] }
 0x338   : >> { %v1662_v55 = vrot.slane %v1660_v59, 1  ;;  %v1665_v23 = vrot.slane %v1663_v42, 2  ;;  %v1813_v13 = vshrl.u32 %v4026_v51, 16  ;;  %v2700_v2 = vcombine.low %v4029_v27, %v2695_v26 }
 0x339   : >> { %v4036_v63 = vor.u32 %v1853_v46, %v1850_v7  ;;  %v2657_v39 = vcombine.low %v1548_v21, %v3970_v19  ;;  %v1816_v61 = vshll.u32 %v4026_v51, 16  ;;  %v2662_v25 = vcombine.low %v2628_v11, %v4007_v14  ;;  %v2624_v14 = vld [vmem:[%s3957_s23 + $0xc] sm:$0x1]  ;;  %v4055_v7 = vld [vmem:[%s3957_s23 + $0x14] sm:$0x3] }
 0x33a   : >> { %v4039_v6 = vor.u32 %v1665_v23, %v1662_v55  ;;  %v1815_v20 = vrot.slane %v1813_v13, 7  ;;  %v2103_v35 = vshrl.u32 %v2700_v2, 16  ;;  %v2106_v59 = vshll.u32 %v2700_v2, 16  ;;  %v2696_v23 = vld [vmem:[%s3957_s23 + $0x2c] sm:$0x3] }
 0x33b   : >> { %2091 = vrot.lane.b32.xlu1 %v4023_v24, %s3036_s9  ;;  %1786 = vrot.lane.b32.xlu0 %v1785_v58, %s3036_s9  ;;  %v1628_v49 = vrot.slane %v2657_v39, 2  ;;  %v4046_v26 = vrot.slane %v2662_v25, 2  ;;  %v3039_v46 = vmov 0   ;;  %v4060_v55 = vcombine.low %v2647_v45, %v3984_v47  ;;  %v2631_v13 = vld [vmem:[%s3957_s23 + $0x10] sm:$0xf] }
 0x33c   : >> { %v1818_v19 = vor.u32 %v1816_v61, %v1815_v20  ;;  %v2105_v58 = vrot.slane %v2103_v35, 7  ;;  %1962 = vmatprep.subr.bf16.mxu0 %v3039_v46  ;;  %2173 = vmatprep.subr.bf16.mxu1 %v3039_v46  ;;  %v2679_v21 = vcombine.low %v3834_v54, %v3839_v12  ;;  %v4070_v2 = vcombine.low %v3994_v41, %v2624_v14  ;;  %v2632_v45 = vld [vmem:[%s3957_s23 + $0x14] sm:$0x1]  ;;  %v2698_v14 = vld [vmem:[%s3957_s23 + $0x2c] sm:$0x7] }
 0x33d   : >> { %v2664_v47 = vcombine.low %v2631_v13, %v4055_v7  ;;  %v2680_v20 = vcombine.low %v3844_v0, %v3849_v1  ;;  %v2701_v41 = vcombine.low %v4029_v27, %v2696_v23  ;;  %v4082_v61 = vcombine.low %v2631_v13, %v2632_v45  ;;  %v2634_v13 = vld [vmem:[%s3957_s23 + $0x10] sm:$0xe] }
 0x33e   : >> { %v2108_v42 = vor.u32 %v2106_v59, %v2105_v58  ;;  %v2681_v25 = vcombine.low %v3854_v3, %v3859_v4  ;;  %v2682_v59 = vcombine.low %v3864_v28, %v3869_v37 }
 0x33f   : >> { %1805 = vrot.lane.b32.xlu1 %v1804_v34, %s3037_s10  ;;  %1623 = vrot.lane.b32.xlu0 %v1622_v50, %s3037_s10  ;;  %v2678_v34 = vcombine.low %v3824_v53, %v3829_v29  ;;  %v4052_v50 = vld [vmem:[%s3957_s23 + $0x28] sm:$0xe]  ;;  %v1688_v11 = vshll.u32 %v2664_v47, 16 }
 0x340   : >> { %v2702_v39 = vcombine.low %v4052_v50, %v2696_v23  ;;  %v2699_v23 = vld [vmem:[%s3957_s23 + $0x28] sm:$0xc] }
 0x341   : >> { %1963 = vmatpush1.bf16.msra.mxu0 %v2678_v34  ;;  %2174 = vmatpush1.bf16.msra.mxu1 %v2678_v34  ;;  %v1690_v58 = vrot.slane %v1688_v11, 1 }
 0x342   : >> { %1964 = vmatprep.subr.bf16.mxu0 %v3039_v46  ;;  %2175 = vmatprep.subr.bf16.mxu1 %v3039_v46  ;;  %v2122_v35 = vshll.u32 %v2702_v39, 16 }
 0x343   : >> { %2095 = vrot.lane.b32.xlu1 %v4036_v63, %s3037_s10  ;;  %2017 = vrot.lane.b32.xlu0 %v4039_v6, %s3037_s10 }
 0x344   : >> { %v2124_v27 = vrot.slane %v2122_v35, 1 }
 0x345   : >> { %1965 = vmatpush1.bf16.msra.mxu0 %v2679_v21  ;;  %2176 = vmatpush1.bf16.msra.mxu1 %v2679_v21  ;;  %v2635_v21 = vld [vmem:[%s3957_s23 + $0x14] sm:$0x7] }
 0x346   : >> { %1966 = vmatprep.subr.bf16.mxu0 %v3039_v46  ;;  %2177 = vmatprep.subr.bf16.mxu1 %v3039_v46  ;;  %v2666_v45 = vcombine.low %v2634_v13, %v2635_v21 }
 0x347   : >> { %1819 = vrot.lane.b32.xlu1 %v1818_v19, %s3038_s11  ;;  %1629 = vrot.lane.b32.xlu0 %v1628_v49, %s3038_s11  ;;  %v2120_v19 = vshrl.u32 %v2702_v39, 16  ;;  %v1686_v49 = vshrl.u32 %v2664_v47, 16  ;;  %v2703_v39 = vcombine.low %v4052_v50, %v2698_v14  ;;  %v2704_v47 = vcombine.low %v2699_v23, %v2698_v14 }
 0x348   : >> { %v2684_v50 = vcombine.low %v3884_v30, %v3889_v40  ;;  %v1704_v11 = vshrl.u32 %v2666_v45, 16  ;;  %v2686_v14 = vcombine.low %v3904_v56, %v3909_v8 }
 0x349   : >> { %1967 = vmatpush1.bf16.msra.mxu0 %v2680_v20  ;;  %2178 = vmatpush1.bf16.msra.mxu1 %v2680_v20  ;;  %v4095_v34 = vor.u32 %v1690_v58, %v1686_v49  ;;  %v2131_v20 = vrot.slane %v2703_v39, 1  ;;  %v2636_v58 = vld [vmem:[%s3957_s23 + $0x10] sm:$0xc] }
 0x34a   : >> { %1968 = vmatprep.subr.bf16.mxu0 %v3039_v46  ;;  %2179 = vmatprep.subr.bf16.mxu1 %v3039_v46 }
 0x34b   : >> { %2109 = vrot.lane.b32.xlu1 %v2108_v42, %s3038_s11  ;;  %2019 = vrot.lane.b32.xlu0 %v4046_v26, %s3038_s11  ;;  %v2125_v42 = vor.u32 %v2124_v27, %v2120_v19  ;;  %v2685_v19 = vcombine.low %v3894_v43, %v3899_v16  ;;  %v1706_v27 = vrot.slane %v1704_v11, 1 }
 0x34d   : >> { %1969 = vmatpush1.bf16.msra.mxu0 %v2681_v25  ;;  %2180 = vmatpush1.bf16.msra.mxu1 %v2681_v25  ;;  %v1707_v25 = vshll.u32 %v2666_v45, 16 }
 0x34e   : >> { %1970 = vmatprep.subr.bf16.mxu0 %v3039_v46  ;;  %2181 = vmatprep.subr.bf16.mxu1 %v3039_v46 }
 0x34f   : >> { %1824 = vrot.lane.b32.xlu1 %v4060_v55, %s3040_s12  ;;  %1636 = vrot.lane.b32.xlu0 %v4070_v2, %s3040_s12  ;;  %v1709_v49 = vrot.slane %v1707_v25, 2 }
 0x351   : >> { %1971 = vmatpush1.bf16.msra.mxu0 %v2682_v59  ;;  %2182 = vmatpush1.bf16.msra.mxu1 %v2682_v59  ;;  %v2639_v59 = vld [vmem:[%s3957_s23 + $0x18] sm:$0xf] }
 0x352   : >> { %1972 = vmatprep.subr.bf16.mxu0 %v3039_v46  ;;  %2183 = vmatprep.subr.bf16.mxu1 %v3039_v46  ;;  %v4130_v39 = vcombine.low %v2639_v59, %v3965_v48  ;;  %v2688_v48 = vcombine.low %v3924_v57, %v3929_v44 }
 0x353   : >> { %2114 = vrot.lane.b32.xlu1 %v2701_v41, %s3040_s12  ;;  %2021 = vrot.lane.b32.xlu0 %v4082_v61, %s3040_s12  ;;  %v2138_v41 = vshrl.u32 %v2704_v47, 16 }
 0x357   : >> { %1836 = vrot.lane.b32.xlu1 %v4023_v24, %s3041_s13  ;;  %1648 = vrot.lane.b32.xlu0 %v4021_v32, %s3041_s13  ;;  %v2683_v24 = vcombine.low %v3874_v52, %v3879_v15  ;;  %v2665_v32 = vcombine.low %v2634_v13, %v4055_v7  ;;  %v2141_v7 = vshll.u32 %v2704_v47, 16  ;;  %v1710_v13 = vor.u32 %v1709_v49, %v1706_v27 }
 0x359   : >> { %1973 = vmatpush1.bf16.msra.mxu0 %v2683_v24  ;;  %2184 = vmatpush1.bf16.msra.mxu1 %v2683_v24  ;;  %v4114_v35 = vrot.slane %v2665_v32, 1  ;;  %v2033_v32 = vshrl.u32 %v4130_v39, 16 }
 0x35a   : >> { %1974 = vmatprep.subr.bf16.mxu0 %v3039_v46  ;;  %2185 = vmatprep.subr.bf16.mxu1 %v3039_v46 }
 0x35b   : >> { %2126 = vrot.lane.b32.xlu1 %v2125_v42, %s3041_s13  ;;  %2023 = vrot.lane.b32.xlu0 %v4095_v34, %s3041_s13  ;;  %v2667_v42 = vcombine.low %v2636_v58, %v2635_v21  ;;  %v2687_v21 = vcombine.low %v3914_v38, %v3919_v22 }
 0x35d   : >> { %1975 = vmatpush1.bf16.msra.mxu0 %v2684_v50  ;;  %2186 = vmatpush1.bf16.msra.mxu1 %v2684_v50  ;;  %v1716_v47 = vrot.slane %v2667_v42, 2  ;;  %v2048_v50 = vshll.u32 %v3962_v33, 16 }
 0x35e   : >> { %1976 = vmatprep.subr.bf16.mxu0 %v3039_v46  ;;  %2187 = vmatprep.subr.bf16.mxu1 %v3039_v46 }
 0x35f   : >> { %1842 = vrot.lane.b32.xlu1 %v4003_v62, %s3042_s14  ;;  %1654 = vrot.lane.b32.xlu0 %v4011_v60, %s3042_s14  ;;  %v2140_v62 = vrot.slane %v2138_v41, 1  ;;  %v2143_v60 = vrot.slane %v2141_v7, 2  ;;  %v2690_v7 = vcombine.low %v3944_v5, %v3944_v5  ;;  %v2050_v25 = vrot.slane %v2048_v50, 2 }
 0x361   : >> { %1977 = vmatpush1.bf16.msra.mxu0 %v2685_v19  ;;  %2188 = vmatpush1.bf16.msra.mxu1 %v2685_v19  ;;  %v2144_v23 = vor.u32 %v2143_v60, %v2140_v62  ;;  %v1960_v19 = vsel %vm1321_vm12, %v2690_v7, 0 }
 0x362   : >> { %1978 = vmatprep.subr.bf16.mxu0 %v3039_v46  ;;  %2189 = vmatprep.subr.bf16.mxu1 %v3039_v46 }
 0x363   : >> { %2132 = vrot.lane.b32.xlu1 %v2131_v20, %s3042_s14  ;;  %2025 = vrot.lane.b32.xlu0 %v4114_v35, %s3042_s14  ;;  %v2689_v20 = vcombine.low %v3934_v9, %v3939_v31 }
 0x365   : >> { %1979 = vmatpush1.bf16.msra.mxu0 %v2686_v14  ;;  %2190 = vmatpush1.bf16.msra.mxu1 %v2686_v14 }
 0x366   : >> { %1980 = vmatprep.subr.bf16.mxu0 %v3039_v46  ;;  %2191 = vmatprep.subr.bf16.mxu1 %v3039_v46 }
 0x367   : >> { %1855 = vrot.lane.b32.xlu1 %v4036_v63, %s3043_s15  ;;  %1667 = vrot.lane.b32.xlu0 %v4039_v6, %s3043_s15  ;;  %v2035_v63 = vshll.u32 %v4130_v39, 16  ;;  %v2640_v6 = vld [vmem:[%s3957_s23 + $0x1c] sm:$0x1] }
 0x368   : >> { %v2668_v24 = vcombine.low %v2639_v59, %v2640_v6 }
 0x369   : >> { %1981 = vmatpush1.bf16.msra.mxu0 %v2687_v21  ;;  %2192 = vmatpush1.bf16.msra.mxu1 %v2687_v21  ;;  %v2037_v45 = vrot.slane %v2035_v63, 1 }
 0x36a   : >> { %1982 = vmatprep.subr.bf16.mxu0 %v3039_v46  ;;  %2193 = vmatprep.subr.bf16.mxu1 %v3039_v46 }
 0x36b   : >> { %2145 = vrot.lane.b32.xlu1 %v2144_v23, %s3043_s15  ;;  %2027 = vrot.lane.b32.xlu0 %v1710_v13, %s3043_s15  ;;  %v2038_v41 = vor.u32 %v2037_v45, %v2033_v32 }
 0x36d   : >> { %1983 = vmatpush1.bf16.msra.mxu0 %v2688_v48  ;;  %2194 = vmatpush1.bf16.msra.mxu1 %v2688_v48 }
 0x36e   : >> { %1984 = vmatprep.subr.bf16.mxu0 %v3039_v46  ;;  %2195 = vmatprep.subr.bf16.mxu1 %v3039_v46 }
 0x36f   : >> { %2029 = vrot.lane.b32.xlu1 %v1716_v47, %s3044_s16  ;;  %1673 = vrot.lane.b32.xlu0 %v4046_v26, %s3044_s16  ;;  %v2045_v26 = vshrl.u32 %v3962_v33, 16 }
 0x371   : >> { %1985 = vmatpush1.bf16.msra.mxu0 %v2689_v20  ;;  %2196 = vmatpush1.bf16.msra.mxu1 %v2689_v20  ;;  %v2047_v11 = vrot.slane %v2045_v26, 1 }
 0x372   : >> { %1986 = vmatprep.subr.bf16.mxu0 %v3039_v46  ;;  %2197 = vmatprep.subr.bf16.mxu1 %v3039_v46  ;;  %v2054_v46 = vrot.slane %v3996_v18, 2  ;;  %v4269_v18 = vcombine.low %v3973_v17, %v3976_v36 }
 0x373   : >> { %2031 = vrot.lane.b32.xlu1 %v2668_v24, %s3045_s17  ;;  %1680 = vrot.lane.b32.xlu0 %v4082_v61, %s3045_s17  ;;  %v2041_v61 = vrot.slane %v3988_v10, 1  ;;  %v2051_v33 = vor.u32 %v2050_v25, %v2047_v11 }
 0x375   : >> { %1987 = vmatpush1.bf16.msra.mxu0 %v1960_v19  ;;  %2198 = vmatpush1.bf16.msra.mxu1 %v1960_v19 }
 0x377   : >> { %2039 = vrot.lane.b32.xlu1 %v2038_v41, %s3046_s20  ;;  %1692 = vrot.lane.b32.xlu0 %v4095_v34, %s3046_s20 }
 0x37b   : >> { %2042 = vrot.lane.b32.xlu1 %v2041_v61, %s3047_s21  ;;  %1698 = vrot.lane.b32.xlu0 %v4114_v35, %s3047_s21 }
 0x37f   : >> { %2052 = vrot.lane.b32.xlu1 %v2051_v33, %s3048_s22  ;;  %1711 = vrot.lane.b32.xlu0 %v1710_v13, %s3048_s22 }
 0x383   : >> { %2055 = vrot.lane.b32.xlu1 %v2054_v46, %s3049_s24  ;;  %1717 = vrot.lane.b32.xlu0 %v1716_v47, %s3049_s24 }
 0x387   : >> { %2057 = vrot.lane.b32.xlu1 %v4026_v51, %s3050_s25  ;;  %1724 = vrot.lane.b32.xlu0 %v2668_v24, %s3050_s25 }
 0x3a0   : >> { %v1793_v10 = vpop.permute.xlu1 %1792 }
 0x3a1   : >> { %v1611_v34 = vpop.permute.xlu0 %1610 }
 0x3a5   : >> { %v2094_v62 = vpop.permute.xlu1 %2093  ;;  %v2016_v60 = vpop.permute.xlu0 %2015 }
 0x3a9   : >> { %v2014_v35 = vpop.permute.xlu1 %2013  ;;  %v1605_v27 = vpop.permute.xlu0 %1604 }
 0x3aa   : >> { %v2061_v49 = vsel %vm1726_vm2, %v4070_v2, %v2014_v35  ;;  %v1729_v58 = vsel %vm1726_vm2, %v4269_v18, %v1605_v27 }
 0x3ab   : >> { %v4168_v59 = vsel %vm1730_vm3, %v1729_v58, %v1611_v34  ;;  %v4171_v51 = vsel %vm1730_vm3, %v2061_v49, %v2016_v60 }
 0x3ad   : >> { %v2092_v42 = vpop.permute.xlu1 %2091  ;;  %v1787_v14 = vpop.permute.xlu0 %1786 }
 0x3ae   : >> { %v1859_v50 = vsel %vm1726_vm2, %v4130_v39, %v1787_v14  ;;  %v2149_v25 = vsel %vm1726_vm2, %v4060_v55, %v2092_v42  ;;  %vm3052_vm2 = vmmov 0  }
 0x3af   : >> { %v1861_v11 = vsel %vm1730_vm3, %v1859_v50, %v1793_v10  ;;  %v2151_v39 = vsel %vm1730_vm3, %v2149_v25, %v2094_v62  ;;  %vm2220_vm3 = vcmask 1041408  }
 0x3b1   : >> { %v1806_v23 = vpop.permute.xlu1 %1805  ;;  %v4173_v13 = vpop.permute.xlu0 %1623 }
 0x3b2   : >> { %v1863_v19 = vsel %vm614_vm0, %v1861_v11, %v1806_v23 }
 0x3b5   : >> { %v2096_v21 = vpop.permute.xlu1 %2095  ;;  %v2018_v47 = vpop.permute.xlu0 %2017 }
 0x3b6   : >> { %v2153_v10 = vsel %vm614_vm0, %v2151_v39, %v2096_v21 }
 0x3b9   : >> { %v1820_v63 = vpop.permute.xlu1 %1819  ;;  %v1630_v2 = vpop.permute.xlu0 %1629 }
 0x3ba   : >> { %v1865_v34 = vsel %vm1736_vm4, %v1863_v19, %v1820_v63 }
 0x3bd   : >> { %v2110_v6 = vpop.permute.xlu1 %2109  ;;  %v2020_v48 = vpop.permute.xlu0 %2019 }
 0x3be   : >> { %v2155_v18 = vsel %vm1736_vm4, %v2153_v10, %v2110_v6 }
 0x3c1   : >> { %v1825_v17 = vpop.permute.xlu1 %1824  ;;  %v1637_v36 = vpop.permute.xlu0 %1636 }
 0x3c2   : >> { %v1867_v60 = vsel %vm1739_vm5, %v1865_v34, %v1825_v17 }
 0x3c5   : >> { %v2115_v24 = vpop.permute.xlu1 %2114  ;;  %v2022_v32 = vpop.permute.xlu0 %2021 }
 0x3c6   : >> { %v2157_v42 = vsel %vm1739_vm5, %v2155_v18, %v2115_v24 }
 0x3c9   : >> { %v1837_v45 = vpop.permute.xlu1 %1836  ;;  %v1649_v20 = vpop.permute.xlu0 %1648 }
 0x3ca   : >> { %v1869_v35 = vsel %vm856_vm9, %v1867_v60, %v1837_v45 }
 0x3cd   : >> { %v2127_v41 = vpop.permute.xlu1 %2126  ;;  %v2024_v26 = vpop.permute.xlu0 %2023 }
 0x3ce   : >> { %v2159_v23 = vsel %vm856_vm9, %v2157_v42, %v2127_v41 }
 0x3d1   : >> { %v1843_v7 = vpop.permute.xlu1 %1842  ;;  %v1655_v61 = vpop.permute.xlu0 %1654 }
 0x3d2   : >> { %v1871_v27 = vsel %vm1745_vm6, %v1869_v35, %v1843_v7 }
 0x3d5   : >> { %v2133_v33 = vpop.permute.xlu1 %2132  ;;  %v2026_v46 = vpop.permute.xlu0 %2025 }
 0x3d6   : >> { %v2161_v63 = vsel %vm1745_vm6, %v2159_v23, %v2133_v33 }
 0x3d9   : >> { %v1856_v49 = vpop.permute.xlu1 %1855  ;;  %v1668_v55 = vpop.permute.xlu0 %1667 }
 0x3da   : >> { %v1873_v58 = vsel %vm1748_vm7, %v1871_v27, %v1856_v49  ;;  %v1735_v27 = vsel %vm614_vm0, %v4168_v59, %v4173_v13  ;;  %v2065_v49 = vsel %vm614_vm0, %v4171_v51, %v2018_v47 }
 0x3db   : >> { %v1876_v14 = vshll.u32 %v1873_v58, 16  ;;  %v1874_v62 = vshrl.u32 %v1873_v58, 16  ;;  %v1738_v18 = vsel %vm1736_vm4, %v1735_v27, %v1630_v2  ;;  %v2067_v58 = vsel %vm1736_vm4, %v2065_v49, %v2020_v48 }
 0x3dc   : >> { %v1741_v42 = vsel %vm1739_vm5, %v1738_v18, %v1637_v36  ;;  %vm3054_vm4 = vmmov 1  }
 0x3dd   : >> { %v1878_v17 = vrot.slane %v1876_v14, 1  ;;  %v2146_v45 = vpop.permute.xlu1 %2145  ;;  %v2028_v50 = vpop.permute.xlu0 %2027  ;;  %v2069_v14 = vsel %vm1739_vm5, %v2067_v58, %v2022_v32  ;;  %v1744_v23 = vsel %vm856_vm9, %v1741_v42, %v1649_v20  ;;  %vm2850_vm5 = vmpackc.low %vm2220_vm3, %vm3054_vm4 }
 0x3de   : >> { %v2163_v21 = vsel %vm1748_vm7, %v2161_v63, %v2146_v45  ;;  %v2071_v63 = vsel %vm856_vm9, %v2069_v14, %v2024_v26  ;;  %v1747_v45 = vsel %vm1745_vm6, %v1744_v23, %v1655_v61  ;;  %v4270_v23 = vld [vmem:[#allocation10_spill] sm:$0xff] }
 0x3df   : >> { %v2166_v7 = vshll.u32 %v2163_v21, 16  ;;  %v1879_v11 = vor.u32 %v1878_v17, %v1874_v62  ;;  %v2164_v25 = vshrl.u32 %v2163_v21, 16  ;;  %v2073_v59 = vsel %vm1745_vm6, %v2071_v63, %v2026_v46  ;;  %v4271_v63 = vld [vmem:[#allocation12_spill] sm:$0xff] }
 0x3e0   : >> { %v1750_v51 = vsel %vm1748_vm7, %v1747_v45, %v1668_v55  ;;  %v2075_v13 = vsel %vm1748_vm7, %v2073_v59, %v2028_v50  ;;  %vm2216_vm6 = vcmask 80896   ;;  %vm2379_vm7 = vcmask 124928  }
 0x3e1   : >> { %v2168_v6 = vrot.slane %v2166_v7, 1  ;;  %v2030_v19 = vpop.permute.xlu1 %2029  ;;  %2691 = vmatprep.mubr.msk.bf16.mxu0 %vm1751_vm8, %v1879_v11  ;;  %v1674_v24 = vpop.permute.xlu0 %1673 }
 0x3e2   : >> { %v2077_v47 = vsel %vm1751_vm8, %v2075_v13, %v2030_v19  ;;  %v1753_v2 = vsel %vm1751_vm8, %v1750_v51, %v1674_v24  ;;  %v4272_v13 = vld [vmem:[#allocation16_spill] sm:$0xff] }
 0x3e3   : >> { %v2169_v34 = vor.u32 %v2168_v6, %v2164_v25 }
 0x3e5   : >> { %2705 = vmatprep.mubr.msk.bf16.mxu1 %vm1751_vm8, %v2169_v34  ;;  %v2032_v41 = vpop.permute.xlu1 %2031  ;;  %v1681_v33 = vpop.permute.xlu0 %1680  ;;  %v3051_v34 = vmov 0.0|0.0   ;;  %vm2380_vm8 = vsmask.f32 2304 }
 0x3e6   : >> { %v2079_v48 = vsel %vm1754_vm10, %v2077_v47, %v2032_v41  ;;  %v1756_v36 = vsel %vm1754_vm10, %v1753_v2, %v1681_v33  ;;  %2848 = vmatprep.subr.bf16.mxu0 %v3051_v34  ;;  %2852 = vmatprep.subr.bf16.mxu1 %v3051_v34  ;;  %v3053_v41 = vmov 0.0   ;;  %vm2381_vm10 = vmand %vm2379_vm7, %vm2380_vm8 }
 0x3e9   : >> { %v2040_v60 = vpop.permute.xlu1 %2039  ;;  %v1693_v39 = vpop.permute.xlu0 %1692 }
 0x3ea   : >> { %v2081_v26 = vsel %vm1757_vm11, %v2079_v48, %v2040_v60  ;;  %v1759_v61 = vsel %vm1757_vm11, %v1756_v36, %v1693_v39  ;;  %v2382_v48 = vld [vmem:[%s2378_s28] sm:$0x7] }
 0x3ed   : >> { %v2043_v35 = vpop.permute.xlu1 %2042  ;;  %v1699_v10 = vpop.permute.xlu0 %1698 }
 0x3ee   : >> { %v2083_v46 = vsel %vm1760_vm13, %v2081_v26, %v2043_v35  ;;  %v1762_v21 = vsel %vm1760_vm13, %v1759_v61, %v1699_v10 }
 0x3f1   : >> { %v2053_v62 = vpop.permute.xlu1 %2052  ;;  %v1712_v17 = vpop.permute.xlu0 %1711 }
 0x3f2   : >> { %v2085_v55 = vsel %vm1763_vm14, %v2083_v46, %v2053_v62  ;;  %v1765_v7 = vsel %vm1763_vm14, %v1762_v21, %v1712_v17 }
 0x3f5   : >> { %v2056_v32 = vpop.permute.xlu1 %2055  ;;  %v1718_v20 = vpop.permute.xlu0 %1717 }
 0x3f6   : >> { %v2087_v50 = vsel %vm1766_vm15, %v2085_v55, %v2056_v32  ;;  %v1768_v11 = vsel %vm1766_vm15, %v1765_v7, %v1718_v20 }
 0x3f9   : >> { %v2058_v25 = vpop.permute.xlu1 %2057  ;;  %v1725_v6 = vpop.permute.xlu0 %1724 }
 0x3fa   : >> { %v1771_v19 = vsel %vm1769_vm1, %v1768_v11, %v1725_v6  ;;  %v2089_v24 = vsel %vm1769_vm1, %v2087_v50, %v2058_v25 }
 0x3fb   : >> { %1995 = vmatmul.mubr.bf16.vlgmr.msra.gmra.mrb[0].mxu0 %v1771_v19  ;;  %2206 = vmatmul.mubr.bf16.vlgmr.msra.gmra.mrb[0].mxu1 %v2089_v24 }
 0x3fc   : >> { %2818 = vmatprep.mubr.msk.f32.mxu0 %vm3052_vm2, %v3053_v41  ;;  %2825 = vmatprep.mubr.msk.f32.mxu1 %vm3052_vm2, %v3053_v41 }
 0x4ce   : >> { %v1996_v33 = vpop.f32.mrb[0].mxu0  ;;  %v2207_v60 = vpop.f32.mrb[0].mxu1 }
 0x4cf   : >> { %v2214_v39 = vmax.f32 %v1996_v33, %v2207_v60  ;;  %v1998_v35 = vpop.f32.mrb[1].mxu0  ;;  %v2209_v10 = vpop.f32.mrb[1].mxu1 }
 0x4d0   : >> { %v1999_v27 = vpop.f32.mrb[2].mxu0  ;;  %v2210_v49 = vpop.f32.mrb[2].mxu1 }
 0x4d1   : >> { %v2215_v18 = vmax.f32 %v1999_v27, %v2210_v49  ;;  %v2001_v58 = vpop.f32.mrb[3].mxu0  ;;  %v2212_v42 = vpop.f32.mrb[3].mxu1 }
 0x4d3   : >> { %v2849_v14 = vpack.c.bf16 %v2215_v18, %v2214_v39 }
 0x4d5   : >> { %2851 = vmatpush3.bf16.msk.msra.mxu0 %vm2850_vm5, %v2849_v14  ;;  %2855 = vmatpush3.bf16.msk.msra.mxu1 %vm2850_vm5, %v2849_v14 }
 0x4d8   : >> { %2819 = vmatmul.mubr.msk.f32.vlgmr.msra.gmra.mrb[4].mxu0 %vm2216_vm6, %v4270_v23  ;;  %2826 = vmatmul.mubr.msk.f32.vlgmr.msra.gmra.mrb[4].mxu1 %vm2216_vm6, %v4271_v63 }
 0x5ab   : >> { %v2290_v62 = vpop.f32.mrb[4].mxu0  ;;  %v2363_v17 = vpop.f32.mrb[4].mxu1 }
 0x5ac   : >> { %v2367_v45 = vmax.f32 %v2290_v62, %v2363_v17  ;;  %v2820_v59 = vpop.f32.mrb[5].mxu0  ;;  %v2827_v51 = vpop.f32.mrb[5].mxu1 }
 0x5ae   : >> { %v2374_v47 = vadd.f32 %v4272_v13, %v2367_v45 }
 0x5b0   : >> { %2990 = vtanh.f32 %v2374_v47 }
 0x5b8   : > { %1537 = sbr.rel (!%p1535_p5) target bundleno = 803 (0x323), region = 109 }
 0x5ba   : >> { %v2991_v2 = vpop.eup %2990 }
 0x5bb   : >> { %v2376_v36 = vpack.c.bf16 %v2991_v2, %v2991_v2 }
 0x5bd   : >> { %v2383_v32 = vsel %vm2381_vm10, %v2376_v36, %v2382_v48 }
 0x5be   : >> { %2384 = vst [vmem:[%s2378_s28] sm:$0x7] %v2383_v32 }
 0x5bf PF: > { %s15_s18 = sadd.s32 1, %s3006_s18  }
 0x5c0   : > { %p12_p6 = scmp.ge.s32.totalorder %s15_s18, 4  }
 0x5c2   :  { %14 = sbr.rel (!%p12_p6) target bundleno = 1 (0x1), region = 120 }

</bundles_post_ra>
